<compile_context>
chip_gen: v7x
topology: tpu7x:2x2x1
jax: 0.10.0
libtpu: 0.0.40
codegen_flags: <defaults>
</compile_context>

<pallas_src>
import math

import jax
import jax.numpy as jnp
import numpy as np
from jax.experimental import pallas as pl
from jax.experimental.pallas import tpu as pltpu


# ----------------------------- fused Pallas kernel ------------------------------ #

def _make_fused_lstm_kernel(num_layers, seq_len, batch, hidden):
    """Kernel args: (x_flat, wih0, whh0, b0, [wcat_l, b_l]*(L-1), fc_w, fc_b, out, gx_sc)."""
    T, B, H = seq_len, batch, hidden

    def kernel(*args):
        idx = 0
        x_ref = args[idx]; idx += 1                      # (T*B, D)  bf16, time-major flat
        wih0_ref = args[idx]; idx += 1                   # (D, 4H)   bf16
        whh0_ref = args[idx]; idx += 1                   # (H, 4H)   bf16
        b0_ref = args[idx]; idx += 1                     # (1, 4H)   f32
        upper = []
        for _ in range(num_layers - 1):
            upper.append((args[idx], args[idx + 1]))     # (2H, 4H) bf16, (1, 4H) f32
            idx += 2
        fcw_ref = args[idx]; idx += 1                    # (1, H)    f32
        fcb_ref = args[idx]; idx += 1                    # (1, 1)    f32
        out_ref = args[idx]; idx += 1                    # (B, 1)    f32
        gx_sc = args[idx]; idx += 1                      # (T*B, 4H) f32 VMEM scratch

        # Hoisted layer-0 input projection: one big matmul, off the recurrent
        # critical path; fused bias; result resident in VMEM only.
        gx_sc[...] = (jnp.dot(x_ref[...], wih0_ref[...],
                              preferred_element_type=jnp.float32)
                      + b0_ref[...])

        def gate_math(gates, c):
            # Gate slices fall on 128-lane boundaries (H multiple of 128) -> free.
            i_g = jax.nn.sigmoid(gates[:, 0:H])
            f_g = jax.nn.sigmoid(gates[:, H:2 * H])
            g_g = jnp.tanh(gates[:, 2 * H:3 * H])
            o_g = jax.nn.sigmoid(gates[:, 3 * H:4 * H])
            c_new = f_g * c + i_g * g_g
            h_new = o_g * jnp.tanh(c_new)
            return h_new, c_new

        def layer0_step(t, h, c):
            # Recurrent weight stays ref-indexed inside the dot (no vreg-file blowup).
            gates = gx_sc[pl.ds(t * B, B), :] + jnp.dot(
                h.astype(jnp.bfloat16), whh0_ref[...],
                preferred_element_type=jnp.float32)
            return gate_math(gates, c)

        def upper_step(l, h_below, h, c):
            wcat_ref, b_ref = upper[l - 1]
            # Single K=2H matmul on [h_below ; h_prev] — fills the 256-deep MXU.
            lhs = jnp.concatenate([h_below, h], axis=-1).astype(jnp.bfloat16)
            gates = (jnp.dot(lhs, wcat_ref[...],
                             preferred_element_type=jnp.float32)
                     + b_ref[...])
            return gate_math(gates, c)

        zeros = jnp.zeros((B, H), jnp.float32)
        h = [zeros] * num_layers
        c = [zeros] * num_layers

        # Layer wavefront: at step s, layer l processes time t = s - l; its input is
        # layer (l-1)'s output produced in the previous wavefront step (snapshotted).
        for s in range(T + num_layers - 1):
            prev_h = list(h)
            for l in range(num_layers):
                t = s - l
                if 0 <= t < T:
                    if l == 0:
                        h[0], c[0] = layer0_step(t, prev_h[0], c[0])
                    else:
                        h[l], c[l] = upper_step(l, prev_h[l - 1], prev_h[l], c[l])

        # Final Linear(H, 1) on the last timestep of the top layer:
        # VPU broadcast-multiply + lane reduction (no N=1 MXU push).
        h_last = h[num_layers - 1]
        out_ref[...] = (jnp.sum(h_last * fcw_ref[...], axis=-1, keepdims=True)
                        + fcb_ref[...])

    return kernel


# ------------------------------ wrapper ----------------------------------- #

def lstm_forward(x, layer_params, fc_w_t, fc_b):
    """x: (B, T, D) batch_first. Returns (B, 1), matching the PyTorch module."""
    B, T, D = x.shape
    H = layer_params[0][1].shape[0]
    num_layers = len(layer_params)

    # Time-major, flattened to (T*B, D); bf16 operands for all MXU matmuls.
    x_flat = jnp.transpose(x, (1, 0, 2)).reshape(T * B, D).astype(jnp.bfloat16)

    wih0_t, whh0_t, b0 = layer_params[0]
    args = [x_flat,
            wih0_t.astype(jnp.bfloat16),
            whh0_t.astype(jnp.bfloat16),
            b0.astype(jnp.float32)]
    for (wih_t, whh_t, b) in layer_params[1:]:
        wcat = jnp.concatenate([wih_t, whh_t], axis=0).astype(jnp.bfloat16)  # (2H, 4H)
        args += [wcat, b.astype(jnp.float32)]
    args += [fc_w_t.reshape(1, H).astype(jnp.float32),
             fc_b.reshape(1, 1).astype(jnp.float32)]

    kernel = _make_fused_lstm_kernel(num_layers, T, B, H)
    return pl.pallas_call(
        kernel,
        out_shape=jax.ShapeDtypeStruct((B, 1), jnp.float32),
        scratch_shapes=[
            pltpu.VMEM((T * B, 4 * H), jnp.float32),   # hoisted input-projection gates
        ],
        compiler_params=pltpu.CompilerParams(
            vmem_limit_bytes=32 * 1024 * 1024),         # explicit guard (v7x: 64 MiB cap)
    )(*args)


# ------------------------------ reference ----------------------------------- #

def lstm_ref(x, layer_params, fc_w_t, fc_b):
    """Pure-JAX f32 reference of the same forward pass."""
    B = x.shape[0]
    seq = jnp.transpose(x, (1, 0, 2))          # (T, B, D)
    for (wih_t, whh_t, b) in layer_params:
        H = whh_t.shape[0]

        def step(carry, x_t):
            h, c = carry
            gates = x_t @ wih_t + h @ whh_t + b[0]
            i = jax.nn.sigmoid(gates[:, 0:H])
            f = jax.nn.sigmoid(gates[:, H:2 * H])
            g = jnp.tanh(gates[:, 2 * H:3 * H])
            o = jax.nn.sigmoid(gates[:, 3 * H:4 * H])
            c = f * c + i * g
            h = o * jnp.tanh(c)
            return (h, c), h

        init = (jnp.zeros((B, H), jnp.float32), jnp.zeros((B, H), jnp.float32))
        _, seq = jax.lax.scan(step, init, seq)
    return seq[-1] @ fc_w_t + fc_b


# -------------------------------- main -------------------------------------- #

if __name__ == "__main__":
    # Small shapes consistent with the module's forward:
    B, T, D, H, L = 8, 8, 8, 128, 2   # batch, seq, input_size, hidden_size, layers

    key = jax.random.PRNGKey(0)
    k_bound = 1.0 / math.sqrt(H)      # PyTorch LSTM/Linear init range

    layer_params = []
    for layer in range(L):
        d_in = D if layer == 0 else H
        key, k1, k2, k3, k4 = jax.random.split(key, 5)
        wih_t = jax.random.uniform(k1, (d_in, 4 * H), jnp.float32, -k_bound, k_bound)
        whh_t = jax.random.uniform(k2, (H, 4 * H), jnp.float32, -k_bound, k_bound)
        b_ih = jax.random.uniform(k3, (4 * H,), jnp.float32, -k_bound, k_bound)
        b_hh = jax.random.uniform(k4, (4 * H,), jnp.float32, -k_bound, k_bound)
        layer_params.append((wih_t, whh_t, (b_ih + b_hh).reshape(1, 4 * H)))

    key, kf1, kf2, kx = jax.random.split(key, 4)
    fc_w_t = jax.random.uniform(kf1, (H, 1), jnp.float32, -k_bound, k_bound)
    fc_b = jax.random.uniform(kf2, (1, 1), jnp.float32, -k_bound, k_bound)

    x = jax.random.normal(kx, (B, T, D), jnp.float32)

    out = lstm_forward(x, layer_params, fc_w_t, fc_b)
    out = jax.block_until_ready(out)
    assert out.shape == (B, 1), out.shape

    ref = jax.block_until_ready(lstm_ref(x, layer_params, fc_w_t, fc_b))
    # bf16 matmul operands (f32 accumulate) -> slightly looser tolerance than pure f32.
    np.testing.assert_allclose(np.asarray(out), np.asarray(ref),
                               rtol=5e-2, atol=2e-2)

    print("KERNEL_OK")
</pallas_src>

<mosaic_0001>
module attributes {stable_mosaic.version = 11 : i64} {
  func.func @kernel(%arg0: memref<64x8xbf16, #tpu.memory_space<vmem>>, %arg1: memref<8x512xbf16, #tpu.memory_space<vmem>>, %arg2: memref<128x512xbf16, #tpu.memory_space<vmem>>, %arg3: memref<1x512xf32, #tpu.memory_space<vmem>>, %arg4: memref<256x512xbf16, #tpu.memory_space<vmem>>, %arg5: memref<1x512xf32, #tpu.memory_space<vmem>>, %arg6: memref<1x128xf32, #tpu.memory_space<vmem>>, %arg7: memref<1x1xf32, #tpu.memory_space<vmem>>, %arg8: memref<8x1xf32, #tpu.memory_space<vmem>>, %arg9: memref<64x512xf32, #tpu.memory_space<vmem>>) attributes {dimension_semantics = [], scalar_prefetch = 0 : i64, scratch_operands = 1 : i64, tpu.core_type = #tpu.core_type<tc>} {
    %c0 = arith.constant 0 : index
    %c0_0 = arith.constant 0 : index
    %0 = vector.load %arg0[%c0, %c0_0] : memref<64x8xbf16, #tpu.memory_space<vmem>>, vector<64x8xbf16>
    %c0_1 = arith.constant 0 : index
    %c0_2 = arith.constant 0 : index
    %1 = vector.load %arg1[%c0_1, %c0_2] : memref<8x512xbf16, #tpu.memory_space<vmem>>, vector<8x512xbf16>
    %cst = arith.constant dense<0.000000e+00> : vector<64x512xf32>
    %2 = tpu.matmul %0, %1, %cst {dimension_numbers = #tpu.dot_dimension_numbers<[1], [0], [0], [1], [0, 0, 1, 1], [], []>} : vector<64x8xbf16>, vector<8x512xbf16>, vector<64x512xf32> -> vector<64x512xf32>
    %c0_3 = arith.constant 0 : index
    %c0_4 = arith.constant 0 : index
    %3 = vector.load %arg3[%c0_3, %c0_4] : memref<1x512xf32, #tpu.memory_space<vmem>>, vector<1x512xf32>
    %4 = vector.broadcast %3 : vector<1x512xf32> to vector<64x512xf32>
    %5 = arith.addf %2, %4 : vector<64x512xf32>
    %c0_5 = arith.constant 0 : index
    %c0_6 = arith.constant 0 : index
    %6 = vector.load %arg9[%c0_5, %c0_6] : memref<64x512xf32, #tpu.memory_space<vmem>>, vector<64x512xf32>
    tpu.vector_store %arg9[%c0_5, %c0_6], %5 {strides = array<i32>} : memref<64x512xf32, #tpu.memory_space<vmem>>, vector<64x512xf32>,
    %cst_7 = arith.constant 0.000000e+00 : f32
    %7 = vector.broadcast %cst_7 : f32 to vector<8x128xf32>
    %c0_8 = arith.constant 0 : index
    %c0_9 = arith.constant 0 : index
    %8 = vector.load %arg9[%c0_8, %c0_9] : memref<64x512xf32, #tpu.memory_space<vmem>>, vector<8x512xf32>
    %9 = arith.truncf %7 : vector<8x128xf32> to vector<8x128xbf16>
    %c0_10 = arith.constant 0 : index
    %c0_11 = arith.constant 0 : index
    %10 = vector.load %arg2[%c0_10, %c0_11] : memref<128x512xbf16, #tpu.memory_space<vmem>>, vector<128x512xbf16>
    %cst_12 = arith.constant dense<0.000000e+00> : vector<8x512xf32>
    %11 = tpu.matmul %9, %10, %cst_12 {dimension_numbers = #tpu.dot_dimension_numbers<[1], [0], [0], [1], [0, 0, 1, 1], [], []>} : vector<8x128xbf16>, vector<128x512xbf16>, vector<8x512xf32> -> vector<8x512xf32>
    %12 = arith.addf %8, %11 : vector<8x512xf32>
    %13 = vector.extract_strided_slice %12 {offsets = [0, 0], sizes = [8, 128], strides = [1, 1]} : vector<8x512xf32> to vector<8x128xf32>
    %14 = arith.negf %13 : vector<8x128xf32>
    %15 = math.exp %14 : vector<8x128xf32>
    %cst_13 = arith.constant 1.000000e+00 : f32
    %16 = vector.broadcast %cst_13 : f32 to vector<8x128xf32>
    %17 = arith.addf %16, %15 : vector<8x128xf32>
    %18 = arith.divf %16, %17 : vector<8x128xf32>
    %19 = vector.extract_strided_slice %12 {offsets = [0, 128], sizes = [8, 128], strides = [1, 1]} : vector<8x512xf32> to vector<8x128xf32>
    %20 = arith.negf %19 : vector<8x128xf32>
    %21 = math.exp %20 : vector<8x128xf32>
    %cst_14 = arith.constant 1.000000e+00 : f32
    %22 = vector.broadcast %cst_14 : f32 to vector<8x128xf32>
    %23 = arith.addf %22, %21 : vector<8x128xf32>
    %24 = arith.divf %22, %23 : vector<8x128xf32>
    %25 = vector.extract_strided_slice %12 {offsets = [0, 256], sizes = [8, 128], strides = [1, 1]} : vector<8x512xf32> to vector<8x128xf32>
    %26 = math.tanh %25 : vector<8x128xf32>
    %27 = vector.extract_strided_slice %12 {offsets = [0, 384], sizes = [8, 128], strides = [1, 1]} : vector<8x512xf32> to vector<8x128xf32>
    %28 = arith.negf %27 : vector<8x128xf32>
    %29 = math.exp %28 : vector<8x128xf32>
    %cst_15 = arith.constant 1.000000e+00 : f32
    %30 = vector.broadcast %cst_15 : f32 to vector<8x128xf32>
    %31 = arith.addf %30, %29 : vector<8x128xf32>
    %32 = arith.divf %30, %31 : vector<8x128xf32>
    %33 = arith.mulf %24, %7 : vector<8x128xf32>
    %34 = arith.mulf %18, %26 : vector<8x128xf32>
    %35 = arith.addf %33, %34 : vector<8x128xf32>
    %36 = math.tanh %35 : vector<8x128xf32>
    %37 = arith.mulf %32, %36 : vector<8x128xf32>
    %c8 = arith.constant 8 : index
    %c0_16 = arith.constant 0 : index
    %38 = vector.load %arg9[%c8, %c0_16] : memref<64x512xf32, #tpu.memory_space<vmem>>, vector<8x512xf32>
    %39 = arith.truncf %37 : vector<8x128xf32> to vector<8x128xbf16>
    %c0_17 = arith.constant 0 : index
    %c0_18 = arith.constant 0 : index
    %40 = vector.load %arg2[%c0_17, %c0_18] : memref<128x512xbf16, #tpu.memory_space<vmem>>, vector<128x512xbf16>
    %cst_19 = arith.constant dense<0.000000e+00> : vector<8x512xf32>
    %41 = tpu.matmul %39, %40, %cst_19 {dimension_numbers = #tpu.dot_dimension_numbers<[1], [0], [0], [1], [0, 0, 1, 1], [], []>} : vector<8x128xbf16>, vector<128x512xbf16>, vector<8x512xf32> -> vector<8x512xf32>
    %42 = arith.addf %38, %41 : vector<8x512xf32>
    %43 = vector.extract_strided_slice %42 {offsets = [0, 0], sizes = [8, 128], strides = [1, 1]} : vector<8x512xf32> to vector<8x128xf32>
    %44 = arith.negf %43 : vector<8x128xf32>
    %45 = math.exp %44 : vector<8x128xf32>
    %cst_20 = arith.constant 1.000000e+00 : f32
    %46 = vector.broadcast %cst_20 : f32 to vector<8x128xf32>
    %47 = arith.addf %46, %45 : vector<8x128xf32>
    %48 = arith.divf %46, %47 : vector<8x128xf32>
    %49 = vector.extract_strided_slice %42 {offsets = [0, 128], sizes = [8, 128], strides = [1, 1]} : vector<8x512xf32> to vector<8x128xf32>
    %50 = arith.negf %49 : vector<8x128xf32>
    %51 = math.exp %50 : vector<8x128xf32>
    %cst_21 = arith.constant 1.000000e+00 : f32
    %52 = vector.broadcast %cst_21 : f32 to vector<8x128xf32>
    %53 = arith.addf %52, %51 : vector<8x128xf32>
    %54 = arith.divf %52, %53 : vector<8x128xf32>
    %55 = vector.extract_strided_slice %42 {offsets = [0, 256], sizes = [8, 128], strides = [1, 1]} : vector<8x512xf32> to vector<8x128xf32>
    %56 = math.tanh %55 : vector<8x128xf32>
    %57 = vector.extract_strided_slice %42 {offsets = [0, 384], sizes = [8, 128], strides = [1, 1]} : vector<8x512xf32> to vector<8x128xf32>
    %58 = arith.negf %57 : vector<8x128xf32>
    %59 = math.exp %58 : vector<8x128xf32>
    %cst_22 = arith.constant 1.000000e+00 : f32
    %60 = vector.broadcast %cst_22 : f32 to vector<8x128xf32>
    %61 = arith.addf %60, %59 : vector<8x128xf32>
    %62 = arith.divf %60, %61 : vector<8x128xf32>
    %63 = arith.mulf %54, %35 : vector<8x128xf32>
    %64 = arith.mulf %48, %56 : vector<8x128xf32>
    %65 = arith.addf %63, %64 : vector<8x128xf32>
    %66 = math.tanh %65 : vector<8x128xf32>
    %67 = arith.mulf %62, %66 : vector<8x128xf32>
    %68 = tpu.concatenate %37, %7 in 1 : vector<8x128xf32>, vector<8x128xf32> -> vector<8x256xf32>
    %69 = arith.truncf %68 : vector<8x256xf32> to vector<8x256xbf16>
    %c0_23 = arith.constant 0 : index
    %c0_24 = arith.constant 0 : index
    %70 = vector.load %arg4[%c0_23, %c0_24] : memref<256x512xbf16, #tpu.memory_space<vmem>>, vector<256x512xbf16>
    %cst_25 = arith.constant dense<0.000000e+00> : vector<8x512xf32>
    %71 = tpu.matmul %69, %70, %cst_25 {dimension_numbers = #tpu.dot_dimension_numbers<[1], [0], [0], [1], [0, 0, 1, 1], [], []>} : vector<8x256xbf16>, vector<256x512xbf16>, vector<8x512xf32> -> vector<8x512xf32>
    %c0_26 = arith.constant 0 : index
    %c0_27 = arith.constant 0 : index
    %72 = vector.load %arg5[%c0_26, %c0_27] : memref<1x512xf32, #tpu.memory_space<vmem>>, vector<1x512xf32>
    %73 = vector.broadcast %72 : vector<1x512xf32> to vector<8x512xf32>
    %74 = arith.addf %71, %73 : vector<8x512xf32>
    %75 = vector.extract_strided_slice %74 {offsets = [0, 0], sizes = [8, 128], strides = [1, 1]} : vector<8x512xf32> to vector<8x128xf32>
    %76 = arith.negf %75 : vector<8x128xf32>
    %77 = math.exp %76 : vector<8x128xf32>
    %cst_28 = arith.constant 1.000000e+00 : f32
    %78 = vector.broadcast %cst_28 : f32 to vector<8x128xf32>
    %79 = arith.addf %78, %77 : vector<8x128xf32>
    %80 = arith.divf %78, %79 : vector<8x128xf32>
    %81 = vector.extract_strided_slice %74 {offsets = [0, 128], sizes = [8, 128], strides = [1, 1]} : vector<8x512xf32> to vector<8x128xf32>
    %82 = arith.negf %81 : vector<8x128xf32>
    %83 = math.exp %82 : vector<8x128xf32>
    %cst_29 = arith.constant 1.000000e+00 : f32
    %84 = vector.broadcast %cst_29 : f32 to vector<8x128xf32>
    %85 = arith.addf %84, %83 : vector<8x128xf32>
    %86 = arith.divf %84, %85 : vector<8x128xf32>
    %87 = vector.extract_strided_slice %74 {offsets = [0, 256], sizes = [8, 128], strides = [1, 1]} : vector<8x512xf32> to vector<8x128xf32>
    %88 = math.tanh %87 : vector<8x128xf32>
    %89 = vector.extract_strided_slice %74 {offsets = [0, 384], sizes = [8, 128], strides = [1, 1]} : vector<8x512xf32> to vector<8x128xf32>
    %90 = arith.negf %89 : vector<8x128xf32>
    %91 = math.exp %90 : vector<8x128xf32>
    %cst_30 = arith.constant 1.000000e+00 : f32
    %92 = vector.broadcast %cst_30 : f32 to vector<8x128xf32>
    %93 = arith.addf %92, %91 : vector<8x128xf32>
    %94 = arith.divf %92, %93 : vector<8x128xf32>
    %95 = arith.mulf %86, %7 : vector<8x128xf32>
    %96 = arith.mulf %80, %88 : vector<8x128xf32>
    %97 = arith.addf %95, %96 : vector<8x128xf32>
    %98 = math.tanh %97 : vector<8x128xf32>
    %99 = arith.mulf %94, %98 : vector<8x128xf32>
    %c16 = arith.constant 16 : index
    %c0_31 = arith.constant 0 : index
    %100 = vector.load %arg9[%c16, %c0_31] : memref<64x512xf32, #tpu.memory_space<vmem>>, vector<8x512xf32>
    %101 = arith.truncf %67 : vector<8x128xf32> to vector<8x128xbf16>
    %c0_32 = arith.constant 0 : index
    %c0_33 = arith.constant 0 : index
    %102 = vector.load %arg2[%c0_32, %c0_33] : memref<128x512xbf16, #tpu.memory_space<vmem>>, vector<128x512xbf16>
    %cst_34 = arith.constant dense<0.000000e+00> : vector<8x512xf32>
    %103 = tpu.matmul %101, %102, %cst_34 {dimension_numbers = #tpu.dot_dimension_numbers<[1], [0], [0], [1], [0, 0, 1, 1], [], []>} : vector<8x128xbf16>, vector<128x512xbf16>, vector<8x512xf32> -> vector<8x512xf32>
    %104 = arith.addf %100, %103 : vector<8x512xf32>
    %105 = vector.extract_strided_slice %104 {offsets = [0, 0], sizes = [8, 128], strides = [1, 1]} : vector<8x512xf32> to vector<8x128xf32>
    %106 = arith.negf %105 : vector<8x128xf32>
    %107 = math.exp %106 : vector<8x128xf32>
    %cst_35 = arith.constant 1.000000e+00 : f32
    %108 = vector.broadcast %cst_35 : f32 to vector<8x128xf32>
    %109 = arith.addf %108, %107 : vector<8x128xf32>
    %110 = arith.divf %108, %109 : vector<8x128xf32>
    %111 = vector.extract_strided_slice %104 {offsets = [0, 128], sizes = [8, 128], strides = [1, 1]} : vector<8x512xf32> to vector<8x128xf32>
    %112 = arith.negf %111 : vector<8x128xf32>
    %113 = math.exp %112 : vector<8x128xf32>
    %cst_36 = arith.constant 1.000000e+00 : f32
    %114 = vector.broadcast %cst_36 : f32 to vector<8x128xf32>
    %115 = arith.addf %114, %113 : vector<8x128xf32>
    %116 = arith.divf %114, %115 : vector<8x128xf32>
    %117 = vector.extract_strided_slice %104 {offsets = [0, 256], sizes = [8, 128], strides = [1, 1]} : vector<8x512xf32> to vector<8x128xf32>
    %118 = math.tanh %117 : vector<8x128xf32>
    %119 = vector.extract_strided_slice %104 {offsets = [0, 384], sizes = [8, 128], strides = [1, 1]} : vector<8x512xf32> to vector<8x128xf32>
    %120 = arith.negf %119 : vector<8x128xf32>
    %121 = math.exp %120 : vector<8x128xf32>
    %cst_37 = arith.constant 1.000000e+00 : f32
    %122 = vector.broadcast %cst_37 : f32 to vector<8x128xf32>
    %123 = arith.addf %122, %121 : vector<8x128xf32>
    %124 = arith.divf %122, %123 : vector<8x128xf32>
    %125 = arith.mulf %116, %65 : vector<8x128xf32>
    %126 = arith.mulf %110, %118 : vector<8x128xf32>
    %127 = arith.addf %125, %126 : vector<8x128xf32>
    %128 = math.tanh %127 : vector<8x128xf32>
    %129 = arith.mulf %124, %128 : vector<8x128xf32>
    %130 = tpu.concatenate %67, %99 in 1 : vector<8x128xf32>, vector<8x128xf32> -> vector<8x256xf32>
    %131 = arith.truncf %130 : vector<8x256xf32> to vector<8x256xbf16>
    %c0_38 = arith.constant 0 : index
    %c0_39 = arith.constant 0 : index
    %132 = vector.load %arg4[%c0_38, %c0_39] : memref<256x512xbf16, #tpu.memory_space<vmem>>, vector<256x512xbf16>
    %cst_40 = arith.constant dense<0.000000e+00> : vector<8x512xf32>
    %133 = tpu.matmul %131, %132, %cst_40 {dimension_numbers = #tpu.dot_dimension_numbers<[1], [0], [0], [1], [0, 0, 1, 1], [], []>} : vector<8x256xbf16>, vector<256x512xbf16>, vector<8x512xf32> -> vector<8x512xf32>
    %c0_41 = arith.constant 0 : index
    %c0_42 = arith.constant 0 : index
    %134 = vector.load %arg5[%c0_41, %c0_42] : memref<1x512xf32, #tpu.memory_space<vmem>>, vector<1x512xf32>
    %135 = vector.broadcast %134 : vector<1x512xf32> to vector<8x512xf32>
    %136 = arith.addf %133, %135 : vector<8x512xf32>
    %137 = vector.extract_strided_slice %136 {offsets = [0, 0], sizes = [8, 128], strides = [1, 1]} : vector<8x512xf32> to vector<8x128xf32>
    %138 = arith.negf %137 : vector<8x128xf32>
    %139 = math.exp %138 : vector<8x128xf32>
    %cst_43 = arith.constant 1.000000e+00 : f32
    %140 = vector.broadcast %cst_43 : f32 to vector<8x128xf32>
    %141 = arith.addf %140, %139 : vector<8x128xf32>
    %142 = arith.divf %140, %141 : vector<8x128xf32>
    %143 = vector.extract_strided_slice %136 {offsets = [0, 128], sizes = [8, 128], strides = [1, 1]} : vector<8x512xf32> to vector<8x128xf32>
    %144 = arith.negf %143 : vector<8x128xf32>
    %145 = math.exp %144 : vector<8x128xf32>
    %cst_44 = arith.constant 1.000000e+00 : f32
    %146 = vector.broadcast %cst_44 : f32 to vector<8x128xf32>
    %147 = arith.addf %146, %145 : vector<8x128xf32>
    %148 = arith.divf %146, %147 : vector<8x128xf32>
    %149 = vector.extract_strided_slice %136 {offsets = [0, 256], sizes = [8, 128], strides = [1, 1]} : vector<8x512xf32> to vector<8x128xf32>
    %150 = math.tanh %149 : vector<8x128xf32>
    %151 = vector.extract_strided_slice %136 {offsets = [0, 384], sizes = [8, 128], strides = [1, 1]} : vector<8x512xf32> to vector<8x128xf32>
    %152 = arith.negf %151 : vector<8x128xf32>
    %153 = math.exp %152 : vector<8x128xf32>
    %cst_45 = arith.constant 1.000000e+00 : f32
    %154 = vector.broadcast %cst_45 : f32 to vector<8x128xf32>
    %155 = arith.addf %154, %153 : vector<8x128xf32>
    %156 = arith.divf %154, %155 : vector<8x128xf32>
    %157 = arith.mulf %148, %97 : vector<8x128xf32>
    %158 = arith.mulf %142, %150 : vector<8x128xf32>
    %159 = arith.addf %157, %158 : vector<8x128xf32>
    %160 = math.tanh %159 : vector<8x128xf32>
    %161 = arith.mulf %156, %160 : vector<8x128xf32>
    %c24 = arith.constant 24 : index
    %c0_46 = arith.constant 0 : index
    %162 = vector.load %arg9[%c24, %c0_46] : memref<64x512xf32, #tpu.memory_space<vmem>>, vector<8x512xf32>
    %163 = arith.truncf %129 : vector<8x128xf32> to vector<8x128xbf16>
    %c0_47 = arith.constant 0 : index
    %c0_48 = arith.constant 0 : index
    %164 = vector.load %arg2[%c0_47, %c0_48] : memref<128x512xbf16, #tpu.memory_space<vmem>>, vector<128x512xbf16>
    %cst_49 = arith.constant dense<0.000000e+00> : vector<8x512xf32>
    %165 = tpu.matmul %163, %164, %cst_49 {dimension_numbers = #tpu.dot_dimension_numbers<[1], [0], [0], [1], [0, 0, 1, 1], [], []>} : vector<8x128xbf16>, vector<128x512xbf16>, vector<8x512xf32> -> vector<8x512xf32>
    %166 = arith.addf %162, %165 : vector<8x512xf32>
    %167 = vector.extract_strided_slice %166 {offsets = [0, 0], sizes = [8, 128], strides = [1, 1]} : vector<8x512xf32> to vector<8x128xf32>
    %168 = arith.negf %167 : vector<8x128xf32>
    %169 = math.exp %168 : vector<8x128xf32>
    %cst_50 = arith.constant 1.000000e+00 : f32
    %170 = vector.broadcast %cst_50 : f32 to vector<8x128xf32>
    %171 = arith.addf %170, %169 : vector<8x128xf32>
    %172 = arith.divf %170, %171 : vector<8x128xf32>
    %173 = vector.extract_strided_slice %166 {offsets = [0, 128], sizes = [8, 128], strides = [1, 1]} : vector<8x512xf32> to vector<8x128xf32>
    %174 = arith.negf %173 : vector<8x128xf32>
    %175 = math.exp %174 : vector<8x128xf32>
    %cst_51 = arith.constant 1.000000e+00 : f32
    %176 = vector.broadcast %cst_51 : f32 to vector<8x128xf32>
    %177 = arith.addf %176, %175 : vector<8x128xf32>
    %178 = arith.divf %176, %177 : vector<8x128xf32>
    %179 = vector.extract_strided_slice %166 {offsets = [0, 256], sizes = [8, 128], strides = [1, 1]} : vector<8x512xf32> to vector<8x128xf32>
    %180 = math.tanh %179 : vector<8x128xf32>
    %181 = vector.extract_strided_slice %166 {offsets = [0, 384], sizes = [8, 128], strides = [1, 1]} : vector<8x512xf32> to vector<8x128xf32>
    %182 = arith.negf %181 : vector<8x128xf32>
    %183 = math.exp %182 : vector<8x128xf32>
    %cst_52 = arith.constant 1.000000e+00 : f32
    %184 = vector.broadcast %cst_52 : f32 to vector<8x128xf32>
    %185 = arith.addf %184, %183 : vector<8x128xf32>
    %186 = arith.divf %184, %185 : vector<8x128xf32>
    %187 = arith.mulf %178, %127 : vector<8x128xf32>
    %188 = arith.mulf %172, %180 : vector<8x128xf32>
    %189 = arith.addf %187, %188 : vector<8x128xf32>
    %190 = math.tanh %189 : vector<8x128xf32>
    %191 = arith.mulf %186, %190 : vector<8x128xf32>
    %192 = tpu.concatenate %129, %161 in 1 : vector<8x128xf32>, vector<8x128xf32> -> vector<8x256xf32>
    %193 = arith.truncf %192 : vector<8x256xf32> to vector<8x256xbf16>
    %c0_53 = arith.constant 0 : index
    %c0_54 = arith.constant 0 : index
    %194 = vector.load %arg4[%c0_53, %c0_54] : memref<256x512xbf16, #tpu.memory_space<vmem>>, vector<256x512xbf16>
    %cst_55 = arith.constant dense<0.000000e+00> : vector<8x512xf32>
    %195 = tpu.matmul %193, %194, %cst_55 {dimension_numbers = #tpu.dot_dimension_numbers<[1], [0], [0], [1], [0, 0, 1, 1], [], []>} : vector<8x256xbf16>, vector<256x512xbf16>, vector<8x512xf32> -> vector<8x512xf32>
    %c0_56 = arith.constant 0 : index
    %c0_57 = arith.constant 0 : index
    %196 = vector.load %arg5[%c0_56, %c0_57] : memref<1x512xf32, #tpu.memory_space<vmem>>, vector<1x512xf32>
    %197 = vector.broadcast %196 : vector<1x512xf32> to vector<8x512xf32>
    %198 = arith.addf %195, %197 : vector<8x512xf32>
    %199 = vector.extract_strided_slice %198 {offsets = [0, 0], sizes = [8, 128], strides = [1, 1]} : vector<8x512xf32> to vector<8x128xf32>
    %200 = arith.negf %199 : vector<8x128xf32>
    %201 = math.exp %200 : vector<8x128xf32>
    %cst_58 = arith.constant 1.000000e+00 : f32
    %202 = vector.broadcast %cst_58 : f32 to vector<8x128xf32>
    %203 = arith.addf %202, %201 : vector<8x128xf32>
    %204 = arith.divf %202, %203 : vector<8x128xf32>
    %205 = vector.extract_strided_slice %198 {offsets = [0, 128], sizes = [8, 128], strides = [1, 1]} : vector<8x512xf32> to vector<8x128xf32>
    %206 = arith.negf %205 : vector<8x128xf32>
    %207 = math.exp %206 : vector<8x128xf32>
    %cst_59 = arith.constant 1.000000e+00 : f32
    %208 = vector.broadcast %cst_59 : f32 to vector<8x128xf32>
    %209 = arith.addf %208, %207 : vector<8x128xf32>
    %210 = arith.divf %208, %209 : vector<8x128xf32>
    %211 = vector.extract_strided_slice %198 {offsets = [0, 256], sizes = [8, 128], strides = [1, 1]} : vector<8x512xf32> to vector<8x128xf32>
    %212 = math.tanh %211 : vector<8x128xf32>
    %213 = vector.extract_strided_slice %198 {offsets = [0, 384], sizes = [8, 128], strides = [1, 1]} : vector<8x512xf32> to vector<8x128xf32>
    %214 = arith.negf %213 : vector<8x128xf32>
    %215 = math.exp %214 : vector<8x128xf32>
    %cst_60 = arith.constant 1.000000e+00 : f32
    %216 = vector.broadcast %cst_60 : f32 to vector<8x128xf32>
    %217 = arith.addf %216, %215 : vector<8x128xf32>
    %218 = arith.divf %216, %217 : vector<8x128xf32>
    %219 = arith.mulf %210, %159 : vector<8x128xf32>
    %220 = arith.mulf %204, %212 : vector<8x128xf32>
    %221 = arith.addf %219, %220 : vector<8x128xf32>
    %222 = math.tanh %221 : vector<8x128xf32>
    %223 = arith.mulf %218, %222 : vector<8x128xf32>
    %c32 = arith.constant 32 : index
    %c0_61 = arith.constant 0 : index
    %224 = vector.load %arg9[%c32, %c0_61] : memref<64x512xf32, #tpu.memory_space<vmem>>, vector<8x512xf32>
    %225 = arith.truncf %191 : vector<8x128xf32> to vector<8x128xbf16>
    %c0_62 = arith.constant 0 : index
    %c0_63 = arith.constant 0 : index
    %226 = vector.load %arg2[%c0_62, %c0_63] : memref<128x512xbf16, #tpu.memory_space<vmem>>, vector<128x512xbf16>
    %cst_64 = arith.constant dense<0.000000e+00> : vector<8x512xf32>
    %227 = tpu.matmul %225, %226, %cst_64 {dimension_numbers = #tpu.dot_dimension_numbers<[1], [0], [0], [1], [0, 0, 1, 1], [], []>} : vector<8x128xbf16>, vector<128x512xbf16>, vector<8x512xf32> -> vector<8x512xf32>
    %228 = arith.addf %224, %227 : vector<8x512xf32>
    %229 = vector.extract_strided_slice %228 {offsets = [0, 0], sizes = [8, 128], strides = [1, 1]} : vector<8x512xf32> to vector<8x128xf32>
    %230 = arith.negf %229 : vector<8x128xf32>
    %231 = math.exp %230 : vector<8x128xf32>
    %cst_65 = arith.constant 1.000000e+00 : f32
    %232 = vector.broadcast %cst_65 : f32 to vector<8x128xf32>
    %233 = arith.addf %232, %231 : vector<8x128xf32>
    %234 = arith.divf %232, %233 : vector<8x128xf32>
    %235 = vector.extract_strided_slice %228 {offsets = [0, 128], sizes = [8, 128], strides = [1, 1]} : vector<8x512xf32> to vector<8x128xf32>
    %236 = arith.negf %235 : vector<8x128xf32>
    %237 = math.exp %236 : vector<8x128xf32>
    %cst_66 = arith.constant 1.000000e+00 : f32
    %238 = vector.broadcast %cst_66 : f32 to vector<8x128xf32>
    %239 = arith.addf %238, %237 : vector<8x128xf32>
    %240 = arith.divf %238, %239 : vector<8x128xf32>
    %241 = vector.extract_strided_slice %228 {offsets = [0, 256], sizes = [8, 128], strides = [1, 1]} : vector<8x512xf32> to vector<8x128xf32>
    %242 = math.tanh %241 : vector<8x128xf32>
    %243 = vector.extract_strided_slice %228 {offsets = [0, 384], sizes = [8, 128], strides = [1, 1]} : vector<8x512xf32> to vector<8x128xf32>
    %244 = arith.negf %243 : vector<8x128xf32>
    %245 = math.exp %244 : vector<8x128xf32>
    %cst_67 = arith.constant 1.000000e+00 : f32
    %246 = vector.broadcast %cst_67 : f32 to vector<8x128xf32>
    %247 = arith.addf %246, %245 : vector<8x128xf32>
    %248 = arith.divf %246, %247 : vector<8x128xf32>
    %249 = arith.mulf %240, %189 : vector<8x128xf32>
    %250 = arith.mulf %234, %242 : vector<8x128xf32>
    %251 = arith.addf %249, %250 : vector<8x128xf32>
    %252 = math.tanh %251 : vector<8x128xf32>
    %253 = arith.mulf %248, %252 : vector<8x128xf32>
    %254 = tpu.concatenate %191, %223 in 1 : vector<8x128xf32>, vector<8x128xf32> -> vector<8x256xf32>
    %255 = arith.truncf %254 : vector<8x256xf32> to vector<8x256xbf16>
    %c0_68 = arith.constant 0 : index
    %c0_69 = arith.constant 0 : index
    %256 = vector.load %arg4[%c0_68, %c0_69] : memref<256x512xbf16, #tpu.memory_space<vmem>>, vector<256x512xbf16>
    %cst_70 = arith.constant dense<0.000000e+00> : vector<8x512xf32>
    %257 = tpu.matmul %255, %256, %cst_70 {dimension_numbers = #tpu.dot_dimension_numbers<[1], [0], [0], [1], [0, 0, 1, 1], [], []>} : vector<8x256xbf16>, vector<256x512xbf16>, vector<8x512xf32> -> vector<8x512xf32>
    %c0_71 = arith.constant 0 : index
    %c0_72 = arith.constant 0 : index
    %258 = vector.load %arg5[%c0_71, %c0_72] : memref<1x512xf32, #tpu.memory_space<vmem>>, vector<1x512xf32>
    %259 = vector.broadcast %258 : vector<1x512xf32> to vector<8x512xf32>
    %260 = arith.addf %257, %259 : vector<8x512xf32>
    %261 = vector.extract_strided_slice %260 {offsets = [0, 0], sizes = [8, 128], strides = [1, 1]} : vector<8x512xf32> to vector<8x128xf32>
    %262 = arith.negf %261 : vector<8x128xf32>
    %263 = math.exp %262 : vector<8x128xf32>
    %cst_73 = arith.constant 1.000000e+00 : f32
    %264 = vector.broadcast %cst_73 : f32 to vector<8x128xf32>
    %265 = arith.addf %264, %263 : vector<8x128xf32>
    %266 = arith.divf %264, %265 : vector<8x128xf32>
    %267 = vector.extract_strided_slice %260 {offsets = [0, 128], sizes = [8, 128], strides = [1, 1]} : vector<8x512xf32> to vector<8x128xf32>
    %268 = arith.negf %267 : vector<8x128xf32>
    %269 = math.exp %268 : vector<8x128xf32>
    %cst_74 = arith.constant 1.000000e+00 : f32
    %270 = vector.broadcast %cst_74 : f32 to vector<8x128xf32>
    %271 = arith.addf %270, %269 : vector<8x128xf32>
    %272 = arith.divf %270, %271 : vector<8x128xf32>
    %273 = vector.extract_strided_slice %260 {offsets = [0, 256], sizes = [8, 128], strides = [1, 1]} : vector<8x512xf32> to vector<8x128xf32>
    %274 = math.tanh %273 : vector<8x128xf32>
    %275 = vector.extract_strided_slice %260 {offsets = [0, 384], sizes = [8, 128], strides = [1, 1]} : vector<8x512xf32> to vector<8x128xf32>
    %276 = arith.negf %275 : vector<8x128xf32>
    %277 = math.exp %276 : vector<8x128xf32>
    %cst_75 = arith.constant 1.000000e+00 : f32
    %278 = vector.broadcast %cst_75 : f32 to vector<8x128xf32>
    %279 = arith.addf %278, %277 : vector<8x128xf32>
    %280 = arith.divf %278, %279 : vector<8x128xf32>
    %281 = arith.mulf %272, %221 : vector<8x128xf32>
    %282 = arith.mulf %266, %274 : vector<8x128xf32>
    %283 = arith.addf %281, %282 : vector<8x128xf32>
    %284 = math.tanh %283 : vector<8x128xf32>
    %285 = arith.mulf %280, %284 : vector<8x128xf32>
    %c40 = arith.constant 40 : index
    %c0_76 = arith.constant 0 : index
    %286 = vector.load %arg9[%c40, %c0_76] : memref<64x512xf32, #tpu.memory_space<vmem>>, vector<8x512xf32>
    %287 = arith.truncf %253 : vector<8x128xf32> to vector<8x128xbf16>
    %c0_77 = arith.constant 0 : index
    %c0_78 = arith.constant 0 : index
    %288 = vector.load %arg2[%c0_77, %c0_78] : memref<128x512xbf16, #tpu.memory_space<vmem>>, vector<128x512xbf16>
    %cst_79 = arith.constant dense<0.000000e+00> : vector<8x512xf32>
    %289 = tpu.matmul %287, %288, %cst_79 {dimension_numbers = #tpu.dot_dimension_numbers<[1], [0], [0], [1], [0, 0, 1, 1], [], []>} : vector<8x128xbf16>, vector<128x512xbf16>, vector<8x512xf32> -> vector<8x512xf32>
    %290 = arith.addf %286, %289 : vector<8x512xf32>
    %291 = vector.extract_strided_slice %290 {offsets = [0, 0], sizes = [8, 128], strides = [1, 1]} : vector<8x512xf32> to vector<8x128xf32>
    %292 = arith.negf %291 : vector<8x128xf32>
    %293 = math.exp %292 : vector<8x128xf32>
    %cst_80 = arith.constant 1.000000e+00 : f32
    %294 = vector.broadcast %cst_80 : f32 to vector<8x128xf32>
    %295 = arith.addf %294, %293 : vector<8x128xf32>
    %296 = arith.divf %294, %295 : vector<8x128xf32>
    %297 = vector.extract_strided_slice %290 {offsets = [0, 128], sizes = [8, 128], strides = [1, 1]} : vector<8x512xf32> to vector<8x128xf32>
    %298 = arith.negf %297 : vector<8x128xf32>
    %299 = math.exp %298 : vector<8x128xf32>
    %cst_81 = arith.constant 1.000000e+00 : f32
    %300 = vector.broadcast %cst_81 : f32 to vector<8x128xf32>
    %301 = arith.addf %300, %299 : vector<8x128xf32>
    %302 = arith.divf %300, %301 : vector<8x128xf32>
    %303 = vector.extract_strided_slice %290 {offsets = [0, 256], sizes = [8, 128], strides = [1, 1]} : vector<8x512xf32> to vector<8x128xf32>
    %304 = math.tanh %303 : vector<8x128xf32>
    %305 = vector.extract_strided_slice %290 {offsets = [0, 384], sizes = [8, 128], strides = [1, 1]} : vector<8x512xf32> to vector<8x128xf32>
    %306 = arith.negf %305 : vector<8x128xf32>
    %307 = math.exp %306 : vector<8x128xf32>
    %cst_82 = arith.constant 1.000000e+00 : f32
    %308 = vector.broadcast %cst_82 : f32 to vector<8x128xf32>
    %309 = arith.addf %308, %307 : vector<8x128xf32>
    %310 = arith.divf %308, %309 : vector<8x128xf32>
    %311 = arith.mulf %302, %251 : vector<8x128xf32>
    %312 = arith.mulf %296, %304 : vector<8x128xf32>
    %313 = arith.addf %311, %312 : vector<8x128xf32>
    %314 = math.tanh %313 : vector<8x128xf32>
    %315 = arith.mulf %310, %314 : vector<8x128xf32>
    %316 = tpu.concatenate %253, %285 in 1 : vector<8x128xf32>, vector<8x128xf32> -> vector<8x256xf32>
    %317 = arith.truncf %316 : vector<8x256xf32> to vector<8x256xbf16>
    %c0_83 = arith.constant 0 : index
    %c0_84 = arith.constant 0 : index
    %318 = vector.load %arg4[%c0_83, %c0_84] : memref<256x512xbf16, #tpu.memory_space<vmem>>, vector<256x512xbf16>
    %cst_85 = arith.constant dense<0.000000e+00> : vector<8x512xf32>
    %319 = tpu.matmul %317, %318, %cst_85 {dimension_numbers = #tpu.dot_dimension_numbers<[1], [0], [0], [1], [0, 0, 1, 1], [], []>} : vector<8x256xbf16>, vector<256x512xbf16>, vector<8x512xf32> -> vector<8x512xf32>
    %c0_86 = arith.constant 0 : index
    %c0_87 = arith.constant 0 : index
    %320 = vector.load %arg5[%c0_86, %c0_87] : memref<1x512xf32, #tpu.memory_space<vmem>>, vector<1x512xf32>
    %321 = vector.broadcast %320 : vector<1x512xf32> to vector<8x512xf32>
    %322 = arith.addf %319, %321 : vector<8x512xf32>
    %323 = vector.extract_strided_slice %322 {offsets = [0, 0], sizes = [8, 128], strides = [1, 1]} : vector<8x512xf32> to vector<8x128xf32>
    %324 = arith.negf %323 : vector<8x128xf32>
    %325 = math.exp %324 : vector<8x128xf32>
    %cst_88 = arith.constant 1.000000e+00 : f32
    %326 = vector.broadcast %cst_88 : f32 to vector<8x128xf32>
    %327 = arith.addf %326, %325 : vector<8x128xf32>
    %328 = arith.divf %326, %327 : vector<8x128xf32>
    %329 = vector.extract_strided_slice %322 {offsets = [0, 128], sizes = [8, 128], strides = [1, 1]} : vector<8x512xf32> to vector<8x128xf32>
    %330 = arith.negf %329 : vector<8x128xf32>
    %331 = math.exp %330 : vector<8x128xf32>
    %cst_89 = arith.constant 1.000000e+00 : f32
    %332 = vector.broadcast %cst_89 : f32 to vector<8x128xf32>
    %333 = arith.addf %332, %331 : vector<8x128xf32>
    %334 = arith.divf %332, %333 : vector<8x128xf32>
    %335 = vector.extract_strided_slice %322 {offsets = [0, 256], sizes = [8, 128], strides = [1, 1]} : vector<8x512xf32> to vector<8x128xf32>
    %336 = math.tanh %335 : vector<8x128xf32>
    %337 = vector.extract_strided_slice %322 {offsets = [0, 384], sizes = [8, 128], strides = [1, 1]} : vector<8x512xf32> to vector<8x128xf32>
    %338 = arith.negf %337 : vector<8x128xf32>
    %339 = math.exp %338 : vector<8x128xf32>
    %cst_90 = arith.constant 1.000000e+00 : f32
    %340 = vector.broadcast %cst_90 : f32 to vector<8x128xf32>
    %341 = arith.addf %340, %339 : vector<8x128xf32>
    %342 = arith.divf %340, %341 : vector<8x128xf32>
    %343 = arith.mulf %334, %283 : vector<8x128xf32>
    %344 = arith.mulf %328, %336 : vector<8x128xf32>
    %345 = arith.addf %343, %344 : vector<8x128xf32>
    %346 = math.tanh %345 : vector<8x128xf32>
    %347 = arith.mulf %342, %346 : vector<8x128xf32>
    %c48 = arith.constant 48 : index
    %c0_91 = arith.constant 0 : index
    %348 = vector.load %arg9[%c48, %c0_91] : memref<64x512xf32, #tpu.memory_space<vmem>>, vector<8x512xf32>
    %349 = arith.truncf %315 : vector<8x128xf32> to vector<8x128xbf16>
    %c0_92 = arith.constant 0 : index
    %c0_93 = arith.constant 0 : index
    %350 = vector.load %arg2[%c0_92, %c0_93] : memref<128x512xbf16, #tpu.memory_space<vmem>>, vector<128x512xbf16>
    %cst_94 = arith.constant dense<0.000000e+00> : vector<8x512xf32>
    %351 = tpu.matmul %349, %350, %cst_94 {dimension_numbers = #tpu.dot_dimension_numbers<[1], [0], [0], [1], [0, 0, 1, 1], [], []>} : vector<8x128xbf16>, vector<128x512xbf16>, vector<8x512xf32> -> vector<8x512xf32>
    %352 = arith.addf %348, %351 : vector<8x512xf32>
    %353 = vector.extract_strided_slice %352 {offsets = [0, 0], sizes = [8, 128], strides = [1, 1]} : vector<8x512xf32> to vector<8x128xf32>
    %354 = arith.negf %353 : vector<8x128xf32>
    %355 = math.exp %354 : vector<8x128xf32>
    %cst_95 = arith.constant 1.000000e+00 : f32
    %356 = vector.broadcast %cst_95 : f32 to vector<8x128xf32>
    %357 = arith.addf %356, %355 : vector<8x128xf32>
    %358 = arith.divf %356, %357 : vector<8x128xf32>
    %359 = vector.extract_strided_slice %352 {offsets = [0, 128], sizes = [8, 128], strides = [1, 1]} : vector<8x512xf32> to vector<8x128xf32>
    %360 = arith.negf %359 : vector<8x128xf32>
    %361 = math.exp %360 : vector<8x128xf32>
    %cst_96 = arith.constant 1.000000e+00 : f32
    %362 = vector.broadcast %cst_96 : f32 to vector<8x128xf32>
    %363 = arith.addf %362, %361 : vector<8x128xf32>
    %364 = arith.divf %362, %363 : vector<8x128xf32>
    %365 = vector.extract_strided_slice %352 {offsets = [0, 256], sizes = [8, 128], strides = [1, 1]} : vector<8x512xf32> to vector<8x128xf32>
    %366 = math.tanh %365 : vector<8x128xf32>
    %367 = vector.extract_strided_slice %352 {offsets = [0, 384], sizes = [8, 128], strides = [1, 1]} : vector<8x512xf32> to vector<8x128xf32>
    %368 = arith.negf %367 : vector<8x128xf32>
    %369 = math.exp %368 : vector<8x128xf32>
    %cst_97 = arith.constant 1.000000e+00 : f32
    %370 = vector.broadcast %cst_97 : f32 to vector<8x128xf32>
    %371 = arith.addf %370, %369 : vector<8x128xf32>
    %372 = arith.divf %370, %371 : vector<8x128xf32>
    %373 = arith.mulf %364, %313 : vector<8x128xf32>
    %374 = arith.mulf %358, %366 : vector<8x128xf32>
    %375 = arith.addf %373, %374 : vector<8x128xf32>
    %376 = math.tanh %375 : vector<8x128xf32>
    %377 = arith.mulf %372, %376 : vector<8x128xf32>
    %378 = tpu.concatenate %315, %347 in 1 : vector<8x128xf32>, vector<8x128xf32> -> vector<8x256xf32>
    %379 = arith.truncf %378 : vector<8x256xf32> to vector<8x256xbf16>
    %c0_98 = arith.constant 0 : index
    %c0_99 = arith.constant 0 : index
    %380 = vector.load %arg4[%c0_98, %c0_99] : memref<256x512xbf16, #tpu.memory_space<vmem>>, vector<256x512xbf16>
    %cst_100 = arith.constant dense<0.000000e+00> : vector<8x512xf32>
    %381 = tpu.matmul %379, %380, %cst_100 {dimension_numbers = #tpu.dot_dimension_numbers<[1], [0], [0], [1], [0, 0, 1, 1], [], []>} : vector<8x256xbf16>, vector<256x512xbf16>, vector<8x512xf32> -> vector<8x512xf32>
    %c0_101 = arith.constant 0 : index
    %c0_102 = arith.constant 0 : index
    %382 = vector.load %arg5[%c0_101, %c0_102] : memref<1x512xf32, #tpu.memory_space<vmem>>, vector<1x512xf32>
    %383 = vector.broadcast %382 : vector<1x512xf32> to vector<8x512xf32>
    %384 = arith.addf %381, %383 : vector<8x512xf32>
    %385 = vector.extract_strided_slice %384 {offsets = [0, 0], sizes = [8, 128], strides = [1, 1]} : vector<8x512xf32> to vector<8x128xf32>
    %386 = arith.negf %385 : vector<8x128xf32>
    %387 = math.exp %386 : vector<8x128xf32>
    %cst_103 = arith.constant 1.000000e+00 : f32
    %388 = vector.broadcast %cst_103 : f32 to vector<8x128xf32>
    %389 = arith.addf %388, %387 : vector<8x128xf32>
    %390 = arith.divf %388, %389 : vector<8x128xf32>
    %391 = vector.extract_strided_slice %384 {offsets = [0, 128], sizes = [8, 128], strides = [1, 1]} : vector<8x512xf32> to vector<8x128xf32>
    %392 = arith.negf %391 : vector<8x128xf32>
    %393 = math.exp %392 : vector<8x128xf32>
    %cst_104 = arith.constant 1.000000e+00 : f32
    %394 = vector.broadcast %cst_104 : f32 to vector<8x128xf32>
    %395 = arith.addf %394, %393 : vector<8x128xf32>
    %396 = arith.divf %394, %395 : vector<8x128xf32>
    %397 = vector.extract_strided_slice %384 {offsets = [0, 256], sizes = [8, 128], strides = [1, 1]} : vector<8x512xf32> to vector<8x128xf32>
    %398 = math.tanh %397 : vector<8x128xf32>
    %399 = vector.extract_strided_slice %384 {offsets = [0, 384], sizes = [8, 128], strides = [1, 1]} : vector<8x512xf32> to vector<8x128xf32>
    %400 = arith.negf %399 : vector<8x128xf32>
    %401 = math.exp %400 : vector<8x128xf32>
    %cst_105 = arith.constant 1.000000e+00 : f32
    %402 = vector.broadcast %cst_105 : f32 to vector<8x128xf32>
    %403 = arith.addf %402, %401 : vector<8x128xf32>
    %404 = arith.divf %402, %403 : vector<8x128xf32>
    %405 = arith.mulf %396, %345 : vector<8x128xf32>
    %406 = arith.mulf %390, %398 : vector<8x128xf32>
    %407 = arith.addf %405, %406 : vector<8x128xf32>
    %408 = math.tanh %407 : vector<8x128xf32>
    %409 = arith.mulf %404, %408 : vector<8x128xf32>
    %c56 = arith.constant 56 : index
    %c0_106 = arith.constant 0 : index
    %410 = vector.load %arg9[%c56, %c0_106] : memref<64x512xf32, #tpu.memory_space<vmem>>, vector<8x512xf32>
    %411 = arith.truncf %377 : vector<8x128xf32> to vector<8x128xbf16>
    %c0_107 = arith.constant 0 : index
    %c0_108 = arith.constant 0 : index
    %412 = vector.load %arg2[%c0_107, %c0_108] : memref<128x512xbf16, #tpu.memory_space<vmem>>, vector<128x512xbf16>
    %cst_109 = arith.constant dense<0.000000e+00> : vector<8x512xf32>
    %413 = tpu.matmul %411, %412, %cst_109 {dimension_numbers = #tpu.dot_dimension_numbers<[1], [0], [0], [1], [0, 0, 1, 1], [], []>} : vector<8x128xbf16>, vector<128x512xbf16>, vector<8x512xf32> -> vector<8x512xf32>
    %414 = arith.addf %410, %413 : vector<8x512xf32>
    %415 = vector.extract_strided_slice %414 {offsets = [0, 0], sizes = [8, 128], strides = [1, 1]} : vector<8x512xf32> to vector<8x128xf32>
    %416 = arith.negf %415 : vector<8x128xf32>
    %417 = math.exp %416 : vector<8x128xf32>
    %cst_110 = arith.constant 1.000000e+00 : f32
    %418 = vector.broadcast %cst_110 : f32 to vector<8x128xf32>
    %419 = arith.addf %418, %417 : vector<8x128xf32>
    %420 = arith.divf %418, %419 : vector<8x128xf32>
    %421 = vector.extract_strided_slice %414 {offsets = [0, 128], sizes = [8, 128], strides = [1, 1]} : vector<8x512xf32> to vector<8x128xf32>
    %422 = arith.negf %421 : vector<8x128xf32>
    %423 = math.exp %422 : vector<8x128xf32>
    %cst_111 = arith.constant 1.000000e+00 : f32
    %424 = vector.broadcast %cst_111 : f32 to vector<8x128xf32>
    %425 = arith.addf %424, %423 : vector<8x128xf32>
    %426 = arith.divf %424, %425 : vector<8x128xf32>
    %427 = vector.extract_strided_slice %414 {offsets = [0, 256], sizes = [8, 128], strides = [1, 1]} : vector<8x512xf32> to vector<8x128xf32>
    %428 = math.tanh %427 : vector<8x128xf32>
    %429 = vector.extract_strided_slice %414 {offsets = [0, 384], sizes = [8, 128], strides = [1, 1]} : vector<8x512xf32> to vector<8x128xf32>
    %430 = arith.negf %429 : vector<8x128xf32>
    %431 = math.exp %430 : vector<8x128xf32>
    %cst_112 = arith.constant 1.000000e+00 : f32
    %432 = vector.broadcast %cst_112 : f32 to vector<8x128xf32>
    %433 = arith.addf %432, %431 : vector<8x128xf32>
    %434 = arith.divf %432, %433 : vector<8x128xf32>
    %435 = arith.mulf %426, %375 : vector<8x128xf32>
    %436 = arith.mulf %420, %428 : vector<8x128xf32>
    %437 = arith.addf %435, %436 : vector<8x128xf32>
    %438 = math.tanh %437 : vector<8x128xf32>
    %439 = arith.mulf %434, %438 : vector<8x128xf32>
    %440 = tpu.concatenate %377, %409 in 1 : vector<8x128xf32>, vector<8x128xf32> -> vector<8x256xf32>
    %441 = arith.truncf %440 : vector<8x256xf32> to vector<8x256xbf16>
    %c0_113 = arith.constant 0 : index
    %c0_114 = arith.constant 0 : index
    %442 = vector.load %arg4[%c0_113, %c0_114] : memref<256x512xbf16, #tpu.memory_space<vmem>>, vector<256x512xbf16>
    %cst_115 = arith.constant dense<0.000000e+00> : vector<8x512xf32>
    %443 = tpu.matmul %441, %442, %cst_115 {dimension_numbers = #tpu.dot_dimension_numbers<[1], [0], [0], [1], [0, 0, 1, 1], [], []>} : vector<8x256xbf16>, vector<256x512xbf16>, vector<8x512xf32> -> vector<8x512xf32>
    %c0_116 = arith.constant 0 : index
    %c0_117 = arith.constant 0 : index
    %444 = vector.load %arg5[%c0_116, %c0_117] : memref<1x512xf32, #tpu.memory_space<vmem>>, vector<1x512xf32>
    %445 = vector.broadcast %444 : vector<1x512xf32> to vector<8x512xf32>
    %446 = arith.addf %443, %445 : vector<8x512xf32>
    %447 = vector.extract_strided_slice %446 {offsets = [0, 0], sizes = [8, 128], strides = [1, 1]} : vector<8x512xf32> to vector<8x128xf32>
    %448 = arith.negf %447 : vector<8x128xf32>
    %449 = math.exp %448 : vector<8x128xf32>
    %cst_118 = arith.constant 1.000000e+00 : f32
    %450 = vector.broadcast %cst_118 : f32 to vector<8x128xf32>
    %451 = arith.addf %450, %449 : vector<8x128xf32>
    %452 = arith.divf %450, %451 : vector<8x128xf32>
    %453 = vector.extract_strided_slice %446 {offsets = [0, 128], sizes = [8, 128], strides = [1, 1]} : vector<8x512xf32> to vector<8x128xf32>
    %454 = arith.negf %453 : vector<8x128xf32>
    %455 = math.exp %454 : vector<8x128xf32>
    %cst_119 = arith.constant 1.000000e+00 : f32
    %456 = vector.broadcast %cst_119 : f32 to vector<8x128xf32>
    %457 = arith.addf %456, %455 : vector<8x128xf32>
    %458 = arith.divf %456, %457 : vector<8x128xf32>
    %459 = vector.extract_strided_slice %446 {offsets = [0, 256], sizes = [8, 128], strides = [1, 1]} : vector<8x512xf32> to vector<8x128xf32>
    %460 = math.tanh %459 : vector<8x128xf32>
    %461 = vector.extract_strided_slice %446 {offsets = [0, 384], sizes = [8, 128], strides = [1, 1]} : vector<8x512xf32> to vector<8x128xf32>
    %462 = arith.negf %461 : vector<8x128xf32>
    %463 = math.exp %462 : vector<8x128xf32>
    %cst_120 = arith.constant 1.000000e+00 : f32
    %464 = vector.broadcast %cst_120 : f32 to vector<8x128xf32>
    %465 = arith.addf %464, %463 : vector<8x128xf32>
    %466 = arith.divf %464, %465 : vector<8x128xf32>
    %467 = arith.mulf %458, %407 : vector<8x128xf32>
    %468 = arith.mulf %452, %460 : vector<8x128xf32>
    %469 = arith.addf %467, %468 : vector<8x128xf32>
    %470 = math.tanh %469 : vector<8x128xf32>
    %471 = arith.mulf %466, %470 : vector<8x128xf32>
    %472 = tpu.concatenate %439, %471 in 1 : vector<8x128xf32>, vector<8x128xf32> -> vector<8x256xf32>
    %473 = arith.truncf %472 : vector<8x256xf32> to vector<8x256xbf16>
    %c0_121 = arith.constant 0 : index
    %c0_122 = arith.constant 0 : index
    %474 = vector.load %arg4[%c0_121, %c0_122] : memref<256x512xbf16, #tpu.memory_space<vmem>>, vector<256x512xbf16>
    %cst_123 = arith.constant dense<0.000000e+00> : vector<8x512xf32>
    %475 = tpu.matmul %473, %474, %cst_123 {dimension_numbers = #tpu.dot_dimension_numbers<[1], [0], [0], [1], [0, 0, 1, 1], [], []>} : vector<8x256xbf16>, vector<256x512xbf16>, vector<8x512xf32> -> vector<8x512xf32>
    %c0_124 = arith.constant 0 : index
    %c0_125 = arith.constant 0 : index
    %476 = vector.load %arg5[%c0_124, %c0_125] : memref<1x512xf32, #tpu.memory_space<vmem>>, vector<1x512xf32>
    %477 = vector.broadcast %476 : vector<1x512xf32> to vector<8x512xf32>
    %478 = arith.addf %475, %477 : vector<8x512xf32>
    %479 = vector.extract_strided_slice %478 {offsets = [0, 0], sizes = [8, 128], strides = [1, 1]} : vector<8x512xf32> to vector<8x128xf32>
    %480 = arith.negf %479 : vector<8x128xf32>
    %481 = math.exp %480 : vector<8x128xf32>
    %cst_126 = arith.constant 1.000000e+00 : f32
    %482 = vector.broadcast %cst_126 : f32 to vector<8x128xf32>
    %483 = arith.addf %482, %481 : vector<8x128xf32>
    %484 = arith.divf %482, %483 : vector<8x128xf32>
    %485 = vector.extract_strided_slice %478 {offsets = [0, 128], sizes = [8, 128], strides = [1, 1]} : vector<8x512xf32> to vector<8x128xf32>
    %486 = arith.negf %485 : vector<8x128xf32>
    %487 = math.exp %486 : vector<8x128xf32>
    %cst_127 = arith.constant 1.000000e+00 : f32
    %488 = vector.broadcast %cst_127 : f32 to vector<8x128xf32>
    %489 = arith.addf %488, %487 : vector<8x128xf32>
    %490 = arith.divf %488, %489 : vector<8x128xf32>
    %491 = vector.extract_strided_slice %478 {offsets = [0, 256], sizes = [8, 128], strides = [1, 1]} : vector<8x512xf32> to vector<8x128xf32>
    %492 = math.tanh %491 : vector<8x128xf32>
    %493 = vector.extract_strided_slice %478 {offsets = [0, 384], sizes = [8, 128], strides = [1, 1]} : vector<8x512xf32> to vector<8x128xf32>
    %494 = arith.negf %493 : vector<8x128xf32>
    %495 = math.exp %494 : vector<8x128xf32>
    %cst_128 = arith.constant 1.000000e+00 : f32
    %496 = vector.broadcast %cst_128 : f32 to vector<8x128xf32>
    %497 = arith.addf %496, %495 : vector<8x128xf32>
    %498 = arith.divf %496, %497 : vector<8x128xf32>
    %499 = arith.mulf %490, %469 : vector<8x128xf32>
    %500 = arith.mulf %484, %492 : vector<8x128xf32>
    %501 = arith.addf %499, %500 : vector<8x128xf32>
    %502 = math.tanh %501 : vector<8x128xf32>
    %503 = arith.mulf %498, %502 : vector<8x128xf32>
    %c0_129 = arith.constant 0 : index
    %c0_130 = arith.constant 0 : index
    %504 = vector.load %arg6[%c0_129, %c0_130] : memref<1x128xf32, #tpu.memory_space<vmem>>, vector<1x128xf32>
    %505 = vector.broadcast %504 : vector<1x128xf32> to vector<8x128xf32>
    %506 = arith.mulf %503, %505 : vector<8x128xf32>
    %cst_131 = arith.constant dense<0.000000e+00> : vector<8xf32>
    %507 = vector.multi_reduction <add>, %506, %cst_131 [1] : vector<8x128xf32> to vector<8xf32>
    %508 = vector.shape_cast %507 : vector<8xf32> to vector<8x1xf32>
    %c0_132 = arith.constant 0 : index
    %c0_133 = arith.constant 0 : index
    %509 = vector.load %arg7[%c0_132, %c0_133] : memref<1x1xf32, #tpu.memory_space<vmem>>, vector<1x1xf32>
    %510 = vector.broadcast %509 : vector<1x1xf32> to vector<8x1xf32>
    %511 = arith.addf %508, %510 : vector<8x1xf32>
    %c0_134 = arith.constant 0 : index
    %c0_135 = arith.constant 0 : index
    %512 = vector.load %arg8[%c0_134, %c0_135] : memref<8x1xf32, #tpu.memory_space<vmem>>, vector<8x1xf32>
    tpu.vector_store %arg8[%c0_134, %c0_135], %511 {strides = array<i32>} : memref<8x1xf32, #tpu.memory_space<vmem>>, vector<8x1xf32>,
    return
  }
}

</mosaic_0001>

<bundles_post_ra>
// kernel: tpu_custom_call.1
= control target key start
LH: loop header
LB: loop body
LE: loop exit
PB: predicated region body
PF: predicated region fallthrough
CT: control target
= control target key end

     0   :  { %s5296_s0 = inlined_call_operand.vmem [shape: bf16[64,8], index: 0, kind: input, shape index: {}]   ;;  %s5297_s1 = inlined_call_operand.vmem [shape: bf16[8,512], index: 1, kind: input, shape index: {}]   ;;  %s5298_s2 = inlined_call_operand.hbm [shape: bf16[128,512], index: 2, kind: input, shape index: {}]   ;;  %s5299_s3 = inlined_call_operand.vmem [shape: f32[1,512], index: 3, kind: input, shape index: {}]   ;;  %s5300_s4 = inlined_call_operand.hbm [shape: bf16[256,512], index: 4, kind: input, shape index: {}]   ;;  %s5301_s5 = inlined_call_operand.vmem [shape: f32[1,512], index: 5, kind: input, shape index: {}]   ;;  %s5302_s6 = inlined_call_operand.vmem [shape: f32[1,128], index: 6, kind: input, shape index: {}]   ;;  %s5303_s7 = inlined_call_operand.<no memory space> [shape: f32[1,1], index: 7, kind: input, shape index: {}]   ;;  %s5304_s8 = inlined_call_operand.vmem [shape: f32[8,1], index: 8, kind: output, shape index: {}]  }
   0x1   :  { %v13_v0 = vstv %s5303_s7 }
   0x2   :  { %14 = vst [vmem:[#allocation3] sm:$0x1] %v13_v0 }
   0x3   :  { %15 = vsyncpa [#allocation5], 0 }
   0x4   :  { %16 = vsyncpa [#allocation7], 0  ;;  %s3544_s29 = smov [#allocation4]   ;;  %s3496_s11 = scalar_lea.hbm %s5298_s2, 4096 }
   0x5   :  { %s26_s30 = sshll.u32 %s3544_s29, 4  ;;  %p3497_p0 = scmp.ne.s32.totalorder %s5298_s2, %s3496_s11  ;;  %s27_s30 = int_to_ptr.vmem [resolvable:$true] %s26_s30 }
   0x6   :  { %p3500_p1 = scmp.lt.u32.totalorder %s3496_s11, %s5298_s2 }
   0x8   :  { %p3502_p2 = pnand %p3500_p1, %p3497_p0 }
   0xa   :  { %3505 = shalt.err (!%p3502_p2)
}
   0xb   :  { %s3506_s7 = scalar_lea.vmem %s27_s30, 4096  ;;  %p3511_p4 = scmp.lt.s32.totalorder %s27_s30, %s27_s30 }
   0xc   :  { %p3507_p3 = scmp.ne.s32.totalorder %s27_s30, %s3506_s7  ;;  %p3512_p5 = scmp.lt.s32.totalorder %s3506_s7, %s3506_s7 }
   0xe   :  { %p3513_p6 = por %p3512_p5, %p3511_p4 }
  0x10   :  { %p3514_p7 = pnand %p3513_p6, %p3507_p3 }
  0x12   :  { %3517 = shalt.err (!%p3514_p7)
}
  0x13   :  { %s3545_s16 = smov 256   ;;  %s3546_s17 = smov 16  }
  0x14   :  { %32 = dma.hbm_to_vmem [thread:$0]  %s5298_s2, 4096, %s27_s30, [#allocation5], %s3545_s16, %s3545_s16, %s3546_s17  }
  0x15   :  { %s3547_s20 = smov [#allocation6]   ;;  %s3518_s24 = scalar_lea.hbm %s5300_s4, 8192 }
  0x16   :  { %s40_s21 = sshll.u32 %s3547_s20, 4  ;;  %p3519_p8 = scmp.ne.s32.totalorder %s5300_s4, %s3518_s24  ;;  %s41_s21 = int_to_ptr.vmem [resolvable:$true] %s40_s21 }
  0x17   :  { %p3522_p9 = scmp.lt.u32.totalorder %s3518_s24, %s5300_s4 }
  0x19   :  { %p3524_p10 = pnand %p3522_p9, %p3519_p8 }
  0x1b   :  { %3527 = shalt.err (!%p3524_p10)
}
  0x1c   :  { %s3528_s29 = scalar_lea.vmem %s41_s21, 8192  ;;  %p3533_p12 = scmp.lt.s32.totalorder %s41_s21, %s41_s21 }
  0x1d   :  { %p3529_p11 = scmp.ne.s32.totalorder %s41_s21, %s3528_s29  ;;  %p3534_p13 = scmp.lt.s32.totalorder %s3528_s29, %s3528_s29 }
  0x1f   :  { %p3535_p0 = por %p3534_p13, %p3533_p12 }
  0x21   :  { %p3536_p1 = pnand %p3535_p0, %p3529_p11 }
  0x23   :  { %3539 = shalt.err (!%p3536_p1)
}
  0x24   :  { %46 = dma.hbm_to_vmem [thread:$0]  %s5300_s4, 8192, %s41_s21, [#allocation7], %s3545_s16, %s3545_s16, %s3546_s17  }
  0x25   :  { %3540 = dma.done.wait [#allocation5], 4096  }
  0x26   :  { %3541 = vsyncadd [#allocation5], 4294963200 }
  0x27   :  { %3542 = dma.done.wait [#allocation7], 8192  }
  0x28   :  { %3543 = vsyncadd [#allocation7], 4294959104  ;;  %v5309_v1 = vmov 0   ;;  %v68_v2 = vld [vmem:[%s5297_s1] sm:$0xff]  ;;  %vm135_vm0 = vcmask 1043456   ;;  %v69_v3 = vld [vmem:[%s5297_s1 + $0x8] sm:$0xff]  ;;  %v72_v48 = vlaneseq }
  0x29   :  { %180 = vmatprep.mubr.bf16.mxu0 %v5309_v1  ;;  %253 = vmatprep.mubr.bf16.mxu1 %v5309_v1  ;;  %v2731_v4 = vcombine.high %v68_v2, %v68_v2  ;;  %v2733_v5 = vcombine.high %v69_v3, %v69_v3  ;;  %v2730_v6 = vcombine.low %v68_v2, %v68_v2  ;;  %v2900_v8 = vld [vmem:[%s5296_s0] sm:$0xff]   ;;  %vm122_vm1 = vcmask 64512   ;;  %v3639_v14 = vld [vmem:[#allocation4 + $0x8] ss:$16 sps:$4 sm:$0xff]   ;;  %v2926_v30 = vld [vmem:[%s5296_s0 + $0x10] sm:$0xff]  }
  0x2a   :  { %v2732_v7 = vcombine.low %v69_v3, %v69_v3  ;;  %v3633_v9 = vld [vmem:[#allocation4 + $0x4] ss:$16 sps:$4 sm:$0xff]   ;;  %v3635_v12 = vld [vmem:[#allocation4 + $0xc] ss:$16 sps:$4 sm:$0xff]   ;;  %v3637_v13 = vld [vmem:[#allocation4] ss:$16 sps:$4 sm:$0xff]  }
  0x2b   :  { %2734 = vmatprep.subr.msk.bf16.mxu0 %vm135_vm0, %v2731_v4  ;;  %2739 = vmatprep.subr.msk.bf16.mxu1 %vm135_vm0, %v2733_v5  ;;  %v137_v10 = vsel %vm135_vm0, %v2730_v6, 0  ;;  %v3643_v15 = vld [vmem:[#allocation4 + $0x24] ss:$16 sps:$4 sm:$0xff]   ;;  %v3645_v16 = vld [vmem:[#allocation4 + $0x2c] ss:$16 sps:$4 sm:$0xff]   ;;  %v3796_v49 = vshrl.u32 %v72_v48, 7 }
  0x2c   :  { %v143_v11 = vsel %vm135_vm0, %v2732_v7, 0  ;;  %149 = vmatpush1.bf16.msra.mxu0 %v137_v10  ;;  %v3647_v17 = vld [vmem:[#allocation4 + $0x20] ss:$16 sps:$4 sm:$0xff]   ;;  %v3651_v18 = vld [vmem:[#allocation4 + $0x28] ss:$16 sps:$4 sm:$0xff]   ;;  %vm2718_vm2 = vcmask 7168  }
  0x2d   :  { %222 = vmatpush1.bf16.msra.mxu1 %v143_v11  ;;  %522 = vmatprep.subr.bf16.mxu0 %v3633_v9  ;;  %v3655_v19 = vld [vmem:[#allocation4 + $0x44] ss:$16 sps:$4 sm:$0xff]   ;;  %v3659_v20 = vld [vmem:[#allocation4 + $0x4c] ss:$16 sps:$4 sm:$0xff]   ;;  %v3666_v22 = vld [vmem:[#allocation4 + $0x40] ss:$16 sps:$4 sm:$0xff]  }
  0x2e   :  { %563 = vmatprep.subr.bf16.mxu1 %v3635_v12  ;;  %v2913_v21 = vld [vmem:[%s5296_s0 + $0x8] sm:$0xff]   ;;  %v3682_v26 = vld [vmem:[#allocation4 + $0x60] ss:$16 sps:$4 sm:$0xff]   ;;  %v2939_v37 = vld [vmem:[%s5296_s0 + $0x18] sm:$0xff]   ;;  %v5305_v50 = vsub.s32 2, %v3796_v49  ;;  %v5306_v51 = vsub.s32 3, %v3796_v49 }
  0x2f   :  { %2735 = vmatmul.mubr.msk.bf16.vlgmr.msra.gmra.mrb[0].mxu0 %vm122_vm1, %v2900_v8  ;;  %v3670_v23 = vld [vmem:[#allocation4 + $0x48] ss:$16 sps:$4 sm:$0xff]   ;;  %v3672_v24 = vld [vmem:[#allocation4 + $0x64] ss:$16 sps:$4 sm:$0xff]   ;;  %v3676_v25 = vld [vmem:[#allocation4 + $0x6c] ss:$16 sps:$4 sm:$0xff]  }
  0x30   :  { %2740 = vmatmul.mubr.msk.bf16.vlgmr.msra.gmra.mrb[0].mxu1 %vm122_vm1, %v2900_v8  ;;  %523 = vmatpush1.bf16.msra.mxu0 %v3637_v13  ;;  %v3684_v27 = vld [vmem:[#allocation4 + $0x68] ss:$16 sps:$4 sm:$0xff]   ;;  %v3686_v28 = vld [vmem:[#allocation4 + $0x84] ss:$16 sps:$4 sm:$0xff]   ;;  %v3690_v29 = vld [vmem:[#allocation4 + $0x8c] ss:$16 sps:$4 sm:$0xff]  }
  0x31   :  { %564 = vmatpush1.bf16.msra.mxu1 %v3639_v14  ;;  %524 = vmatprep.subr.bf16.mxu0 %v3643_v15  ;;  %v3697_v31 = vld [vmem:[#allocation4 + $0x80] ss:$16 sps:$4 sm:$0xff]   ;;  %v3699_v32 = vld [vmem:[#allocation4 + $0x88] ss:$16 sps:$4 sm:$0xff]   ;;  %v3703_v33 = vld [vmem:[#allocation4 + $0xa4] ss:$16 sps:$4 sm:$0xff]  }
  0x32   :  { %565 = vmatprep.subr.bf16.mxu1 %v3645_v16  ;;  %190 = vmatprep.mubr.bf16.mxu0 %v5309_v1  ;;  %v3707_v34 = vld [vmem:[#allocation4 + $0xac] ss:$16 sps:$4 sm:$0xff]   ;;  %v3711_v35 = vld [vmem:[#allocation4 + $0xa0] ss:$16 sps:$4 sm:$0xff]   ;;  %v3715_v36 = vld [vmem:[#allocation4 + $0xa8] ss:$16 sps:$4 sm:$0xff]  }
  0x33   :  { %263 = vmatprep.mubr.bf16.mxu1 %v5309_v1  ;;  %v3722_v38 = vld [vmem:[#allocation4 + $0xc4] ss:$16 sps:$4 sm:$0xff]   ;;  %v3724_v39 = vld [vmem:[#allocation4 + $0xcc] ss:$16 sps:$4 sm:$0xff]   ;;  %v3728_v40 = vld [vmem:[#allocation4 + $0xc0] ss:$16 sps:$4 sm:$0xff]  }
  0x34   :  { %525 = vmatpush1.bf16.msra.mxu0 %v3647_v17  ;;  %v3730_v41 = vld [vmem:[#allocation4 + $0xc8] ss:$16 sps:$4 sm:$0xff]   ;;  %v3732_v42 = vld [vmem:[#allocation4 + $0xe4] ss:$16 sps:$4 sm:$0xff]   ;;  %v3734_v43 = vld [vmem:[#allocation4 + $0xec] ss:$16 sps:$4 sm:$0xff]  }
  0x35   :  { %566 = vmatpush1.bf16.msra.mxu1 %v3651_v18  ;;  %526 = vmatprep.subr.bf16.mxu0 %v3655_v19  ;;  %v3740_v44 = vld [vmem:[#allocation4 + $0xe0] ss:$16 sps:$4 sm:$0xff]   ;;  %v3742_v45 = vld [vmem:[#allocation4 + $0xe8] ss:$16 sps:$4 sm:$0xff]   ;;  %v3790_v46 = vld [vmem:[#allocation6 + $0x4] ss:$16 sps:$4 sm:$0xff]  }
  0x36   :  { %567 = vmatprep.subr.bf16.mxu1 %v3659_v20  ;;  %v3792_v47 = vld [vmem:[#allocation6 + $0xc] ss:$16 sps:$4 sm:$0xff]   ;;  %v5308_v52 = vsub.s32 0, %v3796_v49  ;;  %v5307_v54 = vsub.s32 1, %v3796_v49 }
  0x37   :  { %2736 = vmatmul.mubr.msk.bf16.gmra.mrb[4].mxu0 %vm122_vm1, %v2913_v21  ;;  %v70_v53 = vld [vmem:[%s5299_s3] sm:$0xf] }
  0x38   :  { %2741 = vmatmul.mubr.msk.bf16.gmra.mrb[4].mxu1 %vm122_vm1, %v2913_v21  ;;  %527 = vmatpush1.bf16.msra.mxu0 %v3666_v22  ;;  %v3807_v55 = vrot.slane %v70_v53, %v5305_v50  ;;  %v3815_v58 = vrot.slane %v70_v53, %v5306_v51  ;;  %v75_v59 = vrot.slane %v70_v53, %v5308_v52 }
  0x39   :  { %568 = vmatpush1.bf16.msra.mxu1 %v3670_v23  ;;  %528 = vmatprep.subr.bf16.mxu0 %v3672_v24  ;;  %v79_v62 = vrot.slane %v70_v53, %v5307_v54 }
  0x3a   :  { %569 = vmatprep.subr.bf16.mxu1 %v3676_v25  ;;  %200 = vmatprep.mubr.bf16.mxu0 %v5309_v1 }
  0x3b   :  { %273 = vmatprep.mubr.bf16.mxu1 %v5309_v1 }
  0x3c   :  { %529 = vmatpush1.bf16.msra.mxu0 %v3682_v26 }
  0x3d   :  { %570 = vmatpush1.bf16.msra.mxu1 %v3684_v27  ;;  %530 = vmatprep.subr.bf16.mxu0 %v3686_v28 }
  0x3e   :  { %571 = vmatprep.subr.bf16.mxu1 %v3690_v29 }
  0x3f   :  { %2737 = vmatmul.mubr.msk.bf16.gmra.mrb[8].mxu0 %vm122_vm1, %v2926_v30 }
  0x40   :  { %2742 = vmatmul.mubr.msk.bf16.gmra.mrb[8].mxu1 %vm122_vm1, %v2926_v30  ;;  %531 = vmatpush1.bf16.msra.mxu0 %v3697_v31 }
  0x41   :  { %572 = vmatpush1.bf16.msra.mxu1 %v3699_v32  ;;  %532 = vmatprep.subr.bf16.mxu0 %v3703_v33 }
  0x42   :  { %573 = vmatprep.subr.bf16.mxu1 %v3707_v34  ;;  %210 = vmatprep.mubr.bf16.mxu0 %v5309_v1 }
  0x43   :  { %283 = vmatprep.mubr.bf16.mxu1 %v5309_v1 }
  0x44   :  { %533 = vmatpush1.bf16.msra.mxu0 %v3711_v35 }
  0x45   :  { %574 = vmatpush1.bf16.msra.mxu1 %v3715_v36  ;;  %534 = vmatprep.subr.bf16.mxu0 %v3722_v38 }
  0x46   :  { %575 = vmatprep.subr.bf16.mxu1 %v3724_v39 }
  0x47   :  { %2738 = vmatmul.mubr.msk.bf16.gmra.mrb[12].mxu0 %vm122_vm1, %v2939_v37 }
  0x48   :  { %2743 = vmatmul.mubr.msk.bf16.gmra.mrb[12].mxu1 %vm122_vm1, %v2939_v37  ;;  %535 = vmatpush1.bf16.msra.mxu0 %v3728_v40 }
  0x49   :  { %576 = vmatpush1.bf16.msra.mxu1 %v3730_v41  ;;  %536 = vmatprep.subr.bf16.mxu0 %v3732_v42 }
  0x4a   :  { %577 = vmatprep.subr.bf16.mxu1 %v3734_v43  ;;  %554 = vmatprep.mubr.bf16.mxu0 %v5309_v1 }
  0x4b   :  { %595 = vmatprep.mubr.bf16.mxu1 %v5309_v1 }
  0x4c   :  { %537 = vmatpush1.bf16.msra.mxu0 %v3740_v44 }
  0x4d   :  { %578 = vmatpush1.bf16.msra.mxu1 %v3742_v45  ;;  %637 = vmatprep.subr.bf16.mxu0 %v3633_v9 }
  0x4e   :  { %678 = vmatprep.subr.bf16.mxu1 %v3635_v12 }
  0x4f   :  { %555 = vmatmul.mubr.bf16.vlgmr.msra.gmra.mrb[16].mxu0 %v5309_v1 }
  0x50   :  { %596 = vmatmul.mubr.bf16.vlgmr.msra.gmra.mrb[16].mxu1 %v5309_v1  ;;  %638 = vmatpush1.bf16.msra.mxu0 %v3637_v13 }
  0x51   :  { %679 = vmatpush1.bf16.msra.mxu1 %v3639_v14  ;;  %639 = vmatprep.subr.bf16.mxu0 %v3643_v15 }
  0x52   :  { %680 = vmatprep.subr.bf16.mxu1 %v3645_v16  ;;  %669 = vmatprep.mubr.bf16.mxu0 %v5309_v1 }
  0x53   :  { %710 = vmatprep.mubr.bf16.mxu1 %v5309_v1 }
  0x54   :  { %640 = vmatpush1.bf16.msra.mxu0 %v3647_v17 }
  0x55   :  { %681 = vmatpush1.bf16.msra.mxu1 %v3651_v18  ;;  %641 = vmatprep.subr.bf16.mxu0 %v3655_v19 }
  0x56   :  { %682 = vmatprep.subr.bf16.mxu1 %v3659_v20 }
  0x58   :  { %642 = vmatpush1.bf16.msra.mxu0 %v3666_v22 }
  0x59   :  { %683 = vmatpush1.bf16.msra.mxu1 %v3670_v23  ;;  %643 = vmatprep.subr.bf16.mxu0 %v3672_v24 }
  0x5a   :  { %684 = vmatprep.subr.bf16.mxu1 %v3676_v25 }
  0x5c   :  { %644 = vmatpush1.bf16.msra.mxu0 %v3682_v26 }
  0x5d   :  { %685 = vmatpush1.bf16.msra.mxu1 %v3684_v27  ;;  %645 = vmatprep.subr.bf16.mxu0 %v3686_v28 }
  0x5e   :  { %686 = vmatprep.subr.bf16.mxu1 %v3690_v29 }
  0x60   :  { %646 = vmatpush1.bf16.msra.mxu0 %v3697_v31 }
  0x61   :  { %687 = vmatpush1.bf16.msra.mxu1 %v3699_v32  ;;  %647 = vmatprep.subr.bf16.mxu0 %v3703_v33 }
  0x62   :  { %688 = vmatprep.subr.bf16.mxu1 %v3707_v34 }
  0x64   :  { %648 = vmatpush1.bf16.msra.mxu0 %v3711_v35 }
  0x65   :  { %689 = vmatpush1.bf16.msra.mxu1 %v3715_v36  ;;  %649 = vmatprep.subr.bf16.mxu0 %v3722_v38 }
  0x66   :  { %690 = vmatprep.subr.bf16.mxu1 %v3724_v39 }
  0x68   :  { %650 = vmatpush1.bf16.msra.mxu0 %v3728_v40 }
  0x69   :  { %691 = vmatpush1.bf16.msra.mxu1 %v3730_v41  ;;  %651 = vmatprep.subr.bf16.mxu0 %v3732_v42 }
  0x6a   :  { %692 = vmatprep.subr.bf16.mxu1 %v3734_v43 }
  0x6c   :  { %652 = vmatpush1.bf16.msra.mxu0 %v3740_v44 }
  0x6d   :  { %693 = vmatpush1.bf16.msra.mxu1 %v3742_v45  ;;  %1154 = vmatprep.subr.bf16.mxu0 %v3790_v46 }
  0x6e   :  { %1195 = vmatprep.subr.bf16.mxu1 %v3792_v47 }
 0x102   :  { %v3809_v56 = vpop.f32.mrb[0].mxu0 }
 0x103   :  { %v3811_v57 = vpop.f32.mrb[0].mxu1  ;;  %v184_v60 = vpop.f32.mrb[1].mxu0 }
 0x104   :  { %v257_v61 = vpop.f32.mrb[1].mxu1  ;;  %v186_v63 = vpop.f32.mrb[2].mxu0 }
 0x105   :  { %v259_v0 = vpop.f32.mrb[2].mxu1  ;;  %v3821_v2 = vadd.f32 %v186_v63, %v75_v59  ;;  %v188_v3 = vpop.f32.mrb[3].mxu0 }
 0x106   :  { %v3824_v4 = vadd.f32 %v259_v0, %v3807_v55  ;;  %v261_v5 = vpop.f32.mrb[3].mxu1  ;;  %v3826_v6 = vadd.f32 %v188_v3, %v79_v62 }
 0x107   :  { %v3829_v7 = vadd.f32 %v261_v5, %v3815_v58 }
 0x10a   :  { %v192_v8 = vpop.f32.mrb[4].mxu0 }
 0x10b   :  { %v265_v10 = vpop.f32.mrb[4].mxu1  ;;  %v3831_v11 = vadd.f32 %v192_v8, %v75_v59  ;;  %v194_v21 = vpop.f32.mrb[5].mxu0 }
 0x10c   :  { %v3834_v30 = vadd.f32 %v265_v10, %v3807_v55  ;;  %v267_v37 = vpop.f32.mrb[5].mxu1  ;;  %v3836_v48 = vadd.f32 %v194_v21, %v79_v62  ;;  %v196_v53 = vpop.f32.mrb[6].mxu0 }
 0x10d   :  { %5603 = vst [vmem:[#allocation10_spill] sm:$0xff] %v3831_v11  ;;  %v3839_v63 = vadd.f32 %v267_v37, %v3815_v58  ;;  %v269_v0 = vpop.f32.mrb[6].mxu1  ;;  %v3841_v3 = vadd.f32 %v196_v53, %v75_v59  ;;  %v198_v5 = vpop.f32.mrb[7].mxu0 }
 0x10e   :  { %5604 = vst [vmem:[#allocation11_spill] sm:$0xff] %v3834_v30  ;;  %5605 = vst [vmem:[#allocation12_spill] sm:$0xff] %v3836_v48  ;;  %v3844_v50 = vadd.f32 %v269_v0, %v3807_v55  ;;  %v271_v8 = vpop.f32.mrb[7].mxu1  ;;  %v3846_v51 = vadd.f32 %v198_v5, %v79_v62 }
 0x10f   :  { %5606 = vst [vmem:[#allocation13_spill] sm:$0xff] %v3839_v63  ;;  %5607 = vst [vmem:[#allocation14_spill] sm:$0xff] %v3841_v3  ;;  %v3849_v10 = vadd.f32 %v271_v8, %v3815_v58 }
 0x110   :  { %5608 = vst [vmem:[#allocation15_spill] sm:$0xff] %v3844_v50  ;;  %5609 = vst [vmem:[#allocation16_spill] sm:$0xff] %v3846_v51 }
 0x111   :  { %5610 = vst [vmem:[#allocation17_spill] sm:$0xff] %v3849_v10 }
 0x112   :  { %v202_v54 = vpop.f32.mrb[8].mxu0 }
 0x113   :  { %v275_v21 = vpop.f32.mrb[8].mxu1  ;;  %v3851_v52 = vadd.f32 %v202_v54, %v75_v59  ;;  %v204_v1 = vpop.f32.mrb[9].mxu0 }
 0x114   :  { %v3854_v37 = vadd.f32 %v275_v21, %v3807_v55  ;;  %v277_v53 = vpop.f32.mrb[9].mxu1  ;;  %v3856_v3 = vadd.f32 %v204_v1, %v79_v62  ;;  %v206_v63 = vpop.f32.mrb[10].mxu0 }
 0x115   :  { %5611 = vst [vmem:[#allocation18_spill] sm:$0xff] %v3851_v52  ;;  %v3859_v0 = vadd.f32 %v277_v53, %v3815_v58  ;;  %v279_v5 = vpop.f32.mrb[10].mxu1  ;;  %v3861_v51 = vadd.f32 %v206_v63, %v75_v59  ;;  %v208_v8 = vpop.f32.mrb[11].mxu0 }
 0x116   :  { %5612 = vst [vmem:[#allocation19_spill] sm:$0xff] %v3854_v37  ;;  %5613 = vst [vmem:[#allocation20_spill] sm:$0xff] %v3856_v3  ;;  %v3864_v10 = vadd.f32 %v279_v5, %v3807_v55  ;;  %v281_v54 = vpop.f32.mrb[11].mxu1  ;;  %v3866_v52 = vadd.f32 %v208_v8, %v79_v62 }
 0x117   :  { %5614 = vst [vmem:[#allocation21_spill] sm:$0xff] %v3859_v0  ;;  %5615 = vst [vmem:[#allocation22_spill] sm:$0xff] %v3861_v51  ;;  %v3869_v21 = vadd.f32 %v281_v54, %v3815_v58 }
 0x118   :  { %5616 = vst [vmem:[#allocation23_spill] sm:$0xff] %v3864_v10  ;;  %5617 = vst [vmem:[#allocation24_spill] sm:$0xff] %v3866_v52 }
 0x119   :  { %5618 = vst [vmem:[#allocation25_spill] sm:$0xff] %v3869_v21 }
 0x11a   :  { %v212_v37 = vpop.f32.mrb[12].mxu0 }
 0x11b   :  { %v285_v1 = vpop.f32.mrb[12].mxu1  ;;  %v3871_v3 = vadd.f32 %v212_v37, %v75_v59  ;;  %v214_v50 = vpop.f32.mrb[13].mxu0 }
 0x11c   :  { %v3874_v53 = vadd.f32 %v285_v1, %v3807_v55  ;;  %v287_v63 = vpop.f32.mrb[13].mxu1  ;;  %v3876_v51 = vadd.f32 %v214_v50, %v79_v62  ;;  %v216_v0 = vpop.f32.mrb[14].mxu0  ;;  %v183_v50 = vadd.f32 %v3809_v56, %v75_v59 }
 0x11d   :  { %5619 = vst [vmem:[#allocation26_spill] sm:$0xff] %v3871_v3  ;;  %v3879_v5 = vadd.f32 %v287_v63, %v3815_v58  ;;  %v289_v8 = vpop.f32.mrb[14].mxu1  ;;  %v3881_v52 = vadd.f32 %v216_v0, %v75_v59  ;;  %v218_v54 = vpop.f32.mrb[15].mxu0  ;;  %v185_v63 = vadd.f32 %v184_v60, %v79_v62 }
 0x11e   :  { %5620 = vst [vmem:[#allocation27_spill] sm:$0xff] %v3874_v53  ;;  %5621 = vst [vmem:[#allocation28_spill] sm:$0xff] %v3876_v51  ;;  %v3884_v21 = vadd.f32 %v289_v8, %v3807_v55  ;;  %v291_v37 = vpop.f32.mrb[15].mxu1  ;;  %v3886_v3 = vadd.f32 %v218_v54, %v79_v62  ;;  %v256_v51 = vadd.f32 %v3811_v57, %v3807_v55 }
 0x11f   :  { %5622 = vst [vmem:[#allocation29_spill] sm:$0xff] %v3879_v5  ;;  %5623 = vst [vmem:[#allocation30_spill] sm:$0xff] %v3881_v52  ;;  %v3889_v1 = vadd.f32 %v291_v37, %v3815_v58  ;;  %v258_v5 = vadd.f32 %v257_v61, %v3815_v58 }
 0x120   :  { %5624 = vst [vmem:[#allocation31_spill] sm:$0xff] %v3884_v21  ;;  %5625 = vst [vmem:[#allocation32_spill] sm:$0xff] %v3886_v3 }
 0x121   :  { %5626 = vst [vmem:[#allocation33_spill] sm:$0xff] %v3889_v1 }
 0x122   :  { %v556_v0 = vpop.f32.mrb[16].mxu0 }
 0x123   :  { %v597_v52 = vpop.f32.mrb[16].mxu1  ;;  %v604_v53 = vadd.f32 %v556_v0, %v183_v50  ;;  %v558_v8 = vpop.f32.mrb[17].mxu0  ;;  %v3906_v0 = vld [vmem:[#allocation6 + $0x2c] ss:$16 sps:$4 sm:$0xff]  }
 0x124   :  { %v606_v10 = vadd.f32 %v597_v52, %v256_v51  ;;  %v599_v21 = vpop.f32.mrb[17].mxu1  ;;  %v605_v48 = vadd.f32 %v558_v8, %v185_v63  ;;  %v560_v3 = vpop.f32.mrb[18].mxu0  ;;  %v3904_v63 = vld [vmem:[#allocation6 + $0x24] ss:$16 sps:$4 sm:$0xff]   ;;  %v3912_v8 = vld [vmem:[#allocation6 + $0x20] ss:$16 sps:$4 sm:$0xff]  }
 0x125   :  { %v607_v54 = vadd.f32 %v599_v21, %v258_v5  ;;  %v601_v30 = vpop.f32.mrb[18].mxu1  ;;  %v2776_v37 = vmul.f32 -1.442695, %v604_v53  ;;  %v561_v1 = vpop.f32.mrb[19].mxu0 }
 0x126   :  { %v602_v11 = vpop.f32.mrb[19].mxu1  ;;  %v2777_v56 = vmul.f32 -1.442695, %v605_v48  ;;  %v3898_v1 = vld [vmem:[#allocation6] ss:$16 sps:$4 sm:$0xff]  }
 0x127   :  { %3048 = vpow2.f32 %v2776_v37  ;;  %v2778_v55 = vmul.f32 -1.442695, %v607_v54  ;;  %v3914_v54 = vld [vmem:[#allocation6 + $0x28] ss:$16 sps:$4 sm:$0xff]   ;;  %v3918_v37 = vld [vmem:[#allocation6 + $0x44] ss:$16 sps:$4 sm:$0xff]  }
 0x128   :  { %3050 = vpow2.f32 %v2777_v56  ;;  %v3920_v56 = vld [vmem:[#allocation6 + $0x4c] ss:$16 sps:$4 sm:$0xff]  }
 0x129   :  { %3052 = vpow2.f32 %v2778_v55  ;;  %v3549_v55 = vmov 0.0|0.0  }
 0x12a   :  { %3054 = vtanh.f32 %v606_v10  ;;  %v3900_v10 = vld [vmem:[#allocation6 + $0x8] ss:$16 sps:$4 sm:$0xff]  }
 0x131   :  { %v3049_v57 = vpop.eup %3048 }
 0x132   :  { %v3051_v59 = vpop.eup %3050  ;;  %v611_v58 = vadd.f32 1.0, %v3049_v57  ;;  %v3924_v57 = vld [vmem:[#allocation6 + $0x40] ss:$16 sps:$4 sm:$0xff]  }
 0x133   :  { %v617_v60 = vadd.f32 1.0, %v3051_v59  ;;  %v3053_v51 = vpop.eup %3052  ;;  %v3926_v59 = vld [vmem:[#allocation6 + $0x48] ss:$16 sps:$4 sm:$0xff]  }
 0x134   :  { %3056 = vrcp.f32 %v611_v58  ;;  %v3055_v52 = vpop.eup %3054  ;;  %v624_v3 = vadd.f32 1.0, %v3053_v51  ;;  %v3930_v58 = vld [vmem:[#allocation6 + $0x64] ss:$16 sps:$4 sm:$0xff]   ;;  %v3936_v51 = vld [vmem:[#allocation6 + $0x60] ss:$16 sps:$4 sm:$0xff]  }
 0x135   :  { %3058 = vrcp.f32 %v617_v60  ;;  %v3932_v60 = vld [vmem:[#allocation6 + $0x6c] ss:$16 sps:$4 sm:$0xff]  }
 0x136   :  { %3060 = vrcp.f32 %v624_v3  ;;  %v3950_v3 = vld [vmem:[#allocation6 + $0x88] ss:$16 sps:$4 sm:$0xff]  }
 0x137   :  { %5630 = vst [vmem:[#allocation37_spill] sm:$0xff] %v3950_v3 }
 0x13e   :  { %v3057_v61 = vpop.eup %3056 }
 0x13f   :  { %v3059_v62 = vpop.eup %3058  ;;  %v628_v30 = vmul.f32 %v3057_v61, %v3055_v52  ;;  %v3938_v52 = vld [vmem:[#allocation6 + $0x68] ss:$16 sps:$4 sm:$0xff]   ;;  %v3942_v61 = vld [vmem:[#allocation6 + $0x84] ss:$16 sps:$4 sm:$0xff]  }
 0x140   :  { %v627_v21 = vmul.f32 0.0, %v3059_v62  ;;  %v3061_v48 = vpop.eup %3060  ;;  %5627 = vst [vmem:[#allocation34_spill] sm:$0xff] %v3942_v61  ;;  %v3944_v62 = vld [vmem:[#allocation6 + $0x8c] ss:$16 sps:$4 sm:$0xff]  }
 0x141   :  { %5628 = vst [vmem:[#allocation35_spill] sm:$0xff] %v3944_v62 }
 0x142   :  { %v3895_v11 = vadd.f32 %v628_v30, %v627_v21  ;;  %v3948_v30 = vld [vmem:[#allocation6 + $0x80] ss:$16 sps:$4 sm:$0xff]   ;;  %v3954_v21 = vld [vmem:[#allocation6 + $0xa4] ss:$16 sps:$4 sm:$0xff]  }
 0x143   :  { %5629 = vst [vmem:[#allocation36_spill] sm:$0xff] %v3948_v30  ;;  %5631 = vst [vmem:[#allocation38_spill] sm:$0xff] %v3954_v21 }
 0x144   :  { %3062 = vtanh.f32 %v3895_v11 }
 0x14e   :  { %v3063_v53 = vpop.eup %3062 }
 0x14f   :  { %v631_v5 = vmul.f32 %v3063_v53, %v3061_v48  ;;  %v3956_v48 = vld [vmem:[#allocation6 + $0xac] ss:$16 sps:$4 sm:$0xff]   ;;  %v3960_v53 = vld [vmem:[#allocation6 + $0xa0] ss:$16 sps:$4 sm:$0xff]  }
 0x150   :  { %5632 = vst [vmem:[#allocation39_spill] sm:$0xff] %v3956_v48  ;;  %5633 = vst [vmem:[#allocation40_spill] sm:$0xff] %v3960_v53 }
 0x151   :  { %v3902_v50 = vpack.c.bf16 %v631_v5, %v631_v5  ;;  %v3962_v5 = vld [vmem:[#allocation6 + $0xa8] ss:$16 sps:$4 sm:$0xff]  }
 0x152   :  { %5634 = vst [vmem:[#allocation41_spill] sm:$0xff] %v3962_v5 }
 0x153   :  { %670 = vmatmul.mubr.bf16.vlgmr.msra.gmra.mrb[20].mxu0 %v3902_v50  ;;  %711 = vmatmul.mubr.bf16.vlgmr.msra.gmra.mrb[20].mxu1 %v3902_v50 }
 0x154   :  { %1155 = vmatpush1.bf16.msra.mxu0 %v3898_v1  ;;  %1196 = vmatpush1.bf16.msra.mxu1 %v3900_v10 }
 0x155   :  { %1156 = vmatprep.subr.bf16.mxu0 %v3904_v63  ;;  %1197 = vmatprep.subr.bf16.mxu1 %v3906_v0 }
 0x156   :  { %1186 = vmatprep.mubr.bf16.mxu0 %v3549_v55  ;;  %1227 = vmatprep.mubr.bf16.mxu1 %v3549_v55  ;;  %v3966_v55 = vld [vmem:[#allocation6 + $0xc4] ss:$16 sps:$4 sm:$0xff]  }
 0x157   :  { %5635 = vst [vmem:[#allocation42_spill] sm:$0xff] %v3966_v55 }
 0x158   :  { %1157 = vmatpush1.bf16.msra.mxu0 %v3912_v8  ;;  %1198 = vmatpush1.bf16.msra.mxu1 %v3914_v54 }
 0x159   :  { %1158 = vmatprep.subr.bf16.mxu0 %v3918_v37  ;;  %1199 = vmatprep.subr.bf16.mxu1 %v3920_v56 }
 0x15c   :  { %1159 = vmatpush1.bf16.msra.mxu0 %v3924_v57  ;;  %1200 = vmatpush1.bf16.msra.mxu1 %v3926_v59 }
 0x15d   :  { %1160 = vmatprep.subr.bf16.mxu0 %v3930_v58  ;;  %1201 = vmatprep.subr.bf16.mxu1 %v3932_v60 }
 0x160   :  { %1161 = vmatpush1.bf16.msra.mxu0 %v3936_v51  ;;  %1202 = vmatpush1.bf16.msra.mxu1 %v3938_v52 }
 0x161   :  { %1162 = vmatprep.subr.bf16.mxu0 %v3942_v61  ;;  %1203 = vmatprep.subr.bf16.mxu1 %v3944_v62  ;;  %v3968_v61 = vld [vmem:[#allocation6 + $0xcc] ss:$16 sps:$4 sm:$0xff]   ;;  %v3972_v62 = vld [vmem:[#allocation6 + $0xc0] ss:$16 sps:$4 sm:$0xff]  }
 0x162   :  { %5636 = vst [vmem:[#allocation43_spill] sm:$0xff] %v3968_v61  ;;  %5637 = vst [vmem:[#allocation44_spill] sm:$0xff] %v3972_v62 }
 0x164   :  { %1163 = vmatpush1.bf16.msra.mxu0 %v3948_v30  ;;  %1204 = vmatpush1.bf16.msra.mxu1 %v3950_v3  ;;  %v3974_v30 = vld [vmem:[#allocation6 + $0xc8] ss:$16 sps:$4 sm:$0xff]   ;;  %v3978_v3 = vld [vmem:[#allocation6 + $0xe4] ss:$16 sps:$4 sm:$0xff]  }
 0x165   :  { %1164 = vmatprep.subr.bf16.mxu0 %v3954_v21  ;;  %1205 = vmatprep.subr.bf16.mxu1 %v3956_v48  ;;  %5638 = vst [vmem:[#allocation45_spill] sm:$0xff] %v3974_v30  ;;  %5639 = vst [vmem:[#allocation46_spill] sm:$0xff] %v3978_v3  ;;  %v3980_v21 = vld [vmem:[#allocation6 + $0xec] ss:$16 sps:$4 sm:$0xff]   ;;  %v3984_v48 = vld [vmem:[#allocation6 + $0xe0] ss:$16 sps:$4 sm:$0xff]  }
 0x166   :  { %5640 = vst [vmem:[#allocation47_spill] sm:$0xff] %v3980_v21  ;;  %5641 = vst [vmem:[#allocation48_spill] sm:$0xff] %v3984_v48 }
 0x168   :  { %1165 = vmatpush1.bf16.msra.mxu0 %v3960_v53  ;;  %1206 = vmatpush1.bf16.msra.mxu1 %v3962_v5  ;;  %v3986_v53 = vld [vmem:[#allocation6 + $0xe8] ss:$16 sps:$4 sm:$0xff]   ;;  %v3990_v5 = vld [vmem:[#allocation6 + $0x104] ss:$16 sps:$4 sm:$0xff]  }
 0x169   :  { %1166 = vmatprep.subr.bf16.mxu0 %v3966_v55  ;;  %1207 = vmatprep.subr.bf16.mxu1 %v3968_v61  ;;  %5642 = vst [vmem:[#allocation49_spill] sm:$0xff] %v3986_v53  ;;  %5643 = vst [vmem:[#allocation50_spill] sm:$0xff] %v3990_v5  ;;  %v3992_v55 = vld [vmem:[#allocation6 + $0x10c] ss:$16 sps:$4 sm:$0xff]   ;;  %v3996_v61 = vld [vmem:[#allocation6 + $0x100] ss:$16 sps:$4 sm:$0xff]  }
 0x16a   :  { %5644 = vst [vmem:[#allocation51_spill] sm:$0xff] %v3992_v55  ;;  %5645 = vst [vmem:[#allocation52_spill] sm:$0xff] %v3996_v61 }
 0x16c   :  { %1167 = vmatpush1.bf16.msra.mxu0 %v3972_v62  ;;  %1208 = vmatpush1.bf16.msra.mxu1 %v3974_v30  ;;  %v3998_v62 = vld [vmem:[#allocation6 + $0x108] ss:$16 sps:$4 sm:$0xff]   ;;  %v4002_v30 = vld [vmem:[#allocation6 + $0x124] ss:$16 sps:$4 sm:$0xff]  }
 0x16d   :  { %1168 = vmatprep.subr.bf16.mxu0 %v3978_v3  ;;  %1209 = vmatprep.subr.bf16.mxu1 %v3980_v21  ;;  %5646 = vst [vmem:[#allocation53_spill] sm:$0xff] %v3998_v62  ;;  %5647 = vst [vmem:[#allocation54_spill] sm:$0xff] %v4002_v30  ;;  %v4004_v3 = vld [vmem:[#allocation6 + $0x12c] ss:$16 sps:$4 sm:$0xff]   ;;  %v4008_v21 = vld [vmem:[#allocation6 + $0x120] ss:$16 sps:$4 sm:$0xff]  }
 0x16e   :  { %5648 = vst [vmem:[#allocation55_spill] sm:$0xff] %v4004_v3  ;;  %5649 = vst [vmem:[#allocation56_spill] sm:$0xff] %v4008_v21 }
 0x170   :  { %1169 = vmatpush1.bf16.msra.mxu0 %v3984_v48  ;;  %1210 = vmatpush1.bf16.msra.mxu1 %v3986_v53  ;;  %v4010_v48 = vld [vmem:[#allocation6 + $0x128] ss:$16 sps:$4 sm:$0xff]   ;;  %v4014_v53 = vld [vmem:[#allocation6 + $0x144] ss:$16 sps:$4 sm:$0xff]  }
 0x171   :  { %1170 = vmatprep.subr.bf16.mxu0 %v3990_v5  ;;  %1211 = vmatprep.subr.bf16.mxu1 %v3992_v55  ;;  %5650 = vst [vmem:[#allocation57_spill] sm:$0xff] %v4010_v48  ;;  %5651 = vst [vmem:[#allocation58_spill] sm:$0xff] %v4014_v53  ;;  %v4016_v5 = vld [vmem:[#allocation6 + $0x14c] ss:$16 sps:$4 sm:$0xff]   ;;  %v4020_v55 = vld [vmem:[#allocation6 + $0x140] ss:$16 sps:$4 sm:$0xff]  }
 0x172   :  { %5652 = vst [vmem:[#allocation59_spill] sm:$0xff] %v4016_v5  ;;  %5653 = vst [vmem:[#allocation60_spill] sm:$0xff] %v4020_v55 }
 0x174   :  { %1171 = vmatpush1.bf16.msra.mxu0 %v3996_v61  ;;  %1212 = vmatpush1.bf16.msra.mxu1 %v3998_v62  ;;  %v4022_v61 = vld [vmem:[#allocation6 + $0x148] ss:$16 sps:$4 sm:$0xff]   ;;  %v4026_v62 = vld [vmem:[#allocation6 + $0x164] ss:$16 sps:$4 sm:$0xff]  }
 0x175   :  { %1172 = vmatprep.subr.bf16.mxu0 %v4002_v30  ;;  %1213 = vmatprep.subr.bf16.mxu1 %v4004_v3  ;;  %5654 = vst [vmem:[#allocation61_spill] sm:$0xff] %v4022_v61  ;;  %5655 = vst [vmem:[#allocation62_spill] sm:$0xff] %v4026_v62  ;;  %v4028_v30 = vld [vmem:[#allocation6 + $0x16c] ss:$16 sps:$4 sm:$0xff]   ;;  %v4032_v3 = vld [vmem:[#allocation6 + $0x160] ss:$16 sps:$4 sm:$0xff]  }
 0x176   :  { %5656 = vst [vmem:[#allocation63_spill] sm:$0xff] %v4028_v30  ;;  %5657 = vst [vmem:[#allocation64_spill] sm:$0xff] %v4032_v3 }
 0x178   :  { %1173 = vmatpush1.bf16.msra.mxu0 %v4008_v21  ;;  %1214 = vmatpush1.bf16.msra.mxu1 %v4010_v48  ;;  %v4034_v21 = vld [vmem:[#allocation6 + $0x168] ss:$16 sps:$4 sm:$0xff]   ;;  %v4038_v48 = vld [vmem:[#allocation6 + $0x184] ss:$16 sps:$4 sm:$0xff]  }
 0x179   :  { %1174 = vmatprep.subr.bf16.mxu0 %v4014_v53  ;;  %1215 = vmatprep.subr.bf16.mxu1 %v4016_v5  ;;  %5658 = vst [vmem:[#allocation65_spill] sm:$0xff] %v4034_v21  ;;  %5659 = vst [vmem:[#allocation66_spill] sm:$0xff] %v4038_v48  ;;  %v4040_v53 = vld [vmem:[#allocation6 + $0x18c] ss:$16 sps:$4 sm:$0xff]   ;;  %v4044_v5 = vld [vmem:[#allocation6 + $0x180] ss:$16 sps:$4 sm:$0xff]  }
 0x17a   :  { %5660 = vst [vmem:[#allocation67_spill] sm:$0xff] %v4040_v53  ;;  %5661 = vst [vmem:[#allocation68_spill] sm:$0xff] %v4044_v5 }
 0x17c   :  { %1175 = vmatpush1.bf16.msra.mxu0 %v4020_v55  ;;  %1216 = vmatpush1.bf16.msra.mxu1 %v4022_v61  ;;  %v4046_v55 = vld [vmem:[#allocation6 + $0x188] ss:$16 sps:$4 sm:$0xff]   ;;  %v4050_v61 = vld [vmem:[#allocation6 + $0x1a4] ss:$16 sps:$4 sm:$0xff]  }
 0x17d   :  { %1176 = vmatprep.subr.bf16.mxu0 %v4026_v62  ;;  %1217 = vmatprep.subr.bf16.mxu1 %v4028_v30  ;;  %5662 = vst [vmem:[#allocation69_spill] sm:$0xff] %v4046_v55  ;;  %5663 = vst [vmem:[#allocation70_spill] sm:$0xff] %v4050_v61  ;;  %v4052_v62 = vld [vmem:[#allocation6 + $0x1ac] ss:$16 sps:$4 sm:$0xff]   ;;  %v4056_v30 = vld [vmem:[#allocation6 + $0x1a0] ss:$16 sps:$4 sm:$0xff]  }
 0x17e   :  { %5664 = vst [vmem:[#allocation71_spill] sm:$0xff] %v4052_v62  ;;  %5665 = vst [vmem:[#allocation72_spill] sm:$0xff] %v4056_v30 }
 0x180   :  { %1177 = vmatpush1.bf16.msra.mxu0 %v4032_v3  ;;  %1218 = vmatpush1.bf16.msra.mxu1 %v4034_v21  ;;  %v4058_v3 = vld [vmem:[#allocation6 + $0x1a8] ss:$16 sps:$4 sm:$0xff]   ;;  %v4062_v21 = vld [vmem:[#allocation6 + $0x1c4] ss:$16 sps:$4 sm:$0xff]  }
 0x181   :  { %1178 = vmatprep.subr.bf16.mxu0 %v4038_v48  ;;  %1219 = vmatprep.subr.bf16.mxu1 %v4040_v53  ;;  %5666 = vst [vmem:[#allocation73_spill] sm:$0xff] %v4058_v3  ;;  %5667 = vst [vmem:[#allocation74_spill] sm:$0xff] %v4062_v21  ;;  %v4064_v48 = vld [vmem:[#allocation6 + $0x1cc] ss:$16 sps:$4 sm:$0xff]   ;;  %v4068_v53 = vld [vmem:[#allocation6 + $0x1c0] ss:$16 sps:$4 sm:$0xff]  }
 0x182   :  { %5668 = vst [vmem:[#allocation75_spill] sm:$0xff] %v4064_v48  ;;  %5669 = vst [vmem:[#allocation76_spill] sm:$0xff] %v4068_v53 }
 0x184   :  { %1179 = vmatpush1.bf16.msra.mxu0 %v4044_v5  ;;  %1220 = vmatpush1.bf16.msra.mxu1 %v4046_v55  ;;  %v4070_v5 = vld [vmem:[#allocation6 + $0x1c8] ss:$16 sps:$4 sm:$0xff]   ;;  %v4074_v55 = vld [vmem:[#allocation6 + $0x1e4] ss:$16 sps:$4 sm:$0xff]  }
 0x185   :  { %1180 = vmatprep.subr.bf16.mxu0 %v4050_v61  ;;  %1221 = vmatprep.subr.bf16.mxu1 %v4052_v62  ;;  %5670 = vst [vmem:[#allocation77_spill] sm:$0xff] %v4070_v5  ;;  %5671 = vst [vmem:[#allocation78_spill] sm:$0xff] %v4074_v55  ;;  %v4076_v61 = vld [vmem:[#allocation6 + $0x1ec] ss:$16 sps:$4 sm:$0xff]   ;;  %v4080_v62 = vld [vmem:[#allocation6 + $0x1e0] ss:$16 sps:$4 sm:$0xff]  }
 0x186   :  { %5672 = vst [vmem:[#allocation79_spill] sm:$0xff] %v4076_v61  ;;  %5673 = vst [vmem:[#allocation80_spill] sm:$0xff] %v4080_v62 }
 0x188   :  { %1181 = vmatpush1.bf16.msra.mxu0 %v4056_v30  ;;  %1222 = vmatpush1.bf16.msra.mxu1 %v4058_v3  ;;  %v4082_v30 = vld [vmem:[#allocation6 + $0x1e8] ss:$16 sps:$4 sm:$0xff]  }
 0x189   :  { %1182 = vmatprep.subr.bf16.mxu0 %v4062_v21  ;;  %1223 = vmatprep.subr.bf16.mxu1 %v4064_v48  ;;  %5674 = vst [vmem:[#allocation81_spill] sm:$0xff] %v4082_v30 }
 0x18c   :  { %1183 = vmatpush1.bf16.msra.mxu0 %v4068_v53  ;;  %1224 = vmatpush1.bf16.msra.mxu1 %v4070_v5 }
 0x18d   :  { %1184 = vmatprep.subr.bf16.mxu0 %v4074_v55  ;;  %1225 = vmatprep.subr.bf16.mxu1 %v4076_v61  ;;  %v5675_v61 = vmov 0  }
 0x190   :  { %1185 = vmatpush1.bf16.msra.mxu0 %v4080_v62  ;;  %1226 = vmatpush1.bf16.msra.mxu1 %v4082_v30 }
 0x191   :  { %1265 = vmatprep.subr.bf16.mxu0 %v3633_v9  ;;  %1306 = vmatprep.subr.bf16.mxu1 %v3635_v12 }
 0x193   :  { %1187 = vmatmul.mubr.bf16.vlgmr.msra.gmra.mrb[24].mxu0 %v3902_v50  ;;  %1228 = vmatmul.mubr.bf16.vlgmr.msra.gmra.mrb[24].mxu1 %v3902_v50  ;;  %v5681_v50 = vld [vmem:[#allocation35_spill] sm:$0xff] }
 0x194   :  { %1266 = vmatpush1.bf16.msra.mxu0 %v3637_v13  ;;  %1307 = vmatpush1.bf16.msra.mxu1 %v3639_v14 }
 0x195   :  { %1267 = vmatprep.subr.bf16.mxu0 %v3643_v15  ;;  %1308 = vmatprep.subr.bf16.mxu1 %v3645_v16 }
 0x196   :  { %1297 = vmatprep.mubr.bf16.mxu0 %v5675_v61  ;;  %1338 = vmatprep.mubr.bf16.mxu1 %v5675_v61 }
 0x198   :  { %1268 = vmatpush1.bf16.msra.mxu0 %v3647_v17  ;;  %1309 = vmatpush1.bf16.msra.mxu1 %v3651_v18 }
 0x199   :  { %1269 = vmatprep.subr.bf16.mxu0 %v3655_v19  ;;  %1310 = vmatprep.subr.bf16.mxu1 %v3659_v20 }
 0x19c   :  { %1270 = vmatpush1.bf16.msra.mxu0 %v3666_v22  ;;  %1311 = vmatpush1.bf16.msra.mxu1 %v3670_v23 }
 0x19d   :  { %1271 = vmatprep.subr.bf16.mxu0 %v3672_v24  ;;  %1312 = vmatprep.subr.bf16.mxu1 %v3676_v25 }
 0x1a0   :  { %1272 = vmatpush1.bf16.msra.mxu0 %v3682_v26  ;;  %1313 = vmatpush1.bf16.msra.mxu1 %v3684_v27 }
 0x1a1   :  { %1273 = vmatprep.subr.bf16.mxu0 %v3686_v28  ;;  %1314 = vmatprep.subr.bf16.mxu1 %v3690_v29 }
 0x1a4   :  { %1274 = vmatpush1.bf16.msra.mxu0 %v3697_v31  ;;  %1315 = vmatpush1.bf16.msra.mxu1 %v3699_v32 }
 0x1a5   :  { %1275 = vmatprep.subr.bf16.mxu0 %v3703_v33  ;;  %1316 = vmatprep.subr.bf16.mxu1 %v3707_v34 }
 0x1a8   :  { %1276 = vmatpush1.bf16.msra.mxu0 %v3711_v35  ;;  %1317 = vmatpush1.bf16.msra.mxu1 %v3715_v36 }
 0x1a9   :  { %1277 = vmatprep.subr.bf16.mxu0 %v3722_v38  ;;  %1318 = vmatprep.subr.bf16.mxu1 %v3724_v39 }
 0x1ac   :  { %1278 = vmatpush1.bf16.msra.mxu0 %v3728_v40  ;;  %1319 = vmatpush1.bf16.msra.mxu1 %v3730_v41 }
 0x1ad   :  { %1279 = vmatprep.subr.bf16.mxu0 %v3732_v42  ;;  %1320 = vmatprep.subr.bf16.mxu1 %v3734_v43 }
 0x1b0   :  { %1280 = vmatpush1.bf16.msra.mxu0 %v3740_v44  ;;  %1321 = vmatpush1.bf16.msra.mxu1 %v3742_v45  ;;  %v812_v45 = vld [vmem:[%s5301_s5] sm:$0xf] }
 0x1b1   :  { %1376 = vmatprep.subr.bf16.mxu0 %v3790_v46  ;;  %1417 = vmatprep.subr.bf16.mxu1 %v3792_v47 }
 0x226   :  { %v671_v9 = vpop.f32.mrb[20].mxu0  ;;  %v712_v12 = vpop.f32.mrb[20].mxu1 }
 0x227   :  { %v719_v13 = vadd.f32 %v671_v9, %v3821_v2  ;;  %v721_v14 = vadd.f32 %v712_v12, %v3824_v4  ;;  %v673_v15 = vpop.f32.mrb[21].mxu0  ;;  %v714_v16 = vpop.f32.mrb[21].mxu1  ;;  %v5676_v2 = vsub.s32 0, %v3796_v49 }
 0x228   :  { %v720_v17 = vadd.f32 %v673_v15, %v3826_v6  ;;  %v722_v18 = vadd.f32 %v714_v16, %v3829_v7  ;;  %v675_v19 = vpop.f32.mrb[22].mxu0  ;;  %v716_v20 = vpop.f32.mrb[22].mxu1  ;;  %v5678_v6 = vsub.s32 1, %v3796_v49 }
 0x229   :  { %v2779_v22 = vmul.f32 -1.442695, %v719_v13  ;;  %v676_v23 = vpop.f32.mrb[23].mxu0  ;;  %v717_v24 = vpop.f32.mrb[23].mxu1  ;;  %v4155_v4 = vrot.slane %v812_v45, %v5676_v2  ;;  %v5682_v19 = vld [vmem:[#allocation36_spill] sm:$0xff]  ;;  %v5683_v20 = vld [vmem:[#allocation37_spill] sm:$0xff] }
 0x22a   :  { %v2780_v25 = vmul.f32 -1.442695, %v720_v17  ;;  %v2781_v26 = vmul.f32 -1.442695, %v722_v18  ;;  %v4161_v7 = vrot.slane %v812_v45, %v5678_v6 }
 0x22b   :  { %3064 = vpow2.f32 %v2779_v22  ;;  %5677 = vst [vmem:[#allocation82_spill] sm:$0xff] %v4155_v4 }
 0x22c   :  { %3066 = vpow2.f32 %v2780_v25  ;;  %5679 = vst [vmem:[#allocation83_spill] sm:$0xff] %v4161_v7  ;;  %v5684_v25 = vld [vmem:[#allocation38_spill] sm:$0xff] }
 0x22d   :  { %3068 = vpow2.f32 %v2781_v26  ;;  %v5685_v26 = vld [vmem:[#allocation39_spill] sm:$0xff] }
 0x22e   :  { %3070 = vtanh.f32 %v721_v14 }
 0x235   :  { %v3065_v27 = vpop.eup %3064 }
 0x236   :  { %v3067_v28 = vpop.eup %3066  ;;  %v726_v29 = vadd.f32 1.0, %v3065_v27 }
 0x237   :  { %v732_v31 = vadd.f32 1.0, %v3067_v28  ;;  %v3069_v32 = vpop.eup %3068  ;;  %v5686_v28 = vsub.s32 3, %v3796_v49 }
 0x238   :  { %3072 = vrcp.f32 %v726_v29  ;;  %v3071_v33 = vpop.eup %3070  ;;  %v739_v38 = vadd.f32 1.0, %v3069_v32  ;;  %v5689_v32 = vld [vmem:[#allocation41_spill] sm:$0xff] }
 0x239   :  { %3074 = vrcp.f32 %v732_v31  ;;  %v4173_v29 = vrot.slane %v812_v45, %v5686_v28  ;;  %v5688_v31 = vld [vmem:[#allocation40_spill] sm:$0xff]  ;;  %v5708_v28 = vld [vmem:[#allocation58_spill] sm:$0xff] }
 0x23a   :  { %3076 = vrcp.f32 %v739_v38 }
 0x242   :  { %v3073_v34 = vpop.eup %3072 }
 0x243   :  { %v3075_v35 = vpop.eup %3074  ;;  %v743_v36 = vmul.f32 %v3073_v34, %v3071_v33  ;;  %v5690_v33 = vld [vmem:[#allocation42_spill] sm:$0xff]  ;;  %v5691_v34 = vld [vmem:[#allocation43_spill] sm:$0xff] }
 0x244   :  { %v742_v39 = vmul.f32 %v3075_v35, %v3895_v11  ;;  %v3077_v41 = vpop.eup %3076  ;;  %v5680_v11 = vld [vmem:[#allocation34_spill] sm:$0xff] }
 0x245   :  { %5687 = vst [vmem:[#allocation34_spill] sm:$0xff] %v4173_v29 }
 0x246   :  { %v4131_v40 = vadd.f32 %v743_v36, %v742_v39  ;;  %v5692_v36 = vsub.s32 2, %v3796_v49  ;;  %v5694_v39 = vld [vmem:[#allocation44_spill] sm:$0xff]  ;;  %v5701_v49 = vld [vmem:[#allocation51_spill] sm:$0xff] }
 0x248   :  { %3078 = vtanh.f32 %v4131_v40  ;;  %v4182_v38 = vrot.slane %v812_v45, %v5692_v36 }
 0x24a   :  { %5693 = vst [vmem:[#allocation35_spill] sm:$0xff] %v4182_v38 }
 0x252   :  { %v3079_v42 = vpop.eup %3078 }
 0x253   :  { %v746_v43 = vmul.f32 %v3079_v42, %v3077_v41  ;;  %v5695_v41 = vld [vmem:[#allocation45_spill] sm:$0xff]  ;;  %v5696_v42 = vld [vmem:[#allocation46_spill] sm:$0xff] }
 0x255   :  { %v4134_v44 = vpack.c.bf16 %v746_v43, %v746_v43  ;;  %v5697_v43 = vld [vmem:[#allocation47_spill] sm:$0xff] }
 0x257   :  { %1298 = vmatmul.mubr.bf16.vlgmr.msra.gmra.mrb[28].mxu0 %v4134_v44  ;;  %1339 = vmatmul.mubr.bf16.vlgmr.msra.gmra.mrb[28].mxu1 %v4134_v44 }
 0x258   :  { %1377 = vmatpush1.bf16.msra.mxu0 %v3898_v1  ;;  %1418 = vmatpush1.bf16.msra.mxu1 %v3900_v10 }
 0x259   :  { %1378 = vmatprep.subr.bf16.mxu0 %v3904_v63  ;;  %1419 = vmatprep.subr.bf16.mxu1 %v3906_v0 }
 0x25c   :  { %1379 = vmatpush1.bf16.msra.mxu0 %v3912_v8  ;;  %1420 = vmatpush1.bf16.msra.mxu1 %v3914_v54 }
 0x25d   :  { %1380 = vmatprep.subr.bf16.mxu0 %v3918_v37  ;;  %1421 = vmatprep.subr.bf16.mxu1 %v3920_v56 }
 0x260   :  { %1381 = vmatpush1.bf16.msra.mxu0 %v3924_v57  ;;  %1422 = vmatpush1.bf16.msra.mxu1 %v3926_v59 }
 0x261   :  { %1382 = vmatprep.subr.bf16.mxu0 %v3930_v58  ;;  %1423 = vmatprep.subr.bf16.mxu1 %v3932_v60 }
 0x264   :  { %1383 = vmatpush1.bf16.msra.mxu0 %v3936_v51  ;;  %1424 = vmatpush1.bf16.msra.mxu1 %v3938_v52 }
 0x265   :  { %1384 = vmatprep.subr.bf16.mxu0 %v5680_v11  ;;  %1425 = vmatprep.subr.bf16.mxu1 %v5681_v50 }
 0x266   :  { %v1188_v9 = vpop.f32.mrb[24].mxu0  ;;  %v1229_v12 = vpop.f32.mrb[24].mxu1 }
 0x267   :  { %v1189_v13 = vadd.f32 %v1188_v9, %v4155_v4  ;;  %v1190_v14 = vpop.f32.mrb[25].mxu0  ;;  %v1231_v15 = vpop.f32.mrb[25].mxu1  ;;  %v1230_v6 = vadd.f32 %v1229_v12, %v4182_v38  ;;  %v5698_v9 = vld [vmem:[#allocation48_spill] sm:$0xff]  ;;  %v5704_v12 = vld [vmem:[#allocation54_spill] sm:$0xff] }
 0x268   :  { %v1191_v16 = vadd.f32 %v1190_v14, %v4161_v7  ;;  %v1192_v17 = vpop.f32.mrb[26].mxu0  ;;  %v1233_v18 = vpop.f32.mrb[26].mxu1  ;;  %1385 = vmatpush1.bf16.msra.mxu0 %v5682_v19  ;;  %1426 = vmatpush1.bf16.msra.mxu1 %v5683_v20  ;;  %v1232_v35 = vadd.f32 %v1231_v15, %v4173_v29  ;;  %v5700_v15 = vld [vmem:[#allocation50_spill] sm:$0xff] }
 0x269   :  { %v2846_v22 = vmul.f32 -1.442695, %v1189_v13  ;;  %v1193_v23 = vpop.f32.mrb[27].mxu0  ;;  %v1234_v24 = vpop.f32.mrb[27].mxu1  ;;  %1386 = vmatprep.subr.bf16.mxu0 %v5684_v25  ;;  %1427 = vmatprep.subr.bf16.mxu1 %v5685_v26  ;;  %v5699_v13 = vld [vmem:[#allocation49_spill] sm:$0xff]  ;;  %v5702_v18 = vld [vmem:[#allocation52_spill] sm:$0xff] }
 0x26a   :  { %v2847_v27 = vmul.f32 -1.442695, %v1191_v16  ;;  %v2848_v2 = vmul.f32 -1.442695, %v1232_v35  ;;  %v5705_v23 = vld [vmem:[#allocation55_spill] sm:$0xff]  ;;  %v5706_v24 = vld [vmem:[#allocation56_spill] sm:$0xff] }
 0x26b   :  { %3080 = vpow2.f32 %v2846_v22  ;;  %v5703_v22 = vld [vmem:[#allocation53_spill] sm:$0xff]  ;;  %v5709_v35 = vld [vmem:[#allocation59_spill] sm:$0xff] }
 0x26c   :  { %3082 = vpow2.f32 %v2847_v27  ;;  %1387 = vmatpush1.bf16.msra.mxu0 %v5688_v31  ;;  %1428 = vmatpush1.bf16.msra.mxu1 %v5689_v32  ;;  %v5707_v27 = vld [vmem:[#allocation57_spill] sm:$0xff] }
 0x26d   :  { %1388 = vmatprep.subr.bf16.mxu0 %v5690_v33  ;;  %1429 = vmatprep.subr.bf16.mxu1 %v5691_v34  ;;  %3084 = vpow2.f32 %v2848_v2  ;;  %v5710_v2 = vld [vmem:[#allocation60_spill] sm:$0xff] }
 0x26e   :  { %3086 = vtanh.f32 %v1230_v6  ;;  %v5711_v6 = vld [vmem:[#allocation61_spill] sm:$0xff] }
 0x270   :  { %1389 = vmatpush1.bf16.msra.mxu0 %v5694_v39  ;;  %1430 = vmatpush1.bf16.msra.mxu1 %v5695_v41 }
 0x271   :  { %1390 = vmatprep.subr.bf16.mxu0 %v5696_v42  ;;  %1431 = vmatprep.subr.bf16.mxu1 %v5697_v43 }
 0x274   :  { %1391 = vmatpush1.bf16.msra.mxu0 %v5698_v9  ;;  %1432 = vmatpush1.bf16.msra.mxu1 %v5699_v13 }
 0x275   :  { %v3081_v14 = vpop.eup %3080  ;;  %1392 = vmatprep.subr.bf16.mxu0 %v5700_v15  ;;  %1433 = vmatprep.subr.bf16.mxu1 %v5701_v49 }
 0x276   :  { %v3083_v45 = vpop.eup %3082  ;;  %v1239_v16 = vadd.f32 1.0, %v3081_v14 }
 0x277   :  { %v1245_v17 = vadd.f32 1.0, %v3083_v45  ;;  %v3085_v36 = vpop.eup %3084  ;;  %v5712_v45 = vld [vmem:[#allocation62_spill] sm:$0xff] }
 0x278   :  { %3088 = vrcp.f32 %v1239_v16  ;;  %1393 = vmatpush1.bf16.msra.mxu0 %v5702_v18  ;;  %1434 = vmatpush1.bf16.msra.mxu1 %v5703_v22  ;;  %v3087_v14 = vpop.eup %3086  ;;  %v5713_v16 = vld [vmem:[#allocation63_spill] sm:$0xff] }
 0x279   :  { %3090 = vrcp.f32 %v1245_v17  ;;  %1394 = vmatprep.subr.bf16.mxu0 %v5704_v12  ;;  %1435 = vmatprep.subr.bf16.mxu1 %v5705_v23  ;;  %v5717_v18 = vld [vmem:[#allocation67_spill] sm:$0xff] }
 0x27c   :  { %1395 = vmatpush1.bf16.msra.mxu0 %v5706_v24  ;;  %1436 = vmatpush1.bf16.msra.mxu1 %v5707_v27  ;;  %v1252_v24 = vadd.f32 1.0, %v3085_v36  ;;  %v5714_v27 = vld [vmem:[#allocation64_spill] sm:$0xff] }
 0x27d   :  { %1396 = vmatprep.subr.bf16.mxu0 %v5708_v28  ;;  %1437 = vmatprep.subr.bf16.mxu1 %v5709_v35  ;;  %v5715_v28 = vld [vmem:[#allocation65_spill] sm:$0xff]  ;;  %v5716_v35 = vld [vmem:[#allocation66_spill] sm:$0xff]  ;;  %v5722_v36 = vld [vmem:[#allocation72_spill] sm:$0xff] }
 0x27e   :  { %3092 = vrcp.f32 %v1252_v24 }
 0x280   :  { %1397 = vmatpush1.bf16.msra.mxu0 %v5710_v2  ;;  %1438 = vmatpush1.bf16.msra.mxu1 %v5711_v6 }
 0x281   :  { %1398 = vmatprep.subr.bf16.mxu0 %v5712_v45  ;;  %1439 = vmatprep.subr.bf16.mxu1 %v5713_v16  ;;  %v5718_v45 = vld [vmem:[#allocation68_spill] sm:$0xff]  ;;  %v5719_v16 = vld [vmem:[#allocation69_spill] sm:$0xff] }
 0x282   :  { %v3089_v17 = vpop.eup %3088 }
 0x283   :  { %v3091_v23 = vpop.eup %3090  ;;  %v1256_v12 = vmul.f32 %v3089_v17, %v3087_v14  ;;  %v5720_v14 = vld [vmem:[#allocation70_spill] sm:$0xff] }
 0x284   :  { %v1255_v22 = vmul.f32 0.0, %v3091_v23  ;;  %1399 = vmatpush1.bf16.msra.mxu0 %v5714_v27  ;;  %1440 = vmatpush1.bf16.msra.mxu1 %v5715_v28  ;;  %v5721_v23 = vld [vmem:[#allocation71_spill] sm:$0xff] }
 0x285   :  { %1400 = vmatprep.subr.bf16.mxu0 %v5716_v35  ;;  %1441 = vmatprep.subr.bf16.mxu1 %v5717_v18 }
 0x286   :  { %v4209_v2 = vadd.f32 %v1256_v12, %v1255_v22  ;;  %v5723_v12 = vld [vmem:[#allocation79_spill] sm:$0xff] }
 0x288   :  { %3094 = vtanh.f32 %v4209_v2  ;;  %1401 = vmatpush1.bf16.msra.mxu0 %v5718_v45  ;;  %1442 = vmatpush1.bf16.msra.mxu1 %v5719_v16  ;;  %v3093_v22 = vpop.eup %3092 }
 0x289   :  { %1402 = vmatprep.subr.bf16.mxu0 %v5720_v14  ;;  %1443 = vmatprep.subr.bf16.mxu1 %v5721_v23 }
 0x28c   :  { %1403 = vmatpush1.bf16.msra.mxu0 %v5722_v36  ;;  %1444 = vmatpush1.bf16.msra.mxu1 %v4058_v3  ;;  %v4226_v36 = vld [vmem:[#allocation4 + $0x4] ss:$16 sps:$4 sm:$0xff]  }
 0x28d   :  { %1404 = vmatprep.subr.bf16.mxu0 %v4062_v21  ;;  %1445 = vmatprep.subr.bf16.mxu1 %v4064_v48  ;;  %5724 = vst [vmem:[#allocation36_spill] sm:$0xff] %v4226_v36  ;;  %v4229_v48 = vld [vmem:[#allocation4 + $0xc] ss:$16 sps:$4 sm:$0xff]  }
 0x28e   :  { %5725 = vst [vmem:[#allocation37_spill] sm:$0xff] %v4229_v48 }
 0x290   :  { %1405 = vmatpush1.bf16.msra.mxu0 %v4068_v53  ;;  %1446 = vmatpush1.bf16.msra.mxu1 %v4070_v5  ;;  %v5759_v5 = vld [vmem:[#allocation13_spill] sm:$0xff] }
 0x291   :  { %1406 = vmatprep.subr.bf16.mxu0 %v4074_v55  ;;  %1447 = vmatprep.subr.bf16.mxu1 %v5723_v12  ;;  %v5758_v12 = vld [vmem:[#allocation12_spill] sm:$0xff] }
 0x292   :  { %v3095_v24 = vpop.eup %3094 }
 0x293   :  { %v1259_v17 = vmul.f32 %v3095_v24, %v3093_v22  ;;  %v4234_v22 = vld [vmem:[#allocation4] ss:$16 sps:$4 sm:$0xff]   ;;  %v4237_v24 = vld [vmem:[#allocation4 + $0x8] ss:$16 sps:$4 sm:$0xff]  }
 0x294   :  { %1407 = vmatpush1.bf16.msra.mxu0 %v4080_v62  ;;  %1448 = vmatpush1.bf16.msra.mxu1 %v4082_v30  ;;  %5726 = vst [vmem:[#allocation38_spill] sm:$0xff] %v4234_v22  ;;  %5727 = vst [vmem:[#allocation39_spill] sm:$0xff] %v4237_v24 }
 0x295   :  { %v1375_v3 = vpack.c.bf16 %v1259_v17, %v1259_v17  ;;  %1487 = vmatprep.subr.bf16.mxu0 %v4226_v36  ;;  %1528 = vmatprep.subr.bf16.mxu1 %v4229_v48  ;;  %v4240_v17 = vld [vmem:[#allocation4 + $0x24] ss:$16 sps:$4 sm:$0xff]   ;;  %v4243_v36 = vld [vmem:[#allocation4 + $0x2c] ss:$16 sps:$4 sm:$0xff]  }
 0x296   :  { %5728 = vst [vmem:[#allocation40_spill] sm:$0xff] %v4240_v17  ;;  %5729 = vst [vmem:[#allocation41_spill] sm:$0xff] %v4243_v36  ;;  %v5757_v48 = vld [vmem:[#allocation11_spill] sm:$0xff] }
 0x297   :  { %1408 = vmatprep.mubr.bf16.mxu0 %v1375_v3  ;;  %1449 = vmatprep.mubr.bf16.mxu1 %v1375_v3  ;;  %v4248_v3 = vld [vmem:[#allocation4 + $0x20] ss:$16 sps:$4 sm:$0xff]  }
 0x298   :  { %1409 = vmatmul.mubr.bf16.vlgmr.msra.gmra.mrb[32].mxu0 %v4134_v44  ;;  %1450 = vmatmul.mubr.bf16.vlgmr.msra.gmra.mrb[32].mxu1 %v4134_v44  ;;  %5730 = vst [vmem:[#allocation42_spill] sm:$0xff] %v4248_v3  ;;  %v4251_v44 = vld [vmem:[#allocation4 + $0x28] ss:$16 sps:$4 sm:$0xff]  }
 0x299   :  { %1488 = vmatpush1.bf16.msra.mxu0 %v4234_v22  ;;  %1529 = vmatpush1.bf16.msra.mxu1 %v4237_v24  ;;  %5731 = vst [vmem:[#allocation43_spill] sm:$0xff] %v4251_v44  ;;  %v4254_v24 = vld [vmem:[#allocation4 + $0x44] ss:$16 sps:$4 sm:$0xff]  }
 0x29a   :  { %1489 = vmatprep.subr.bf16.mxu0 %v4240_v17  ;;  %1530 = vmatprep.subr.bf16.mxu1 %v4243_v36  ;;  %5732 = vst [vmem:[#allocation44_spill] sm:$0xff] %v4254_v24  ;;  %v4257_v17 = vld [vmem:[#allocation4 + $0x4c] ss:$16 sps:$4 sm:$0xff]   ;;  %v4260_v36 = vld [vmem:[#allocation4 + $0x40] ss:$16 sps:$4 sm:$0xff]  }
 0x29b   :  { %1519 = vmatprep.mubr.bf16.mxu0 %v5675_v61  ;;  %1560 = vmatprep.mubr.bf16.mxu1 %v5675_v61  ;;  %5733 = vst [vmem:[#allocation45_spill] sm:$0xff] %v4257_v17  ;;  %5734 = vst [vmem:[#allocation46_spill] sm:$0xff] %v4260_v36  ;;  %v4263_v61 = vld [vmem:[#allocation4 + $0x48] ss:$16 sps:$4 sm:$0xff]   ;;  %v5756_v22 = vld [vmem:[#allocation10_spill] sm:$0xff] }
 0x29c   :  { %5735 = vst [vmem:[#allocation47_spill] sm:$0xff] %v4263_v61 }
 0x29d   :  { %1490 = vmatpush1.bf16.msra.mxu0 %v4248_v3  ;;  %1531 = vmatpush1.bf16.msra.mxu1 %v4251_v44  ;;  %v4266_v3 = vld [vmem:[#allocation4 + $0x64] ss:$16 sps:$4 sm:$0xff]   ;;  %v4269_v44 = vld [vmem:[#allocation4 + $0x6c] ss:$16 sps:$4 sm:$0xff]  }
 0x29e   :  { %1491 = vmatprep.subr.bf16.mxu0 %v4254_v24  ;;  %1532 = vmatprep.subr.bf16.mxu1 %v4257_v17  ;;  %5736 = vst [vmem:[#allocation48_spill] sm:$0xff] %v4266_v3  ;;  %5737 = vst [vmem:[#allocation49_spill] sm:$0xff] %v4269_v44  ;;  %v4272_v24 = vld [vmem:[#allocation4 + $0x60] ss:$16 sps:$4 sm:$0xff]   ;;  %v4275_v17 = vld [vmem:[#allocation4 + $0x68] ss:$16 sps:$4 sm:$0xff]  }
 0x29f   :  { %5738 = vst [vmem:[#allocation50_spill] sm:$0xff] %v4272_v24  ;;  %5739 = vst [vmem:[#allocation51_spill] sm:$0xff] %v4275_v17 }
 0x2a1   :  { %1492 = vmatpush1.bf16.msra.mxu0 %v4260_v36  ;;  %1533 = vmatpush1.bf16.msra.mxu1 %v4263_v61  ;;  %v4278_v36 = vld [vmem:[#allocation4 + $0x84] ss:$16 sps:$4 sm:$0xff]   ;;  %v4281_v61 = vld [vmem:[#allocation4 + $0x8c] ss:$16 sps:$4 sm:$0xff]  }
 0x2a2   :  { %1493 = vmatprep.subr.bf16.mxu0 %v4266_v3  ;;  %1534 = vmatprep.subr.bf16.mxu1 %v4269_v44  ;;  %5740 = vst [vmem:[#allocation61_spill] sm:$0xff] %v4278_v36  ;;  %5741 = vst [vmem:[#allocation64_spill] sm:$0xff] %v4281_v61  ;;  %v4284_v3 = vld [vmem:[#allocation4 + $0x80] ss:$16 sps:$4 sm:$0xff]   ;;  %v4287_v44 = vld [vmem:[#allocation4 + $0x88] ss:$16 sps:$4 sm:$0xff]  }
 0x2a3   :  { %5742 = vst [vmem:[#allocation65_spill] sm:$0xff] %v4284_v3  ;;  %5743 = vst [vmem:[#allocation66_spill] sm:$0xff] %v4287_v44 }
 0x2a5   :  { %1494 = vmatpush1.bf16.msra.mxu0 %v4272_v24  ;;  %1535 = vmatpush1.bf16.msra.mxu1 %v4275_v17  ;;  %v4290_v24 = vld [vmem:[#allocation4 + $0xa4] ss:$16 sps:$4 sm:$0xff]   ;;  %v4293_v17 = vld [vmem:[#allocation4 + $0xac] ss:$16 sps:$4 sm:$0xff]  }
 0x2a6   :  { %1495 = vmatprep.subr.bf16.mxu0 %v4278_v36  ;;  %1536 = vmatprep.subr.bf16.mxu1 %v4281_v61  ;;  %5744 = vst [vmem:[#allocation67_spill] sm:$0xff] %v4290_v24  ;;  %5745 = vst [vmem:[#allocation84_spill] sm:$0xff] %v4293_v17  ;;  %v4296_v36 = vld [vmem:[#allocation4 + $0xa0] ss:$16 sps:$4 sm:$0xff]   ;;  %v4299_v61 = vld [vmem:[#allocation4 + $0xa8] ss:$16 sps:$4 sm:$0xff]  }
 0x2a7   :  { %5746 = vst [vmem:[#allocation85_spill] sm:$0xff] %v4296_v36  ;;  %5747 = vst [vmem:[#allocation86_spill] sm:$0xff] %v4299_v61 }
 0x2a9   :  { %1496 = vmatpush1.bf16.msra.mxu0 %v4284_v3  ;;  %1537 = vmatpush1.bf16.msra.mxu1 %v4287_v44  ;;  %v4302_v3 = vld [vmem:[#allocation4 + $0xc4] ss:$16 sps:$4 sm:$0xff]   ;;  %v4305_v44 = vld [vmem:[#allocation4 + $0xcc] ss:$16 sps:$4 sm:$0xff]  }
 0x2aa   :  { %1497 = vmatprep.subr.bf16.mxu0 %v4290_v24  ;;  %1538 = vmatprep.subr.bf16.mxu1 %v4293_v17  ;;  %5748 = vst [vmem:[#allocation87_spill] sm:$0xff] %v4302_v3  ;;  %5749 = vst [vmem:[#allocation88_spill] sm:$0xff] %v4305_v44  ;;  %v4308_v24 = vld [vmem:[#allocation4 + $0xc0] ss:$16 sps:$4 sm:$0xff]   ;;  %v4311_v17 = vld [vmem:[#allocation4 + $0xc8] ss:$16 sps:$4 sm:$0xff]  }
 0x2ab   :  { %5750 = vst [vmem:[#allocation89_spill] sm:$0xff] %v4308_v24  ;;  %5751 = vst [vmem:[#allocation90_spill] sm:$0xff] %v4311_v17 }
 0x2ad   :  { %1498 = vmatpush1.bf16.msra.mxu0 %v4296_v36  ;;  %1539 = vmatpush1.bf16.msra.mxu1 %v4299_v61  ;;  %v4314_v36 = vld [vmem:[#allocation4 + $0xe4] ss:$16 sps:$4 sm:$0xff]   ;;  %v4317_v61 = vld [vmem:[#allocation4 + $0xec] ss:$16 sps:$4 sm:$0xff]  }
 0x2ae   :  { %1499 = vmatprep.subr.bf16.mxu0 %v4302_v3  ;;  %1540 = vmatprep.subr.bf16.mxu1 %v4305_v44  ;;  %5752 = vst [vmem:[#allocation91_spill] sm:$0xff] %v4314_v36  ;;  %5753 = vst [vmem:[#allocation92_spill] sm:$0xff] %v4317_v61  ;;  %v4320_v3 = vld [vmem:[#allocation4 + $0xe0] ss:$16 sps:$4 sm:$0xff]   ;;  %v4323_v44 = vld [vmem:[#allocation4 + $0xe8] ss:$16 sps:$4 sm:$0xff]  }
 0x2af   :  { %5754 = vst [vmem:[#allocation93_spill] sm:$0xff] %v4320_v3  ;;  %5755 = vst [vmem:[#allocation94_spill] sm:$0xff] %v4323_v44 }
 0x2b1   :  { %1500 = vmatpush1.bf16.msra.mxu0 %v4308_v24  ;;  %1541 = vmatpush1.bf16.msra.mxu1 %v4311_v17 }
 0x2b2   :  { %1501 = vmatprep.subr.bf16.mxu0 %v4314_v36  ;;  %1542 = vmatprep.subr.bf16.mxu1 %v4317_v61 }
 0x2b5   :  { %1502 = vmatpush1.bf16.msra.mxu0 %v4320_v3  ;;  %1543 = vmatpush1.bf16.msra.mxu1 %v4323_v44 }
 0x2b6   :  { %1598 = vmatprep.subr.bf16.mxu0 %v3790_v46  ;;  %1639 = vmatprep.subr.bf16.mxu1 %v3792_v47 }
 0x32a   :  { %v1299_v17 = vpop.f32.mrb[28].mxu0  ;;  %v1340_v24 = vpop.f32.mrb[28].mxu1 }
 0x32b   :  { %v1347_v36 = vadd.f32 %v1299_v17, %v5756_v22  ;;  %v1349_v30 = vadd.f32 %v1340_v24, %v5757_v48  ;;  %v1301_v62 = vpop.f32.mrb[29].mxu0  ;;  %v1342_v61 = vpop.f32.mrb[29].mxu1 }
 0x32c   :  { %v1348_v55 = vadd.f32 %v1301_v62, %v5758_v12  ;;  %v1350_v3 = vadd.f32 %v1342_v61, %v5759_v5  ;;  %v1303_v53 = vpop.f32.mrb[30].mxu0  ;;  %v1344_v21 = vpop.f32.mrb[30].mxu1 }
 0x32d   :  { %v2849_v23 = vmul.f32 -1.442695, %v1347_v36  ;;  %v1304_v44 = vpop.f32.mrb[31].mxu0  ;;  %v1345_v14 = vpop.f32.mrb[31].mxu1 }
 0x32e   :  { %v2850_v46 = vmul.f32 -1.442695, %v1348_v55  ;;  %v2851_v47 = vmul.f32 -1.442695, %v1350_v3  ;;  %v5771_v44 = vld [vmem:[#allocation68_spill] sm:$0xff] }
 0x32f   :  { %3096 = vpow2.f32 %v2849_v23 }
 0x330   :  { %3098 = vpow2.f32 %v2850_v46  ;;  %v5772_v46 = vld [vmem:[#allocation69_spill] sm:$0xff] }
 0x331   :  { %3100 = vpow2.f32 %v2851_v47  ;;  %v5773_v47 = vld [vmem:[#allocation70_spill] sm:$0xff] }
 0x332   :  { %3102 = vtanh.f32 %v1349_v30 }
 0x339   :  { %v3097_v16 = vpop.eup %3096 }
 0x33a   :  { %v3099_v45 = vpop.eup %3098  ;;  %v1354_v22 = vadd.f32 1.0, %v3097_v16 }
 0x33b   :  { %v1360_v48 = vadd.f32 1.0, %v3099_v45  ;;  %v3101_v62 = vpop.eup %3100 }
 0x33c   :  { %3104 = vrcp.f32 %v1354_v22  ;;  %v3103_v12 = vpop.eup %3102  ;;  %v1367_v5 = vadd.f32 1.0, %v3101_v62  ;;  %v5774_v22 = vld [vmem:[#allocation71_spill] sm:$0xff]  ;;  %v5781_v62 = vld [vmem:[#allocation78_spill] sm:$0xff] }
 0x33d   :  { %3106 = vrcp.f32 %v1360_v48  ;;  %v5780_v48 = vld [vmem:[#allocation77_spill] sm:$0xff] }
 0x33e   :  { %3108 = vrcp.f32 %v1367_v5  ;;  %v5784_v5 = vld [vmem:[#allocation81_spill] sm:$0xff] }
 0x346   :  { %v3105_v61 = vpop.eup %3104 }
 0x347   :  { %v3107_v53 = vpop.eup %3106  ;;  %v1371_v21 = vmul.f32 %v3105_v61, %v3103_v12  ;;  %v5782_v12 = vld [vmem:[#allocation79_spill] sm:$0xff] }
 0x348   :  { %v1370_v14 = vmul.f32 %v3107_v53, %v4131_v40  ;;  %v3109_v23 = vpop.eup %3108 }
 0x34a   :  { %v4333_v55 = vadd.f32 %v1371_v21, %v1370_v14  ;;  %v5783_v21 = vld [vmem:[#allocation80_spill] sm:$0xff] }
 0x34c   :  { %3110 = vtanh.f32 %v4333_v55 }
 0x356   :  { %v3111_v16 = vpop.eup %3110 }
 0x357   :  { %v1374_v36 = vmul.f32 %v3111_v16, %v3109_v23  ;;  %v5785_v23 = vld [vmem:[#allocation36_spill] sm:$0xff]  ;;  %v5786_v16 = vld [vmem:[#allocation37_spill] sm:$0xff] }
 0x359   :  { %v4336_v30 = vpack.c.bf16 %v1374_v36, %v1374_v36 }
 0x35b   :  { %1520 = vmatmul.mubr.bf16.vlgmr.msra.gmra.mrb[36].mxu0 %v4336_v30  ;;  %1561 = vmatmul.mubr.bf16.vlgmr.msra.gmra.mrb[36].mxu1 %v4336_v30 }
 0x35c   :  { %1599 = vmatpush1.bf16.msra.mxu0 %v3898_v1  ;;  %1640 = vmatpush1.bf16.msra.mxu1 %v3900_v10 }
 0x35d   :  { %1600 = vmatprep.subr.bf16.mxu0 %v3904_v63  ;;  %1641 = vmatprep.subr.bf16.mxu1 %v3906_v0 }
 0x360   :  { %1601 = vmatpush1.bf16.msra.mxu0 %v3912_v8  ;;  %1642 = vmatpush1.bf16.msra.mxu1 %v3914_v54 }
 0x361   :  { %1602 = vmatprep.subr.bf16.mxu0 %v3918_v37  ;;  %1643 = vmatprep.subr.bf16.mxu1 %v3920_v56 }
 0x364   :  { %1603 = vmatpush1.bf16.msra.mxu0 %v3924_v57  ;;  %1644 = vmatpush1.bf16.msra.mxu1 %v3926_v59 }
 0x365   :  { %1604 = vmatprep.subr.bf16.mxu0 %v3930_v58  ;;  %1645 = vmatprep.subr.bf16.mxu1 %v3932_v60 }
 0x368   :  { %1605 = vmatpush1.bf16.msra.mxu0 %v3936_v51  ;;  %1646 = vmatpush1.bf16.msra.mxu1 %v3938_v52 }
 0x369   :  { %1606 = vmatprep.subr.bf16.mxu0 %v5680_v11  ;;  %1647 = vmatprep.subr.bf16.mxu1 %v5681_v50 }
 0x36b   :  { %v1410_v1 = vpop.f32.mrb[32].mxu0  ;;  %v1451_v10 = vpop.f32.mrb[32].mxu1 }
 0x36c   :  { %v1411_v63 = vadd.f32 %v1410_v1, %v4155_v4  ;;  %v1412_v0 = vpop.f32.mrb[33].mxu0  ;;  %v1453_v8 = vpop.f32.mrb[33].mxu1  ;;  %1607 = vmatpush1.bf16.msra.mxu0 %v5682_v19  ;;  %1648 = vmatpush1.bf16.msra.mxu1 %v5683_v20  ;;  %v1452_v40 = vadd.f32 %v1451_v10, %v4182_v38  ;;  %v5787_v1 = vld [vmem:[#allocation38_spill] sm:$0xff]  ;;  %v5788_v10 = vld [vmem:[#allocation39_spill] sm:$0xff] }
 0x36d   :  { %v1413_v54 = vadd.f32 %v1412_v0, %v4161_v7  ;;  %v1414_v37 = vpop.f32.mrb[34].mxu0  ;;  %v1455_v56 = vpop.f32.mrb[34].mxu1  ;;  %1608 = vmatprep.subr.bf16.mxu0 %v5684_v25  ;;  %1649 = vmatprep.subr.bf16.mxu1 %v5685_v26  ;;  %v1454_v51 = vadd.f32 %v1453_v8, %v4173_v29  ;;  %v5760_v25 = vld [vmem:[#allocation52_spill] sm:$0xff]  ;;  %v5761_v26 = vld [vmem:[#allocation53_spill] sm:$0xff]  ;;  %v5791_v8 = vmov 0  }
 0x36e   :  { %v2852_v57 = vmul.f32 -1.442695, %v1411_v63  ;;  %v1415_v59 = vpop.f32.mrb[35].mxu0  ;;  %v1456_v58 = vpop.f32.mrb[35].mxu1  ;;  %v5789_v63 = vld [vmem:[#allocation40_spill] sm:$0xff]  ;;  %v5790_v0 = vld [vmem:[#allocation41_spill] sm:$0xff] }
 0x36f   :  { %v2853_v60 = vmul.f32 -1.442695, %v1413_v54  ;;  %v2854_v52 = vmul.f32 -1.442695, %v1454_v51  ;;  %v5792_v54 = vld [vmem:[#allocation42_spill] sm:$0xff]  ;;  %v5793_v37 = vld [vmem:[#allocation43_spill] sm:$0xff] }
 0x370   :  { %3112 = vpow2.f32 %v2852_v57  ;;  %1609 = vmatpush1.bf16.msra.mxu0 %v5688_v31  ;;  %1650 = vmatpush1.bf16.msra.mxu1 %v5689_v32  ;;  %v5762_v31 = vld [vmem:[#allocation54_spill] sm:$0xff]  ;;  %v5763_v32 = vld [vmem:[#allocation55_spill] sm:$0xff]  ;;  %v5794_v56 = vld [vmem:[#allocation44_spill] sm:$0xff] }
 0x371   :  { %3114 = vpow2.f32 %v2853_v60  ;;  %1610 = vmatprep.subr.bf16.mxu0 %v5690_v33  ;;  %1651 = vmatprep.subr.bf16.mxu1 %v5691_v34  ;;  %v5764_v33 = vld [vmem:[#allocation56_spill] sm:$0xff]  ;;  %v5765_v34 = vld [vmem:[#allocation57_spill] sm:$0xff]  ;;  %v5797_v59 = vld [vmem:[#allocation47_spill] sm:$0xff] }
 0x372   :  { %3116 = vpow2.f32 %v2854_v52  ;;  %v5795_v57 = vld [vmem:[#allocation45_spill] sm:$0xff]  ;;  %v5798_v58 = vld [vmem:[#allocation48_spill] sm:$0xff]  ;;  %v5800_v51 = vld [vmem:[#allocation50_spill] sm:$0xff] }
 0x373   :  { %3118 = vtanh.f32 %v1452_v40  ;;  %v5799_v60 = vld [vmem:[#allocation49_spill] sm:$0xff]  ;;  %v5801_v52 = vld [vmem:[#allocation51_spill] sm:$0xff] }
 0x374   :  { %1611 = vmatpush1.bf16.msra.mxu0 %v5694_v39  ;;  %1652 = vmatpush1.bf16.msra.mxu1 %v5695_v41  ;;  %v5766_v39 = vld [vmem:[#allocation58_spill] sm:$0xff]  ;;  %v5767_v41 = vld [vmem:[#allocation59_spill] sm:$0xff]  ;;  %v5802_v40 = vld [vmem:[#allocation61_spill] sm:$0xff] }
 0x375   :  { %1612 = vmatprep.subr.bf16.mxu0 %v5696_v42  ;;  %1653 = vmatprep.subr.bf16.mxu1 %v5697_v43  ;;  %v5768_v42 = vld [vmem:[#allocation60_spill] sm:$0xff] }
 0x378   :  { %1613 = vmatpush1.bf16.msra.mxu0 %v5698_v9  ;;  %1654 = vmatpush1.bf16.msra.mxu1 %v5699_v13  ;;  %v5769_v9 = vld [vmem:[#allocation62_spill] sm:$0xff]  ;;  %v5770_v13 = vld [vmem:[#allocation63_spill] sm:$0xff] }
 0x379   :  { %1614 = vmatprep.subr.bf16.mxu0 %v5700_v15  ;;  %1655 = vmatprep.subr.bf16.mxu1 %v5701_v49 }
 0x37a   :  { %v3113_v11 = vpop.eup %3112 }
 0x37b   :  { %v3115_v50 = vpop.eup %3114  ;;  %v1461_v19 = vadd.f32 1.0, %v3113_v11  ;;  %v5803_v11 = vld [vmem:[#allocation64_spill] sm:$0xff] }
 0x37c   :  { %v1467_v20 = vadd.f32 1.0, %v3115_v50  ;;  %1615 = vmatpush1.bf16.msra.mxu0 %v5760_v25  ;;  %1656 = vmatpush1.bf16.msra.mxu1 %v5761_v26  ;;  %v3117_v43 = vpop.eup %3116  ;;  %v5804_v50 = vld [vmem:[#allocation65_spill] sm:$0xff]  ;;  %v5807_v25 = vld [vmem:[#allocation84_spill] sm:$0xff] }
 0x37d   :  { %3120 = vrcp.f32 %v1461_v19  ;;  %1616 = vmatprep.subr.bf16.mxu0 %v5762_v31  ;;  %1657 = vmatprep.subr.bf16.mxu1 %v5763_v32  ;;  %v3119_v15 = vpop.eup %3118  ;;  %v1474_v17 = vadd.f32 1.0, %v3117_v43  ;;  %v5805_v19 = vld [vmem:[#allocation66_spill] sm:$0xff]  ;;  %v5808_v26 = vld [vmem:[#allocation85_spill] sm:$0xff]  ;;  %v5810_v32 = vld [vmem:[#allocation87_spill] sm:$0xff] }
 0x37e   :  { %3122 = vrcp.f32 %v1467_v20  ;;  %v5806_v20 = vld [vmem:[#allocation67_spill] sm:$0xff]  ;;  %v5809_v31 = vld [vmem:[#allocation86_spill] sm:$0xff]  ;;  %v5816_v43 = vld [vmem:[#allocation93_spill] sm:$0xff] }
 0x37f   :  { %3124 = vrcp.f32 %v1474_v17 }
 0x380   :  { %1617 = vmatpush1.bf16.msra.mxu0 %v5764_v33  ;;  %1658 = vmatpush1.bf16.msra.mxu1 %v5765_v34  ;;  %v5811_v33 = vld [vmem:[#allocation88_spill] sm:$0xff]  ;;  %v5812_v34 = vld [vmem:[#allocation89_spill] sm:$0xff] }
 0x381   :  { %1618 = vmatprep.subr.bf16.mxu0 %v5766_v39  ;;  %1659 = vmatprep.subr.bf16.mxu1 %v5767_v41  ;;  %v5813_v39 = vld [vmem:[#allocation90_spill] sm:$0xff]  ;;  %v5814_v41 = vld [vmem:[#allocation91_spill] sm:$0xff] }
 0x384   :  { %1619 = vmatpush1.bf16.msra.mxu0 %v5768_v42  ;;  %1660 = vmatpush1.bf16.msra.mxu1 %v5711_v6  ;;  %v5815_v42 = vld [vmem:[#allocation92_spill] sm:$0xff] }
 0x385   :  { %1620 = vmatprep.subr.bf16.mxu0 %v5769_v9  ;;  %1661 = vmatprep.subr.bf16.mxu1 %v5770_v13  ;;  %v5817_v9 = vld [vmem:[#allocation94_spill] sm:$0xff] }
 0x386   :  { %v4446_v13 = vld [vmem:[#allocation6 + $0x4] ss:$16 sps:$4 sm:$0xff]  }
 0x387   :  { %v3121_v49 = vpop.eup %3120 }
 0x388   :  { %v3123_v45 = vpop.eup %3122  ;;  %v1478_v24 = vmul.f32 %v3121_v49, %v3119_v15  ;;  %1621 = vmatpush1.bf16.msra.mxu0 %v5714_v27  ;;  %1662 = vmatpush1.bf16.msra.mxu1 %v5715_v28  ;;  %v5775_v27 = vld [vmem:[#allocation72_spill] sm:$0xff]  ;;  %v5776_v28 = vld [vmem:[#allocation73_spill] sm:$0xff] }
 0x389   :  { %v1477_v3 = vmul.f32 %v3123_v45, %v4209_v2  ;;  %1622 = vmatprep.subr.bf16.mxu0 %v5716_v35  ;;  %1663 = vmatprep.subr.bf16.mxu1 %v5717_v18  ;;  %v5777_v35 = vld [vmem:[#allocation74_spill] sm:$0xff]  ;;  %v5778_v18 = vld [vmem:[#allocation75_spill] sm:$0xff]  ;;  %v5779_v2 = vld [vmem:[#allocation76_spill] sm:$0xff]  ;;  %v3125_v61 = vpop.eup %3124 }
 0x38a   :  { %v4449_v15 = vld [vmem:[#allocation6 + $0xc] ss:$16 sps:$4 sm:$0xff]  }
 0x38b   :  { %v4393_v6 = vadd.f32 %v1478_v24, %v1477_v3  ;;  %v5818_v24 = vld [vmem:[#allocation14_spill] sm:$0xff]  ;;  %v5819_v3 = vld [vmem:[#allocation15_spill] sm:$0xff] }
 0x38c   :  { %1623 = vmatpush1.bf16.msra.mxu0 %v5771_v44  ;;  %1664 = vmatpush1.bf16.msra.mxu1 %v5772_v46 }
 0x38d   :  { %1624 = vmatprep.subr.bf16.mxu0 %v5773_v47  ;;  %1665 = vmatprep.subr.bf16.mxu1 %v5774_v22  ;;  %3126 = vtanh.f32 %v4393_v6  ;;  %v5820_v22 = vld [vmem:[#allocation16_spill] sm:$0xff] }
 0x390   :  { %1625 = vmatpush1.bf16.msra.mxu0 %v5775_v27  ;;  %1666 = vmatpush1.bf16.msra.mxu1 %v5776_v28  ;;  %v5821_v28 = vld [vmem:[#allocation17_spill] sm:$0xff] }
 0x391   :  { %1626 = vmatprep.subr.bf16.mxu0 %v5777_v35  ;;  %1667 = vmatprep.subr.bf16.mxu1 %v5778_v18 }
 0x394   :  { %1627 = vmatpush1.bf16.msra.mxu0 %v5779_v2  ;;  %1668 = vmatpush1.bf16.msra.mxu1 %v5780_v48 }
 0x395   :  { %1628 = vmatprep.subr.bf16.mxu0 %v5781_v62  ;;  %1669 = vmatprep.subr.bf16.mxu1 %v5782_v12 }
 0x397   :  { %v3127_v53 = vpop.eup %3126 }
 0x398   :  { %1629 = vmatpush1.bf16.msra.mxu0 %v5783_v21  ;;  %1670 = vmatpush1.bf16.msra.mxu1 %v5784_v5  ;;  %v1481_v14 = vmul.f32 %v3127_v53, %v3125_v61 }
 0x399   :  { %1709 = vmatprep.subr.bf16.mxu0 %v5785_v23  ;;  %1750 = vmatprep.subr.bf16.mxu1 %v5786_v16 }
 0x39a   :  { %v1597_v36 = vpack.c.bf16 %v1481_v14, %v1481_v14 }
 0x39c   :  { %1630 = vmatprep.mubr.bf16.mxu0 %v1597_v36  ;;  %1671 = vmatprep.mubr.bf16.mxu1 %v1597_v36 }
 0x39d   :  { %1631 = vmatmul.mubr.bf16.vlgmr.msra.gmra.mrb[40].mxu0 %v4336_v30  ;;  %1672 = vmatmul.mubr.bf16.vlgmr.msra.gmra.mrb[40].mxu1 %v4336_v30  ;;  %v5796_v30 = vld [vmem:[#allocation46_spill] sm:$0xff] }
 0x39e   :  { %1710 = vmatpush1.bf16.msra.mxu0 %v5787_v1  ;;  %1751 = vmatpush1.bf16.msra.mxu1 %v5788_v10 }
 0x39f   :  { %1711 = vmatprep.subr.bf16.mxu0 %v5789_v63  ;;  %1752 = vmatprep.subr.bf16.mxu1 %v5790_v0 }
 0x3a0   :  { %1741 = vmatprep.mubr.bf16.mxu0 %v5791_v8  ;;  %1782 = vmatprep.mubr.bf16.mxu1 %v5791_v8 }
 0x3a2   :  { %1712 = vmatpush1.bf16.msra.mxu0 %v5792_v54  ;;  %1753 = vmatpush1.bf16.msra.mxu1 %v5793_v37 }
 0x3a3   :  { %1713 = vmatprep.subr.bf16.mxu0 %v5794_v56  ;;  %1754 = vmatprep.subr.bf16.mxu1 %v5795_v57 }
 0x3a6   :  { %1714 = vmatpush1.bf16.msra.mxu0 %v5796_v30  ;;  %1755 = vmatpush1.bf16.msra.mxu1 %v5797_v59 }
 0x3a7   :  { %1715 = vmatprep.subr.bf16.mxu0 %v5798_v58  ;;  %1756 = vmatprep.subr.bf16.mxu1 %v5799_v60 }
 0x3aa   :  { %1716 = vmatpush1.bf16.msra.mxu0 %v5800_v51  ;;  %1757 = vmatpush1.bf16.msra.mxu1 %v5801_v52 }
 0x3ab   :  { %1717 = vmatprep.subr.bf16.mxu0 %v5802_v40  ;;  %1758 = vmatprep.subr.bf16.mxu1 %v5803_v11 }
 0x3ae   :  { %1718 = vmatpush1.bf16.msra.mxu0 %v5804_v50  ;;  %1759 = vmatpush1.bf16.msra.mxu1 %v5805_v19 }
 0x3af   :  { %1719 = vmatprep.subr.bf16.mxu0 %v5806_v20  ;;  %1760 = vmatprep.subr.bf16.mxu1 %v5807_v25 }
 0x3b2   :  { %1720 = vmatpush1.bf16.msra.mxu0 %v5808_v26  ;;  %1761 = vmatpush1.bf16.msra.mxu1 %v5809_v31 }
 0x3b3   :  { %1721 = vmatprep.subr.bf16.mxu0 %v5810_v32  ;;  %1762 = vmatprep.subr.bf16.mxu1 %v5811_v33 }
 0x3b6   :  { %1722 = vmatpush1.bf16.msra.mxu0 %v5812_v34  ;;  %1763 = vmatpush1.bf16.msra.mxu1 %v5813_v39 }
 0x3b7   :  { %1723 = vmatprep.subr.bf16.mxu0 %v5814_v41  ;;  %1764 = vmatprep.subr.bf16.mxu1 %v5815_v42 }
 0x3ba   :  { %1724 = vmatpush1.bf16.msra.mxu0 %v5816_v43  ;;  %1765 = vmatpush1.bf16.msra.mxu1 %v5817_v9 }
 0x3bb   :  { %1820 = vmatprep.subr.bf16.mxu0 %v4446_v13  ;;  %1861 = vmatprep.subr.bf16.mxu1 %v4449_v15 }
 0x42e   :  { %v1521_v49 = vpop.f32.mrb[36].mxu0  ;;  %v1562_v45 = vpop.f32.mrb[36].mxu1 }
 0x42f   :  { %v1569_v17 = vadd.f32 %v1521_v49, %v5818_v24  ;;  %v1571_v44 = vadd.f32 %v1562_v45, %v5819_v3  ;;  %v1523_v46 = vpop.f32.mrb[37].mxu0  ;;  %v1564_v47 = vpop.f32.mrb[37].mxu1 }
 0x430   :  { %v1570_v27 = vadd.f32 %v1523_v46, %v5820_v22  ;;  %v1572_v35 = vadd.f32 %v1564_v47, %v5821_v28  ;;  %v1525_v18 = vpop.f32.mrb[38].mxu0  ;;  %v1566_v2 = vpop.f32.mrb[38].mxu1 }
 0x431   :  { %v2855_v48 = vmul.f32 -1.442695, %v1569_v17  ;;  %v1526_v62 = vpop.f32.mrb[39].mxu0  ;;  %v1567_v12 = vpop.f32.mrb[39].mxu1  ;;  %v4464_v18 = vld [vmem:[#allocation6] ss:$16 sps:$4 sm:$0xff]  }
 0x432   :  { %v2856_v61 = vmul.f32 -1.442695, %v1570_v27  ;;  %v2857_v53 = vmul.f32 -1.442695, %v1572_v35  ;;  %v4467_v2 = vld [vmem:[#allocation6 + $0x8] ss:$16 sps:$4 sm:$0xff]  }
 0x433   :  { %3128 = vpow2.f32 %v2855_v48  ;;  %v4473_v48 = vld [vmem:[#allocation6 + $0x2c] ss:$16 sps:$4 sm:$0xff]   ;;  %v4476_v62 = vld [vmem:[#allocation6 + $0x20] ss:$16 sps:$4 sm:$0xff]   ;;  %v4479_v12 = vld [vmem:[#allocation6 + $0x28] ss:$16 sps:$4 sm:$0xff]  }
 0x434   :  { %3130 = vpow2.f32 %v2856_v61  ;;  %v4482_v61 = vld [vmem:[#allocation6 + $0x44] ss:$16 sps:$4 sm:$0xff]  }
 0x435   :  { %3132 = vpow2.f32 %v2857_v53  ;;  %v4485_v53 = vld [vmem:[#allocation6 + $0x4c] ss:$16 sps:$4 sm:$0xff]  }
 0x436   :  { %3134 = vtanh.f32 %v1571_v44  ;;  %5822 = vst [vmem:[#allocation10_spill] sm:$0xff] %v4485_v53 }
 0x43d   :  { %v3129_v21 = vpop.eup %3128 }
 0x43e   :  { %v3131_v5 = vpop.eup %3130  ;;  %v1576_v14 = vadd.f32 1.0, %v3129_v21  ;;  %v4488_v21 = vld [vmem:[#allocation6 + $0x40] ss:$16 sps:$4 sm:$0xff]  }
 0x43f   :  { %v1582_v36 = vadd.f32 1.0, %v3131_v5  ;;  %v3133_v49 = vpop.eup %3132  ;;  %5823 = vst [vmem:[#allocation11_spill] sm:$0xff] %v4488_v21  ;;  %v4491_v5 = vld [vmem:[#allocation6 + $0x48] ss:$16 sps:$4 sm:$0xff]  }
 0x440   :  { %3136 = vrcp.f32 %v1576_v14  ;;  %v3135_v45 = vpop.eup %3134  ;;  %v1589_v17 = vadd.f32 1.0, %v3133_v49  ;;  %5824 = vst [vmem:[#allocation12_spill] sm:$0xff] %v4491_v5  ;;  %v4494_v14 = vld [vmem:[#allocation6 + $0x64] ss:$16 sps:$4 sm:$0xff]   ;;  %v4500_v49 = vld [vmem:[#allocation6 + $0x60] ss:$16 sps:$4 sm:$0xff]  }
 0x441   :  { %3138 = vrcp.f32 %v1582_v36  ;;  %5825 = vst [vmem:[#allocation13_spill] sm:$0xff] %v4494_v14  ;;  %v4497_v36 = vld [vmem:[#allocation6 + $0x6c] ss:$16 sps:$4 sm:$0xff]   ;;  %5827 = vst [vmem:[#allocation53_spill] sm:$0xff] %v4500_v49 }
 0x442   :  { %3140 = vrcp.f32 %v1589_v17  ;;  %5826 = vst [vmem:[#allocation52_spill] sm:$0xff] %v4497_v36 }
 0x44a   :  { %v3137_v24 = vpop.eup %3136 }
 0x44b   :  { %v3139_v3 = vpop.eup %3138  ;;  %v1593_v46 = vmul.f32 %v3137_v24, %v3135_v45  ;;  %v4503_v45 = vld [vmem:[#allocation6 + $0x68] ss:$16 sps:$4 sm:$0xff]   ;;  %v4506_v24 = vld [vmem:[#allocation6 + $0x84] ss:$16 sps:$4 sm:$0xff]  }
 0x44c   :  { %v1592_v47 = vmul.f32 %v3139_v3, %v4333_v55  ;;  %v3141_v27 = vpop.eup %3140  ;;  %v4470_v55 = vld [vmem:[#allocation6 + $0x24] ss:$16 sps:$4 sm:$0xff]   ;;  %5828 = vst [vmem:[#allocation54_spill] sm:$0xff] %v4503_v45  ;;  %5829 = vst [vmem:[#allocation55_spill] sm:$0xff] %v4506_v24  ;;  %v4509_v3 = vld [vmem:[#allocation6 + $0x8c] ss:$16 sps:$4 sm:$0xff]  }
 0x44d   :  { %5830 = vst [vmem:[#allocation56_spill] sm:$0xff] %v4509_v3 }
 0x44e   :  { %v4457_v22 = vadd.f32 %v1593_v46, %v1592_v47  ;;  %v4512_v47 = vld [vmem:[#allocation6 + $0x80] ss:$16 sps:$4 sm:$0xff]  }
 0x44f   :  { %5831 = vst [vmem:[#allocation57_spill] sm:$0xff] %v4512_v47 }
 0x450   :  { %3142 = vtanh.f32 %v4457_v22 }
 0x45a   :  { %v3143_v28 = vpop.eup %3142 }
 0x45b   :  { %v1596_v35 = vmul.f32 %v3143_v28, %v3141_v27  ;;  %v4515_v27 = vld [vmem:[#allocation6 + $0x88] ss:$16 sps:$4 sm:$0xff]  }
 0x45c   :  { %5832 = vst [vmem:[#allocation58_spill] sm:$0xff] %v4515_v27 }
 0x45d   :  { %v4460_v44 = vpack.c.bf16 %v1596_v35, %v1596_v35 }
 0x45f   :  { %1742 = vmatmul.mubr.bf16.vlgmr.msra.gmra.mrb[44].mxu0 %v4460_v44  ;;  %1783 = vmatmul.mubr.bf16.vlgmr.msra.gmra.mrb[44].mxu1 %v4460_v44 }
 0x460   :  { %1821 = vmatpush1.bf16.msra.mxu0 %v4464_v18  ;;  %1862 = vmatpush1.bf16.msra.mxu1 %v4467_v2 }
 0x461   :  { %1822 = vmatprep.subr.bf16.mxu0 %v4470_v55  ;;  %1863 = vmatprep.subr.bf16.mxu1 %v4473_v48 }
 0x464   :  { %1823 = vmatpush1.bf16.msra.mxu0 %v4476_v62  ;;  %1864 = vmatpush1.bf16.msra.mxu1 %v4479_v12 }
 0x465   :  { %1824 = vmatprep.subr.bf16.mxu0 %v4482_v61  ;;  %1865 = vmatprep.subr.bf16.mxu1 %v4485_v53  ;;  %v4526_v53 = vld [vmem:[#allocation6 + $0xa0] ss:$16 sps:$4 sm:$0xff]  }
 0x468   :  { %1825 = vmatpush1.bf16.msra.mxu0 %v4488_v21  ;;  %1866 = vmatpush1.bf16.msra.mxu1 %v4491_v5 }
 0x469   :  { %1826 = vmatprep.subr.bf16.mxu0 %v4494_v14  ;;  %1867 = vmatprep.subr.bf16.mxu1 %v4497_v36 }
 0x46c   :  { %1827 = vmatpush1.bf16.msra.mxu0 %v4500_v49  ;;  %1868 = vmatpush1.bf16.msra.mxu1 %v4503_v45  ;;  %v4519_v49 = vld [vmem:[#allocation6 + $0xa4] ss:$16 sps:$4 sm:$0xff]  }
 0x46d   :  { %1828 = vmatprep.subr.bf16.mxu0 %v4506_v24  ;;  %1869 = vmatprep.subr.bf16.mxu1 %v4509_v3  ;;  %v4522_v24 = vld [vmem:[#allocation6 + $0xac] ss:$16 sps:$4 sm:$0xff]  }
 0x470   :  { %v1632_v46 = vpop.f32.mrb[40].mxu0  ;;  %v1673_v17 = vpop.f32.mrb[40].mxu1  ;;  %1829 = vmatpush1.bf16.msra.mxu0 %v4512_v47  ;;  %1870 = vmatpush1.bf16.msra.mxu1 %v4515_v27 }
 0x471   :  { %v1633_v28 = vadd.f32 %v1632_v46, %v4155_v4  ;;  %v1634_v35 = vpop.f32.mrb[41].mxu0  ;;  %v1675_v45 = vpop.f32.mrb[41].mxu1  ;;  %1830 = vmatprep.subr.bf16.mxu0 %v4519_v49  ;;  %1871 = vmatprep.subr.bf16.mxu1 %v4522_v24  ;;  %v4529_v46 = vld [vmem:[#allocation6 + $0xa8] ss:$16 sps:$4 sm:$0xff]   ;;  %v4532_v4 = vld [vmem:[#allocation6 + $0xc4] ss:$16 sps:$4 sm:$0xff]  }
 0x472   :  { %v1635_v3 = vadd.f32 %v1634_v35, %v4161_v7  ;;  %v1636_v36 = vpop.f32.mrb[42].mxu0  ;;  %v1677_v47 = vpop.f32.mrb[42].mxu1  ;;  %v4535_v35 = vld [vmem:[#allocation6 + $0xcc] ss:$16 sps:$4 sm:$0xff]  }
 0x473   :  { %v2858_v14 = vmul.f32 -1.442695, %v1633_v28  ;;  %v1637_v5 = vpop.f32.mrb[43].mxu0  ;;  %v1678_v21 = vpop.f32.mrb[43].mxu1  ;;  %v4542_v36 = vld [vmem:[#allocation6 + $0xc8] ss:$16 sps:$4 sm:$0xff]   ;;  %v1674_v28 = vadd.f32 %v1673_v17, %v4182_v38 }
 0x474   :  { %v2859_v27 = vmul.f32 -1.442695, %v1635_v3  ;;  %1831 = vmatpush1.bf16.msra.mxu0 %v4526_v53  ;;  %1872 = vmatpush1.bf16.msra.mxu1 %v4529_v46  ;;  %v1676_v21 = vadd.f32 %v1675_v45, %v4173_v29  ;;  %v4539_v5 = vld [vmem:[#allocation6 + $0xc0] ss:$16 sps:$4 sm:$0xff]   ;;  %5834 = vst [vmem:[#allocation60_spill] sm:$0xff] %v4542_v36 }
 0x475   :  { %3144 = vpow2.f32 %v2858_v14  ;;  %1832 = vmatprep.subr.bf16.mxu0 %v4532_v4  ;;  %1873 = vmatprep.subr.bf16.mxu1 %v4535_v35  ;;  %5833 = vst [vmem:[#allocation59_spill] sm:$0xff] %v4539_v5  ;;  %v4545_v14 = vld [vmem:[#allocation6 + $0xe4] ss:$16 sps:$4 sm:$0xff]   ;;  %v4548_v3 = vld [vmem:[#allocation6 + $0xec] ss:$16 sps:$4 sm:$0xff]  }
 0x476   :  { %3146 = vpow2.f32 %v2859_v27  ;;  %5835 = vst [vmem:[#allocation62_spill] sm:$0xff] %v4545_v14  ;;  %5836 = vst [vmem:[#allocation63_spill] sm:$0xff] %v4548_v3  ;;  %v2860_v47 = vmul.f32 -1.442695, %v1676_v21  ;;  %v4551_v27 = vld [vmem:[#allocation6 + $0xe0] ss:$16 sps:$4 sm:$0xff]  }
 0x477   :  { %5837 = vst [vmem:[#allocation68_spill] sm:$0xff] %v4551_v27  ;;  %v4554_v45 = vld [vmem:[#allocation6 + $0xe8] ss:$16 sps:$4 sm:$0xff]   ;;  %v4558_v29 = vld [vmem:[#allocation6 + $0x104] ss:$16 sps:$4 sm:$0xff]  }
 0x478   :  { %1833 = vmatpush1.bf16.msra.mxu0 %v4539_v5  ;;  %1874 = vmatpush1.bf16.msra.mxu1 %v4542_v36  ;;  %5838 = vst [vmem:[#allocation69_spill] sm:$0xff] %v4554_v45  ;;  %5839 = vst [vmem:[#allocation70_spill] sm:$0xff] %v4558_v29  ;;  %3148 = vpow2.f32 %v2860_v47  ;;  %v4564_v5 = vld [vmem:[#allocation6 + $0x100] ss:$16 sps:$4 sm:$0xff]   ;;  %v4570_v38 = vld [vmem:[#allocation6 + $0x124] ss:$16 sps:$4 sm:$0xff]  }
 0x479   :  { %1834 = vmatprep.subr.bf16.mxu0 %v4545_v14  ;;  %1875 = vmatprep.subr.bf16.mxu1 %v4548_v3  ;;  %v4561_v14 = vld [vmem:[#allocation6 + $0x10c] ss:$16 sps:$4 sm:$0xff]   ;;  %5841 = vst [vmem:[#allocation72_spill] sm:$0xff] %v4564_v5  ;;  %3150 = vtanh.f32 %v1674_v28  ;;  %5843 = vst [vmem:[#allocation74_spill] sm:$0xff] %v4570_v38  ;;  %v4579_v47 = vld [vmem:[#allocation6 + $0x128] ss:$16 sps:$4 sm:$0xff]  }
 0x47a   :  { %5840 = vst [vmem:[#allocation71_spill] sm:$0xff] %v4561_v14  ;;  %5846 = vst [vmem:[#allocation77_spill] sm:$0xff] %v4579_v47  ;;  %v4582_v28 = vld [vmem:[#allocation6 + $0x144] ss:$16 sps:$4 sm:$0xff]  }
 0x47b   :  { %5847 = vst [vmem:[#allocation78_spill] sm:$0xff] %v4582_v28 }
 0x47c   :  { %1835 = vmatpush1.bf16.msra.mxu0 %v4551_v27  ;;  %1876 = vmatpush1.bf16.msra.mxu1 %v4554_v45  ;;  %v4567_v27 = vld [vmem:[#allocation6 + $0x108] ss:$16 sps:$4 sm:$0xff]   ;;  %v4613_v45 = vld [vmem:[#allocation6 + $0x180] ss:$16 sps:$4 sm:$0xff]  }
 0x47d   :  { %1836 = vmatprep.subr.bf16.mxu0 %v4558_v29  ;;  %1877 = vmatprep.subr.bf16.mxu1 %v4561_v14  ;;  %5842 = vst [vmem:[#allocation73_spill] sm:$0xff] %v4567_v27  ;;  %v4573_v29 = vld [vmem:[#allocation6 + $0x12c] ss:$16 sps:$4 sm:$0xff]   ;;  %v4606_v14 = vld [vmem:[#allocation6 + $0x184] ss:$16 sps:$4 sm:$0xff]  }
 0x47e   :  { %5844 = vst [vmem:[#allocation75_spill] sm:$0xff] %v4573_v29  ;;  %5854 = vst [vmem:[#allocation39_spill] sm:$0xff] %v4606_v14 }
 0x47f   :  { %v3145_v3 = vpop.eup %3144 }
 0x480   :  { %v3147_v21 = vpop.eup %3146  ;;  %v1683_v36 = vadd.f32 1.0, %v3145_v3  ;;  %1837 = vmatpush1.bf16.msra.mxu0 %v4564_v5  ;;  %1878 = vmatpush1.bf16.msra.mxu1 %v4567_v27  ;;  %v4576_v3 = vld [vmem:[#allocation6 + $0x120] ss:$16 sps:$4 sm:$0xff]  }
 0x481   :  { %v1689_v17 = vadd.f32 1.0, %v3147_v21  ;;  %1838 = vmatprep.subr.bf16.mxu0 %v4570_v38  ;;  %1879 = vmatprep.subr.bf16.mxu1 %v4573_v29  ;;  %5845 = vst [vmem:[#allocation76_spill] sm:$0xff] %v4576_v3  ;;  %v4585_v21 = vld [vmem:[#allocation6 + $0x14c] ss:$16 sps:$4 sm:$0xff]   ;;  %v4588_v38 = vld [vmem:[#allocation6 + $0x140] ss:$16 sps:$4 sm:$0xff]  }
 0x482   :  { %3152 = vrcp.f32 %v1683_v36  ;;  %5848 = vst [vmem:[#allocation79_spill] sm:$0xff] %v4585_v21  ;;  %5849 = vst [vmem:[#allocation80_spill] sm:$0xff] %v4588_v38  ;;  %v4591_v36 = vld [vmem:[#allocation6 + $0x148] ss:$16 sps:$4 sm:$0xff]  }
 0x483   :  { %3154 = vrcp.f32 %v1689_v17  ;;  %5850 = vst [vmem:[#allocation81_spill] sm:$0xff] %v4591_v36  ;;  %v4594_v17 = vld [vmem:[#allocation6 + $0x164] ss:$16 sps:$4 sm:$0xff]  }
 0x484   :  { %1839 = vmatpush1.bf16.msra.mxu0 %v4576_v3  ;;  %1880 = vmatpush1.bf16.msra.mxu1 %v4579_v47  ;;  %5851 = vst [vmem:[#allocation36_spill] sm:$0xff] %v4594_v17  ;;  %v4597_v47 = vld [vmem:[#allocation6 + $0x16c] ss:$16 sps:$4 sm:$0xff]  }
 0x485   :  { %1840 = vmatprep.subr.bf16.mxu0 %v4582_v28  ;;  %1881 = vmatprep.subr.bf16.mxu1 %v4585_v21  ;;  %5852 = vst [vmem:[#allocation37_spill] sm:$0xff] %v4597_v47  ;;  %v3149_v28 = vpop.eup %3148  ;;  %v4600_v21 = vld [vmem:[#allocation6 + $0x160] ss:$16 sps:$4 sm:$0xff]  }
 0x486   :  { %v3151_v3 = vpop.eup %3150  ;;  %5853 = vst [vmem:[#allocation38_spill] sm:$0xff] %v4600_v21  ;;  %v1696_v5 = vadd.f32 1.0, %v3149_v28  ;;  %v4624_v28 = vld [vmem:[#allocation6 + $0x1ac] ss:$16 sps:$4 sm:$0xff]  }
 0x487   :  { %5858 = vst [vmem:[#allocation43_spill] sm:$0xff] %v4624_v28 }
 0x488   :  { %1841 = vmatpush1.bf16.msra.mxu0 %v4588_v38  ;;  %1882 = vmatpush1.bf16.msra.mxu1 %v4591_v36  ;;  %v4603_v38 = vld [vmem:[#allocation6 + $0x168] ss:$16 sps:$4 sm:$0xff]   ;;  %3156 = vrcp.f32 %v1696_v5  ;;  %v4637_v5 = vld [vmem:[#allocation6 + $0x1cc] ss:$16 sps:$4 sm:$0xff]  }
 0x489   :  { %1842 = vmatprep.subr.bf16.mxu0 %v4594_v17  ;;  %1883 = vmatprep.subr.bf16.mxu1 %v4597_v47  ;;  %v4609_v17 = vld [vmem:[#allocation6 + $0x18c] ss:$16 sps:$4 sm:$0xff]   ;;  %5862 = vst [vmem:[#allocation47_spill] sm:$0xff] %v4637_v5 }
 0x48a   :  { %5855 = vst [vmem:[#allocation40_spill] sm:$0xff] %v4609_v17 }
 0x48c   :  { %v3153_v29 = vpop.eup %3152  ;;  %1843 = vmatpush1.bf16.msra.mxu0 %v4600_v21  ;;  %1884 = vmatpush1.bf16.msra.mxu1 %v4603_v38  ;;  %v4616_v21 = vld [vmem:[#allocation6 + $0x188] ss:$16 sps:$4 sm:$0xff]  }
 0x48d   :  { %v3155_v36 = vpop.eup %3154  ;;  %v1700_v27 = vmul.f32 %v3153_v29, %v3151_v3  ;;  %1844 = vmatprep.subr.bf16.mxu0 %v4606_v14  ;;  %1885 = vmatprep.subr.bf16.mxu1 %v4609_v17  ;;  %5856 = vst [vmem:[#allocation41_spill] sm:$0xff] %v4616_v21  ;;  %v4621_v3 = vld [vmem:[#allocation6 + $0x1a4] ss:$16 sps:$4 sm:$0xff]  }
 0x48e   :  { %v1699_v47 = vmul.f32 %v3155_v36, %v4393_v6  ;;  %5857 = vst [vmem:[#allocation42_spill] sm:$0xff] %v4621_v3  ;;  %v4628_v6 = vld [vmem:[#allocation6 + $0x1a0] ss:$16 sps:$4 sm:$0xff]   ;;  %v4631_v36 = vld [vmem:[#allocation6 + $0x1a8] ss:$16 sps:$4 sm:$0xff]  }
 0x48f   :  { %5859 = vst [vmem:[#allocation44_spill] sm:$0xff] %v4628_v6  ;;  %5860 = vst [vmem:[#allocation45_spill] sm:$0xff] %v4631_v36 }
 0x490   :  { %1845 = vmatpush1.bf16.msra.mxu0 %v4613_v45  ;;  %1886 = vmatpush1.bf16.msra.mxu1 %v4616_v21  ;;  %v4619_v29 = vadd.f32 %v1700_v27, %v1699_v47  ;;  %v4634_v27 = vld [vmem:[#allocation6 + $0x1c4] ss:$16 sps:$4 sm:$0xff]   ;;  %v4640_v47 = vld [vmem:[#allocation6 + $0x1c0] ss:$16 sps:$4 sm:$0xff]  }
 0x491   :  { %1846 = vmatprep.subr.bf16.mxu0 %v4621_v3  ;;  %1887 = vmatprep.subr.bf16.mxu1 %v4624_v28  ;;  %5861 = vst [vmem:[#allocation46_spill] sm:$0xff] %v4634_v27  ;;  %5863 = vst [vmem:[#allocation48_spill] sm:$0xff] %v4640_v47  ;;  %v4643_v28 = vld [vmem:[#allocation6 + $0x1c8] ss:$16 sps:$4 sm:$0xff]   ;;  %v4652_v21 = vld [vmem:[#allocation6 + $0x1e0] ss:$16 sps:$4 sm:$0xff]  }
 0x492   :  { %3158 = vtanh.f32 %v4619_v29  ;;  %5864 = vst [vmem:[#allocation49_spill] sm:$0xff] %v4643_v28  ;;  %5867 = vst [vmem:[#allocation61_spill] sm:$0xff] %v4652_v21 }
 0x494   :  { %1847 = vmatpush1.bf16.msra.mxu0 %v4628_v6  ;;  %1888 = vmatpush1.bf16.msra.mxu1 %v4631_v36  ;;  %v4646_v6 = vld [vmem:[#allocation6 + $0x1e4] ss:$16 sps:$4 sm:$0xff]   ;;  %v4649_v36 = vld [vmem:[#allocation6 + $0x1ec] ss:$16 sps:$4 sm:$0xff]  }
 0x495   :  { %1848 = vmatprep.subr.bf16.mxu0 %v4634_v27  ;;  %1889 = vmatprep.subr.bf16.mxu1 %v4637_v5  ;;  %5865 = vst [vmem:[#allocation50_spill] sm:$0xff] %v4646_v6  ;;  %5866 = vst [vmem:[#allocation51_spill] sm:$0xff] %v4649_v36  ;;  %v3157_v27 = vpop.eup %3156  ;;  %v4655_v5 = vld [vmem:[#allocation6 + $0x1e8] ss:$16 sps:$4 sm:$0xff]  }
 0x496   :  { %5868 = vst [vmem:[#allocation64_spill] sm:$0xff] %v4655_v5 }
 0x498   :  { %1849 = vmatpush1.bf16.msra.mxu0 %v4640_v47  ;;  %1890 = vmatpush1.bf16.msra.mxu1 %v4643_v28 }
 0x499   :  { %1850 = vmatprep.subr.bf16.mxu0 %v4646_v6  ;;  %1891 = vmatprep.subr.bf16.mxu1 %v4649_v36 }
 0x49c   :  { %v3159_v3 = vpop.eup %3158  ;;  %1851 = vmatpush1.bf16.msra.mxu0 %v4652_v21  ;;  %1892 = vmatpush1.bf16.msra.mxu1 %v4655_v5 }
 0x49d   :  { %v1703_v47 = vmul.f32 %v3159_v3, %v3157_v27  ;;  %1931 = vmatprep.subr.bf16.mxu0 %v5785_v23  ;;  %1972 = vmatprep.subr.bf16.mxu1 %v5786_v16  ;;  %v5874_v27 = vld [vmem:[#allocation11_spill] sm:$0xff] }
 0x49f   :  { %v1819_v6 = vpack.c.bf16 %v1703_v47, %v1703_v47  ;;  %v5875_v47 = vld [vmem:[#allocation12_spill] sm:$0xff] }
 0x4a1   :  { %1852 = vmatprep.mubr.bf16.mxu0 %v1819_v6  ;;  %1893 = vmatprep.mubr.bf16.mxu1 %v1819_v6 }
 0x4a2   :  { %1853 = vmatmul.mubr.bf16.vlgmr.msra.gmra.mrb[48].mxu0 %v4460_v44  ;;  %1894 = vmatmul.mubr.bf16.vlgmr.msra.gmra.mrb[48].mxu1 %v4460_v44 }
 0x4a3   :  { %1932 = vmatpush1.bf16.msra.mxu0 %v5787_v1  ;;  %1973 = vmatpush1.bf16.msra.mxu1 %v5788_v10  ;;  %v5869_v1 = vld [vmem:[#allocation18_spill] sm:$0xff] }
 0x4a4   :  { %1933 = vmatprep.subr.bf16.mxu0 %v5789_v63  ;;  %1974 = vmatprep.subr.bf16.mxu1 %v5790_v0  ;;  %v5870_v63 = vld [vmem:[#allocation19_spill] sm:$0xff] }
 0x4a5   :  { %1963 = vmatprep.mubr.bf16.mxu0 %v5791_v8  ;;  %2004 = vmatprep.mubr.bf16.mxu1 %v5791_v8 }
 0x4a7   :  { %1934 = vmatpush1.bf16.msra.mxu0 %v5792_v54  ;;  %1975 = vmatpush1.bf16.msra.mxu1 %v5793_v37 }
 0x4a8   :  { %1935 = vmatprep.subr.bf16.mxu0 %v5794_v56  ;;  %1976 = vmatprep.subr.bf16.mxu1 %v5795_v57  ;;  %v5871_v56 = vld [vmem:[#allocation20_spill] sm:$0xff] }
 0x4ab   :  { %1936 = vmatpush1.bf16.msra.mxu0 %v5796_v30  ;;  %1977 = vmatpush1.bf16.msra.mxu1 %v5797_v59  ;;  %v5872_v30 = vld [vmem:[#allocation21_spill] sm:$0xff] }
 0x4ac   :  { %1937 = vmatprep.subr.bf16.mxu0 %v5798_v58  ;;  %1978 = vmatprep.subr.bf16.mxu1 %v5799_v60 }
 0x4af   :  { %1938 = vmatpush1.bf16.msra.mxu0 %v5800_v51  ;;  %1979 = vmatpush1.bf16.msra.mxu1 %v5801_v52 }
 0x4b0   :  { %1939 = vmatprep.subr.bf16.mxu0 %v5802_v40  ;;  %1980 = vmatprep.subr.bf16.mxu1 %v5803_v11 }
 0x4b3   :  { %1940 = vmatpush1.bf16.msra.mxu0 %v5804_v50  ;;  %1981 = vmatpush1.bf16.msra.mxu1 %v5805_v19 }
 0x4b4   :  { %1941 = vmatprep.subr.bf16.mxu0 %v5806_v20  ;;  %1982 = vmatprep.subr.bf16.mxu1 %v5807_v25 }
 0x4b7   :  { %1942 = vmatpush1.bf16.msra.mxu0 %v5808_v26  ;;  %1983 = vmatpush1.bf16.msra.mxu1 %v5809_v31 }
 0x4b8   :  { %1943 = vmatprep.subr.bf16.mxu0 %v5810_v32  ;;  %1984 = vmatprep.subr.bf16.mxu1 %v5811_v33 }
 0x4bb   :  { %1944 = vmatpush1.bf16.msra.mxu0 %v5812_v34  ;;  %1985 = vmatpush1.bf16.msra.mxu1 %v5813_v39 }
 0x4bc   :  { %1945 = vmatprep.subr.bf16.mxu0 %v5814_v41  ;;  %1986 = vmatprep.subr.bf16.mxu1 %v5815_v42 }
 0x4bf   :  { %1946 = vmatpush1.bf16.msra.mxu0 %v5816_v43  ;;  %1987 = vmatpush1.bf16.msra.mxu1 %v5817_v9 }
 0x4c0   :  { %2042 = vmatprep.subr.bf16.mxu0 %v4446_v13  ;;  %2083 = vmatprep.subr.bf16.mxu1 %v4449_v15 }
 0x532   :  { %v1743_v23 = vpop.f32.mrb[44].mxu0  ;;  %v1784_v16 = vpop.f32.mrb[44].mxu1 }
 0x533   :  { %v1791_v10 = vadd.f32 %v1743_v23, %v5869_v1  ;;  %v1793_v0 = vadd.f32 %v1784_v16, %v5870_v63  ;;  %v1745_v54 = vpop.f32.mrb[45].mxu0  ;;  %v1786_v37 = vpop.f32.mrb[45].mxu1  ;;  %v5876_v23 = vld [vmem:[#allocation13_spill] sm:$0xff]  ;;  %v5877_v16 = vld [vmem:[#allocation52_spill] sm:$0xff]  ;;  %v5880_v63 = vld [vmem:[#allocation55_spill] sm:$0xff] }
 0x534   :  { %v1792_v57 = vadd.f32 %v1745_v54, %v5871_v56  ;;  %v1794_v59 = vadd.f32 %v1786_v37, %v5872_v30  ;;  %v1747_v58 = vpop.f32.mrb[46].mxu0  ;;  %v1788_v60 = vpop.f32.mrb[46].mxu1  ;;  %v5878_v1 = vld [vmem:[#allocation53_spill] sm:$0xff]  ;;  %v5883_v37 = vld [vmem:[#allocation58_spill] sm:$0xff] }
 0x535   :  { %v2861_v51 = vmul.f32 -1.442695, %v1791_v10  ;;  %v1748_v52 = vpop.f32.mrb[47].mxu0  ;;  %v1789_v40 = vpop.f32.mrb[47].mxu1  ;;  %v5879_v10 = vld [vmem:[#allocation54_spill] sm:$0xff]  ;;  %v5882_v54 = vld [vmem:[#allocation57_spill] sm:$0xff] }
 0x536   :  { %v2862_v11 = vmul.f32 -1.442695, %v1792_v57  ;;  %v2863_v50 = vmul.f32 -1.442695, %v1794_v59  ;;  %v5884_v30 = vld [vmem:[#allocation82_spill] sm:$0xff] }
 0x537   :  { %3160 = vpow2.f32 %v2861_v51 }
 0x538   :  { %3162 = vpow2.f32 %v2862_v11 }
 0x539   :  { %3164 = vpow2.f32 %v2863_v50 }
 0x53a   :  { %3166 = vtanh.f32 %v1793_v0  ;;  %v5881_v0 = vld [vmem:[#allocation56_spill] sm:$0xff] }
 0x541   :  { %v3161_v19 = vpop.eup %3160 }
 0x542   :  { %v3163_v20 = vpop.eup %3162  ;;  %v1798_v25 = vadd.f32 1.0, %v3161_v19 }
 0x543   :  { %v1804_v26 = vadd.f32 1.0, %v3163_v20  ;;  %v3165_v31 = vpop.eup %3164 }
 0x544   :  { %3168 = vrcp.f32 %v1798_v25  ;;  %v3167_v32 = vpop.eup %3166  ;;  %v1811_v41 = vadd.f32 1.0, %v3165_v31  ;;  %v5885_v25 = vld [vmem:[#allocation59_spill] sm:$0xff]  ;;  %v5887_v31 = vld [vmem:[#allocation34_spill] sm:$0xff] }
 0x545   :  { %3170 = vrcp.f32 %v1804_v26  ;;  %v5886_v26 = vld [vmem:[#allocation60_spill] sm:$0xff] }
 0x546   :  { %3172 = vrcp.f32 %v1811_v41  ;;  %v5891_v41 = vld [vmem:[#allocation69_spill] sm:$0xff] }
 0x54e   :  { %v3169_v33 = vpop.eup %3168 }
 0x54f   :  { %v3171_v34 = vpop.eup %3170  ;;  %v1815_v39 = vmul.f32 %v3169_v33, %v3167_v32  ;;  %v5888_v33 = vld [vmem:[#allocation62_spill] sm:$0xff] }
 0x550   :  { %v1814_v42 = vmul.f32 %v3171_v34, %v4457_v22  ;;  %v3173_v9 = vpop.eup %3172  ;;  %v5873_v22 = vld [vmem:[#allocation10_spill] sm:$0xff]  ;;  %v5889_v34 = vld [vmem:[#allocation63_spill] sm:$0xff] }
 0x552   :  { %v4701_v43 = vadd.f32 %v1815_v39, %v1814_v42  ;;  %v5890_v39 = vld [vmem:[#allocation68_spill] sm:$0xff] }
 0x554   :  { %3174 = vtanh.f32 %v4701_v43 }
 0x55e   :  { %v3175_v44 = vpop.eup %3174 }
 0x55f   :  { %v1818_v3 = vmul.f32 %v3175_v44, %v3173_v9  ;;  %v5892_v9 = vld [vmem:[#allocation70_spill] sm:$0xff]  ;;  %v5893_v44 = vld [vmem:[#allocation71_spill] sm:$0xff] }
 0x561   :  { %v4704_v6 = vpack.c.bf16 %v1818_v3, %v1818_v3  ;;  %v5894_v3 = vld [vmem:[#allocation35_spill] sm:$0xff] }
 0x563   :  { %1964 = vmatmul.mubr.bf16.vlgmr.msra.gmra.mrb[52].mxu0 %v4704_v6  ;;  %2005 = vmatmul.mubr.bf16.vlgmr.msra.gmra.mrb[52].mxu1 %v4704_v6 }
 0x564   :  { %2043 = vmatpush1.bf16.msra.mxu0 %v4464_v18  ;;  %2084 = vmatpush1.bf16.msra.mxu1 %v4467_v2 }
 0x565   :  { %2044 = vmatprep.subr.bf16.mxu0 %v4470_v55  ;;  %2085 = vmatprep.subr.bf16.mxu1 %v4473_v48 }
 0x568   :  { %2045 = vmatpush1.bf16.msra.mxu0 %v4476_v62  ;;  %2086 = vmatpush1.bf16.msra.mxu1 %v4479_v12 }
 0x569   :  { %2046 = vmatprep.subr.bf16.mxu0 %v4482_v61  ;;  %2087 = vmatprep.subr.bf16.mxu1 %v5873_v22 }
 0x56c   :  { %2047 = vmatpush1.bf16.msra.mxu0 %v5874_v27  ;;  %2088 = vmatpush1.bf16.msra.mxu1 %v5875_v47 }
 0x56d   :  { %2048 = vmatprep.subr.bf16.mxu0 %v5876_v23  ;;  %2089 = vmatprep.subr.bf16.mxu1 %v5877_v16 }
 0x570   :  { %2049 = vmatpush1.bf16.msra.mxu0 %v5878_v1  ;;  %2090 = vmatpush1.bf16.msra.mxu1 %v5879_v10 }
 0x571   :  { %2050 = vmatprep.subr.bf16.mxu0 %v5880_v63  ;;  %2091 = vmatprep.subr.bf16.mxu1 %v5881_v0 }
 0x574   :  { %2051 = vmatpush1.bf16.msra.mxu0 %v5882_v54  ;;  %2092 = vmatpush1.bf16.msra.mxu1 %v5883_v37 }
 0x575   :  { %v1854_v56 = vpop.f32.mrb[48].mxu0  ;;  %v1895_v57 = vpop.f32.mrb[48].mxu1  ;;  %2052 = vmatprep.subr.bf16.mxu0 %v4519_v49  ;;  %2093 = vmatprep.subr.bf16.mxu1 %v4522_v24 }
 0x576   :  { %v1855_v59 = vadd.f32 %v1854_v56, %v5884_v30  ;;  %v1856_v58 = vpop.f32.mrb[49].mxu0  ;;  %v1897_v60 = vpop.f32.mrb[49].mxu1  ;;  %v1896_v56 = vadd.f32 %v1895_v57, %v5894_v3  ;;  %v5901_v57 = vld [vmem:[#allocation78_spill] sm:$0xff] }
 0x577   :  { %v1857_v51 = vadd.f32 %v1856_v58, %v4161_v7  ;;  %v1858_v52 = vpop.f32.mrb[50].mxu0  ;;  %v1899_v40 = vpop.f32.mrb[50].mxu1  ;;  %v1898_v32 = vadd.f32 %v1897_v60, %v5887_v31  ;;  %v5895_v58 = vld [vmem:[#allocation72_spill] sm:$0xff] }
 0x578   :  { %v2864_v11 = vmul.f32 -1.442695, %v1855_v59  ;;  %v1859_v50 = vpop.f32.mrb[51].mxu0  ;;  %v1900_v19 = vpop.f32.mrb[51].mxu1  ;;  %2053 = vmatpush1.bf16.msra.mxu0 %v4526_v53  ;;  %2094 = vmatpush1.bf16.msra.mxu1 %v4529_v46  ;;  %v5897_v40 = vld [vmem:[#allocation74_spill] sm:$0xff] }
 0x579   :  { %v2865_v20 = vmul.f32 -1.442695, %v1857_v51  ;;  %2054 = vmatprep.subr.bf16.mxu0 %v4532_v4  ;;  %2095 = vmatprep.subr.bf16.mxu1 %v4535_v35  ;;  %v2866_v42 = vmul.f32 -1.442695, %v1898_v32  ;;  %v5896_v51 = vld [vmem:[#allocation73_spill] sm:$0xff]  ;;  %v5899_v19 = vld [vmem:[#allocation76_spill] sm:$0xff] }
 0x57a   :  { %3176 = vpow2.f32 %v2864_v11  ;;  %v5898_v11 = vld [vmem:[#allocation75_spill] sm:$0xff] }
 0x57b   :  { %3178 = vpow2.f32 %v2865_v20  ;;  %v5900_v20 = vld [vmem:[#allocation77_spill] sm:$0xff]  ;;  %v5902_v32 = vld [vmem:[#allocation79_spill] sm:$0xff] }
 0x57c   :  { %2055 = vmatpush1.bf16.msra.mxu0 %v5885_v25  ;;  %2096 = vmatpush1.bf16.msra.mxu1 %v5886_v26  ;;  %3180 = vpow2.f32 %v2866_v42  ;;  %v5905_v42 = vld [vmem:[#allocation36_spill] sm:$0xff] }
 0x57d   :  { %2056 = vmatprep.subr.bf16.mxu0 %v5888_v33  ;;  %2097 = vmatprep.subr.bf16.mxu1 %v5889_v34  ;;  %3182 = vtanh.f32 %v1896_v56 }
 0x580   :  { %2057 = vmatpush1.bf16.msra.mxu0 %v5890_v39  ;;  %2098 = vmatpush1.bf16.msra.mxu1 %v5891_v41 }
 0x581   :  { %2058 = vmatprep.subr.bf16.mxu0 %v5892_v9  ;;  %2099 = vmatprep.subr.bf16.mxu1 %v5893_v44 }
 0x584   :  { %v3177_v59 = vpop.eup %3176  ;;  %2059 = vmatpush1.bf16.msra.mxu0 %v5895_v58  ;;  %2100 = vmatpush1.bf16.msra.mxu1 %v5896_v51  ;;  %v5903_v51 = vld [vmem:[#allocation80_spill] sm:$0xff] }
 0x585   :  { %v3179_v60 = vpop.eup %3178  ;;  %v1905_v52 = vadd.f32 1.0, %v3177_v59  ;;  %2060 = vmatprep.subr.bf16.mxu0 %v5897_v40  ;;  %2101 = vmatprep.subr.bf16.mxu1 %v5898_v11  ;;  %v5904_v59 = vld [vmem:[#allocation81_spill] sm:$0xff] }
 0x586   :  { %v1911_v50 = vadd.f32 1.0, %v3179_v60  ;;  %v5906_v40 = vld [vmem:[#allocation37_spill] sm:$0xff]  ;;  %v3181_v56 = vpop.eup %3180 }
 0x587   :  { %3184 = vrcp.f32 %v1905_v52  ;;  %v3183_v60 = vpop.eup %3182  ;;  %v5907_v52 = vld [vmem:[#allocation38_spill] sm:$0xff] }
 0x588   :  { %3186 = vrcp.f32 %v1911_v50  ;;  %2061 = vmatpush1.bf16.msra.mxu0 %v5899_v19  ;;  %2102 = vmatpush1.bf16.msra.mxu1 %v5900_v20  ;;  %v5910_v20 = vld [vmem:[#allocation43_spill] sm:$0xff] }
 0x589   :  { %2062 = vmatprep.subr.bf16.mxu0 %v5901_v57  ;;  %2103 = vmatprep.subr.bf16.mxu1 %v5902_v32 }
 0x58c   :  { %2063 = vmatpush1.bf16.msra.mxu0 %v5903_v51  ;;  %2104 = vmatpush1.bf16.msra.mxu1 %v5904_v59  ;;  %v1918_v51 = vadd.f32 1.0, %v3181_v56  ;;  %v5913_v56 = vld [vmem:[#allocation46_spill] sm:$0xff] }
 0x58d   :  { %2064 = vmatprep.subr.bf16.mxu0 %v5905_v42  ;;  %2105 = vmatprep.subr.bf16.mxu1 %v5906_v40  ;;  %v5908_v42 = vld [vmem:[#allocation41_spill] sm:$0xff]  ;;  %v5909_v40 = vld [vmem:[#allocation42_spill] sm:$0xff] }
 0x58e   :  { %3188 = vrcp.f32 %v1918_v51 }
 0x590   :  { %2065 = vmatpush1.bf16.msra.mxu0 %v5907_v52  ;;  %2106 = vmatpush1.bf16.msra.mxu1 %v4603_v38 }
 0x591   :  { %v3185_v50 = vpop.eup %3184  ;;  %2066 = vmatprep.subr.bf16.mxu0 %v4606_v14  ;;  %2107 = vmatprep.subr.bf16.mxu1 %v4609_v17  ;;  %v5911_v14 = vld [vmem:[#allocation44_spill] sm:$0xff]  ;;  %v5912_v17 = vld [vmem:[#allocation45_spill] sm:$0xff] }
 0x592   :  { %v3187_v32 = vpop.eup %3186  ;;  %v1922_v57 = vmul.f32 %v3185_v50, %v3183_v60  ;;  %v5916_v60 = vld [vmem:[#allocation50_spill] sm:$0xff]  ;;  %v4781_v50 = vld [vmem:[#allocation4 + $0xc] ss:$16 sps:$4 sm:$0xff]  }
 0x593   :  { %v1921_v59 = vmul.f32 %v3187_v32, %v4619_v29  ;;  %v5914_v29 = vld [vmem:[#allocation47_spill] sm:$0xff]  ;;  %v5915_v32 = vld [vmem:[#allocation48_spill] sm:$0xff]  ;;  %5918 = vst [vmem:[#allocation66_spill] sm:$0xff] %v4781_v50 }
 0x594   :  { %2067 = vmatpush1.bf16.msra.mxu0 %v4613_v45  ;;  %2108 = vmatpush1.bf16.msra.mxu1 %v5908_v42 }
 0x595   :  { %2068 = vmatprep.subr.bf16.mxu0 %v5909_v40  ;;  %2109 = vmatprep.subr.bf16.mxu1 %v5910_v20  ;;  %v4765_v52 = vadd.f32 %v1922_v57, %v1921_v59  ;;  %v4778_v59 = vld [vmem:[#allocation4 + $0x4] ss:$16 sps:$4 sm:$0xff]  }
 0x596   :  { %5917 = vst [vmem:[#allocation65_spill] sm:$0xff] %v4778_v59 }
 0x597   :  { %3190 = vtanh.f32 %v4765_v52 }
 0x598   :  { %2069 = vmatpush1.bf16.msra.mxu0 %v5911_v14  ;;  %2110 = vmatpush1.bf16.msra.mxu1 %v5912_v17  ;;  %v3189_v57 = vpop.eup %3188 }
 0x599   :  { %2070 = vmatprep.subr.bf16.mxu0 %v5913_v56  ;;  %2111 = vmatprep.subr.bf16.mxu1 %v5914_v29  ;;  %v5952_v29 = vld [vmem:[#allocation25_spill] sm:$0xff] }
 0x59c   :  { %2071 = vmatpush1.bf16.msra.mxu0 %v5915_v32  ;;  %2112 = vmatpush1.bf16.msra.mxu1 %v4643_v28 }
 0x59d   :  { %2072 = vmatprep.subr.bf16.mxu0 %v5916_v60  ;;  %2113 = vmatprep.subr.bf16.mxu1 %v4649_v36  ;;  %v5951_v36 = vld [vmem:[#allocation24_spill] sm:$0xff] }
 0x5a0   :  { %2073 = vmatpush1.bf16.msra.mxu0 %v4652_v21  ;;  %2114 = vmatpush1.bf16.msra.mxu1 %v4655_v5  ;;  %v4786_v21 = vld [vmem:[#allocation4] ss:$16 sps:$4 sm:$0xff]   ;;  %v4789_v5 = vld [vmem:[#allocation4 + $0x8] ss:$16 sps:$4 sm:$0xff]  }
 0x5a1   :  { %v3191_v51 = vpop.eup %3190  ;;  %2153 = vmatprep.subr.bf16.mxu0 %v4778_v59  ;;  %2194 = vmatprep.subr.bf16.mxu1 %v4781_v50  ;;  %5919 = vst [vmem:[#allocation67_spill] sm:$0xff] %v4786_v21  ;;  %5920 = vst [vmem:[#allocation84_spill] sm:$0xff] %v4789_v5  ;;  %v4792_v59 = vld [vmem:[#allocation4 + $0x24] ss:$16 sps:$4 sm:$0xff]  }
 0x5a2   :  { %v1925_v32 = vmul.f32 %v3191_v51, %v3189_v57  ;;  %5921 = vst [vmem:[#allocation85_spill] sm:$0xff] %v4792_v59  ;;  %v4795_v57 = vld [vmem:[#allocation4 + $0x2c] ss:$16 sps:$4 sm:$0xff]  }
 0x5a3   :  { %5922 = vst [vmem:[#allocation86_spill] sm:$0xff] %v4795_v57  ;;  %v4809_v51 = vld [vmem:[#allocation4 + $0x4c] ss:$16 sps:$4 sm:$0xff]  }
 0x5a4   :  { %v2041_v28 = vpack.c.bf16 %v1925_v32, %v1925_v32  ;;  %v4806_v32 = vld [vmem:[#allocation4 + $0x44] ss:$16 sps:$4 sm:$0xff]   ;;  %5926 = vst [vmem:[#allocation90_spill] sm:$0xff] %v4809_v51 }
 0x5a5   :  { %5925 = vst [vmem:[#allocation89_spill] sm:$0xff] %v4806_v32 }
 0x5a6   :  { %2074 = vmatprep.mubr.bf16.mxu0 %v2041_v28  ;;  %2115 = vmatprep.mubr.bf16.mxu1 %v2041_v28  ;;  %v4800_v28 = vld [vmem:[#allocation4 + $0x20] ss:$16 sps:$4 sm:$0xff]  }
 0x5a7   :  { %2075 = vmatmul.mubr.bf16.vlgmr.msra.gmra.mrb[56].mxu0 %v4704_v6  ;;  %2116 = vmatmul.mubr.bf16.vlgmr.msra.gmra.mrb[56].mxu1 %v4704_v6  ;;  %5923 = vst [vmem:[#allocation87_spill] sm:$0xff] %v4800_v28  ;;  %v4803_v6 = vld [vmem:[#allocation4 + $0x28] ss:$16 sps:$4 sm:$0xff]  }
 0x5a8   :  { %2154 = vmatpush1.bf16.msra.mxu0 %v4786_v21  ;;  %2195 = vmatpush1.bf16.msra.mxu1 %v4789_v5  ;;  %5924 = vst [vmem:[#allocation88_spill] sm:$0xff] %v4803_v6  ;;  %v5950_v5 = vld [vmem:[#allocation23_spill] sm:$0xff] }
 0x5a9   :  { %2155 = vmatprep.subr.bf16.mxu0 %v4792_v59  ;;  %2196 = vmatprep.subr.bf16.mxu1 %v4795_v57  ;;  %v4812_v57 = vld [vmem:[#allocation4 + $0x40] ss:$16 sps:$4 sm:$0xff]  }
 0x5aa   :  { %2185 = vmatprep.mubr.bf16.mxu0 %v5791_v8  ;;  %2226 = vmatprep.mubr.bf16.mxu1 %v5791_v8  ;;  %5927 = vst [vmem:[#allocation91_spill] sm:$0xff] %v4812_v57  ;;  %v4815_v8 = vld [vmem:[#allocation4 + $0x48] ss:$16 sps:$4 sm:$0xff]   ;;  %v5949_v59 = vld [vmem:[#allocation22_spill] sm:$0xff] }
 0x5ab   :  { %5928 = vst [vmem:[#allocation92_spill] sm:$0xff] %v4815_v8 }
 0x5ac   :  { %2156 = vmatpush1.bf16.msra.mxu0 %v4800_v28  ;;  %2197 = vmatpush1.bf16.msra.mxu1 %v4803_v6  ;;  %v4818_v28 = vld [vmem:[#allocation4 + $0x64] ss:$16 sps:$4 sm:$0xff]   ;;  %v4821_v6 = vld [vmem:[#allocation4 + $0x6c] ss:$16 sps:$4 sm:$0xff]  }
 0x5ad   :  { %2157 = vmatprep.subr.bf16.mxu0 %v4806_v32  ;;  %2198 = vmatprep.subr.bf16.mxu1 %v4809_v51  ;;  %5929 = vst [vmem:[#allocation93_spill] sm:$0xff] %v4818_v28  ;;  %5930 = vst [vmem:[#allocation94_spill] sm:$0xff] %v4821_v6  ;;  %v4824_v32 = vld [vmem:[#allocation4 + $0x60] ss:$16 sps:$4 sm:$0xff]   ;;  %v4827_v51 = vld [vmem:[#allocation4 + $0x68] ss:$16 sps:$4 sm:$0xff]  }
 0x5ae   :  { %5931 = vst [vmem:[#allocation14_spill] sm:$0xff] %v4824_v32  ;;  %5932 = vst [vmem:[#allocation15_spill] sm:$0xff] %v4827_v51 }
 0x5b0   :  { %2158 = vmatpush1.bf16.msra.mxu0 %v4812_v57  ;;  %2199 = vmatpush1.bf16.msra.mxu1 %v4815_v8  ;;  %v4830_v57 = vld [vmem:[#allocation4 + $0x84] ss:$16 sps:$4 sm:$0xff]   ;;  %v4833_v8 = vld [vmem:[#allocation4 + $0x8c] ss:$16 sps:$4 sm:$0xff]  }
 0x5b1   :  { %2159 = vmatprep.subr.bf16.mxu0 %v4818_v28  ;;  %2200 = vmatprep.subr.bf16.mxu1 %v4821_v6  ;;  %5933 = vst [vmem:[#allocation16_spill] sm:$0xff] %v4830_v57  ;;  %5934 = vst [vmem:[#allocation17_spill] sm:$0xff] %v4833_v8  ;;  %v4836_v28 = vld [vmem:[#allocation4 + $0x80] ss:$16 sps:$4 sm:$0xff]   ;;  %v4839_v6 = vld [vmem:[#allocation4 + $0x88] ss:$16 sps:$4 sm:$0xff]  }
 0x5b2   :  { %5935 = vst [vmem:[#allocation18_spill] sm:$0xff] %v4836_v28  ;;  %5936 = vst [vmem:[#allocation19_spill] sm:$0xff] %v4839_v6 }
 0x5b4   :  { %2160 = vmatpush1.bf16.msra.mxu0 %v4824_v32  ;;  %2201 = vmatpush1.bf16.msra.mxu1 %v4827_v51  ;;  %v4842_v32 = vld [vmem:[#allocation4 + $0xa4] ss:$16 sps:$4 sm:$0xff]   ;;  %v4845_v51 = vld [vmem:[#allocation4 + $0xac] ss:$16 sps:$4 sm:$0xff]  }
 0x5b5   :  { %2161 = vmatprep.subr.bf16.mxu0 %v4830_v57  ;;  %2202 = vmatprep.subr.bf16.mxu1 %v4833_v8  ;;  %5937 = vst [vmem:[#allocation20_spill] sm:$0xff] %v4842_v32  ;;  %5938 = vst [vmem:[#allocation21_spill] sm:$0xff] %v4845_v51  ;;  %v4848_v57 = vld [vmem:[#allocation4 + $0xa0] ss:$16 sps:$4 sm:$0xff]   ;;  %v4851_v8 = vld [vmem:[#allocation4 + $0xa8] ss:$16 sps:$4 sm:$0xff]  }
 0x5b6   :  { %5939 = vst [vmem:[#allocation10_spill] sm:$0xff] %v4848_v57  ;;  %5940 = vst [vmem:[#allocation11_spill] sm:$0xff] %v4851_v8 }
 0x5b8   :  { %2162 = vmatpush1.bf16.msra.mxu0 %v4836_v28  ;;  %2203 = vmatpush1.bf16.msra.mxu1 %v4839_v6  ;;  %v4854_v28 = vld [vmem:[#allocation4 + $0xc4] ss:$16 sps:$4 sm:$0xff]   ;;  %v4857_v6 = vld [vmem:[#allocation4 + $0xcc] ss:$16 sps:$4 sm:$0xff]  }
 0x5b9   :  { %2163 = vmatprep.subr.bf16.mxu0 %v4842_v32  ;;  %2204 = vmatprep.subr.bf16.mxu1 %v4845_v51  ;;  %5941 = vst [vmem:[#allocation12_spill] sm:$0xff] %v4854_v28  ;;  %5942 = vst [vmem:[#allocation13_spill] sm:$0xff] %v4857_v6  ;;  %v4860_v32 = vld [vmem:[#allocation4 + $0xc0] ss:$16 sps:$4 sm:$0xff]   ;;  %v4863_v51 = vld [vmem:[#allocation4 + $0xc8] ss:$16 sps:$4 sm:$0xff]  }
 0x5ba   :  { %5943 = vst [vmem:[#allocation52_spill] sm:$0xff] %v4860_v32  ;;  %5944 = vst [vmem:[#allocation53_spill] sm:$0xff] %v4863_v51 }
 0x5bc   :  { %2164 = vmatpush1.bf16.msra.mxu0 %v4848_v57  ;;  %2205 = vmatpush1.bf16.msra.mxu1 %v4851_v8  ;;  %v4866_v57 = vld [vmem:[#allocation4 + $0xe4] ss:$16 sps:$4 sm:$0xff]   ;;  %v4869_v8 = vld [vmem:[#allocation4 + $0xec] ss:$16 sps:$4 sm:$0xff]  }
 0x5bd   :  { %2165 = vmatprep.subr.bf16.mxu0 %v4854_v28  ;;  %2206 = vmatprep.subr.bf16.mxu1 %v4857_v6  ;;  %5945 = vst [vmem:[#allocation54_spill] sm:$0xff] %v4866_v57  ;;  %5946 = vst [vmem:[#allocation55_spill] sm:$0xff] %v4869_v8  ;;  %v4872_v28 = vld [vmem:[#allocation4 + $0xe0] ss:$16 sps:$4 sm:$0xff]   ;;  %v4875_v6 = vld [vmem:[#allocation4 + $0xe8] ss:$16 sps:$4 sm:$0xff]  }
 0x5be   :  { %5947 = vst [vmem:[#allocation56_spill] sm:$0xff] %v4872_v28  ;;  %5948 = vst [vmem:[#allocation57_spill] sm:$0xff] %v4875_v6 }
 0x5c0   :  { %2166 = vmatpush1.bf16.msra.mxu0 %v4860_v32  ;;  %2207 = vmatpush1.bf16.msra.mxu1 %v4863_v51 }
 0x5c1   :  { %2167 = vmatprep.subr.bf16.mxu0 %v4866_v57  ;;  %2208 = vmatprep.subr.bf16.mxu1 %v4869_v8 }
 0x5c4   :  { %2168 = vmatpush1.bf16.msra.mxu0 %v4872_v28  ;;  %2209 = vmatpush1.bf16.msra.mxu1 %v4875_v6 }
 0x5c5   :  { %2264 = vmatprep.subr.bf16.mxu0 %v4446_v13  ;;  %2305 = vmatprep.subr.bf16.mxu1 %v4449_v15 }
 0x636   :  { %v1965_v51 = vpop.f32.mrb[52].mxu0  ;;  %v2006_v32 = vpop.f32.mrb[52].mxu1 }
 0x637   :  { %v2013_v57 = vadd.f32 %v1965_v51, %v5949_v59  ;;  %v2015_v21 = vadd.f32 %v2006_v32, %v5950_v5  ;;  %v1967_v50 = vpop.f32.mrb[53].mxu0  ;;  %v2008_v8 = vpop.f32.mrb[53].mxu1  ;;  %v5966_v32 = vld [vmem:[#allocation42_spill] sm:$0xff]  ;;  %v5967_v51 = vld [vmem:[#allocation43_spill] sm:$0xff] }
 0x638   :  { %v2014_v60 = vadd.f32 %v1967_v50, %v5951_v36  ;;  %v2016_v28 = vadd.f32 %v2008_v8, %v5952_v29  ;;  %v1969_v56 = vpop.f32.mrb[54].mxu0  ;;  %v2010_v17 = vpop.f32.mrb[54].mxu1 }
 0x639   :  { %v2867_v14 = vmul.f32 -1.442695, %v2013_v57  ;;  %v1970_v6 = vpop.f32.mrb[55].mxu0  ;;  %v2011_v20 = vpop.f32.mrb[55].mxu1 }
 0x63a   :  { %v2868_v13 = vmul.f32 -1.442695, %v2014_v60  ;;  %v2869_v15 = vmul.f32 -1.442695, %v2016_v28  ;;  %v5965_v6 = vld [vmem:[#allocation41_spill] sm:$0xff] }
 0x63b   :  { %3192 = vpow2.f32 %v2867_v14 }
 0x63c   :  { %3194 = vpow2.f32 %v2868_v13  ;;  %v5968_v13 = vld [vmem:[#allocation44_spill] sm:$0xff] }
 0x63d   :  { %3196 = vpow2.f32 %v2869_v15  ;;  %v5969_v15 = vld [vmem:[#allocation45_spill] sm:$0xff] }
 0x63e   :  { %3198 = vtanh.f32 %v2015_v21 }
 0x645   :  { %v3193_v40 = vpop.eup %3192 }
 0x646   :  { %v3195_v42 = vpop.eup %3194  ;;  %v2020_v59 = vadd.f32 1.0, %v3193_v40 }
 0x647   :  { %v2026_v5 = vadd.f32 1.0, %v3195_v42  ;;  %v3197_v36 = vpop.eup %3196 }
 0x648   :  { %3200 = vrcp.f32 %v2020_v59  ;;  %v3199_v50 = vpop.eup %3198  ;;  %v2033_v29 = vadd.f32 1.0, %v3197_v36  ;;  %v5970_v59 = vld [vmem:[#allocation46_spill] sm:$0xff] }
 0x649   :  { %3202 = vrcp.f32 %v2026_v5  ;;  %v5973_v5 = vld [vmem:[#allocation49_spill] sm:$0xff]  ;;  %v5974_v36 = vld [vmem:[#allocation50_spill] sm:$0xff] }
 0x64a   :  { %3204 = vrcp.f32 %v2033_v29  ;;  %v5978_v29 = vld [vmem:[#allocation65_spill] sm:$0xff] }
 0x652   :  { %v3201_v8 = vpop.eup %3200 }
 0x653   :  { %v3203_v56 = vpop.eup %3202  ;;  %v2037_v17 = vmul.f32 %v3201_v8, %v3199_v50  ;;  %v5975_v50 = vld [vmem:[#allocation51_spill] sm:$0xff]  ;;  %v5976_v8 = vld [vmem:[#allocation61_spill] sm:$0xff] }
 0x654   :  { %v2036_v20 = vmul.f32 %v3203_v56, %v4701_v43  ;;  %v3205_v14 = vpop.eup %3204  ;;  %v5977_v56 = vld [vmem:[#allocation64_spill] sm:$0xff] }
 0x656   :  { %v4885_v60 = vadd.f32 %v2037_v17, %v2036_v20  ;;  %v5979_v20 = vld [vmem:[#allocation66_spill] sm:$0xff] }
 0x658   :  { %3206 = vtanh.f32 %v4885_v60 }
 0x662   :  { %v3207_v40 = vpop.eup %3206 }
 0x663   :  { %v2040_v57 = vmul.f32 %v3207_v40, %v3205_v14 }
 0x665   :  { %v4888_v21 = vpack.c.bf16 %v2040_v57, %v2040_v57 }
 0x667   :  { %2186 = vmatmul.mubr.bf16.vlgmr.msra.gmra.mrb[60].mxu0 %v4888_v21  ;;  %2227 = vmatmul.mubr.bf16.vlgmr.msra.gmra.mrb[60].mxu1 %v4888_v21 }
 0x668   :  { %2265 = vmatpush1.bf16.msra.mxu0 %v4464_v18  ;;  %2306 = vmatpush1.bf16.msra.mxu1 %v4467_v2 }
 0x669   :  { %2266 = vmatprep.subr.bf16.mxu0 %v4470_v55  ;;  %2307 = vmatprep.subr.bf16.mxu1 %v4473_v48 }
 0x66c   :  { %2267 = vmatpush1.bf16.msra.mxu0 %v4476_v62  ;;  %2308 = vmatpush1.bf16.msra.mxu1 %v4479_v12 }
 0x66d   :  { %2268 = vmatprep.subr.bf16.mxu0 %v4482_v61  ;;  %2309 = vmatprep.subr.bf16.mxu1 %v5873_v22 }
 0x670   :  { %2269 = vmatpush1.bf16.msra.mxu0 %v5874_v27  ;;  %2310 = vmatpush1.bf16.msra.mxu1 %v5875_v47 }
 0x671   :  { %2270 = vmatprep.subr.bf16.mxu0 %v5876_v23  ;;  %2311 = vmatprep.subr.bf16.mxu1 %v5877_v16  ;;  %v5954_v23 = vld [vmem:[#allocation74_spill] sm:$0xff] }
 0x674   :  { %2271 = vmatpush1.bf16.msra.mxu0 %v5878_v1  ;;  %2312 = vmatpush1.bf16.msra.mxu1 %v5879_v10 }
 0x675   :  { %2272 = vmatprep.subr.bf16.mxu0 %v5880_v63  ;;  %2313 = vmatprep.subr.bf16.mxu1 %v5881_v0  ;;  %v5955_v63 = vld [vmem:[#allocation77_spill] sm:$0xff]  ;;  %v5956_v0 = vld [vmem:[#allocation78_spill] sm:$0xff] }
 0x678   :  { %2273 = vmatpush1.bf16.msra.mxu0 %v5882_v54  ;;  %2314 = vmatpush1.bf16.msra.mxu1 %v5883_v37  ;;  %v5957_v54 = vld [vmem:[#allocation79_spill] sm:$0xff]  ;;  %v5958_v37 = vld [vmem:[#allocation80_spill] sm:$0xff] }
 0x679   :  { %2274 = vmatprep.subr.bf16.mxu0 %v4519_v49  ;;  %2315 = vmatprep.subr.bf16.mxu1 %v4522_v24 }
 0x67a   :  { %v2076_v18 = vpop.f32.mrb[56].mxu0  ;;  %v2117_v2 = vpop.f32.mrb[56].mxu1 }
 0x67b   :  { %v2077_v55 = vadd.f32 %v2076_v18, %v5884_v30  ;;  %v2078_v48 = vpop.f32.mrb[57].mxu0  ;;  %v2119_v62 = vpop.f32.mrb[57].mxu1  ;;  %v2118_v24 = vadd.f32 %v2117_v2, %v5894_v3  ;;  %v5980_v18 = vld [vmem:[#allocation67_spill] sm:$0xff]  ;;  %v5981_v2 = vld [vmem:[#allocation84_spill] sm:$0xff] }
 0x67c   :  { %v2079_v12 = vadd.f32 %v2078_v48, %v4161_v7  ;;  %v2080_v61 = vpop.f32.mrb[58].mxu0  ;;  %v2121_v43 = vpop.f32.mrb[58].mxu1  ;;  %2275 = vmatpush1.bf16.msra.mxu0 %v4526_v53  ;;  %2316 = vmatpush1.bf16.msra.mxu1 %v4529_v46  ;;  %v2120_v53 = vadd.f32 %v2119_v62, %v5887_v31  ;;  %v5953_v46 = vld [vmem:[#allocation73_spill] sm:$0xff]  ;;  %v5983_v48 = vld [vmem:[#allocation86_spill] sm:$0xff]  ;;  %v5984_v62 = vmov 0  }
 0x67d   :  { %v2870_v22 = vmul.f32 -1.442695, %v2077_v55  ;;  %v2081_v27 = vpop.f32.mrb[59].mxu0  ;;  %v2122_v47 = vpop.f32.mrb[59].mxu1  ;;  %2276 = vmatprep.subr.bf16.mxu0 %v4532_v4  ;;  %2317 = vmatprep.subr.bf16.mxu1 %v4535_v35  ;;  %v5982_v55 = vld [vmem:[#allocation85_spill] sm:$0xff]  ;;  %v5986_v61 = vld [vmem:[#allocation88_spill] sm:$0xff] }
 0x67e   :  { %v2871_v49 = vmul.f32 -1.442695, %v2079_v12  ;;  %v2872_v4 = vmul.f32 -1.442695, %v2120_v53  ;;  %v5985_v12 = vld [vmem:[#allocation87_spill] sm:$0xff]  ;;  %v5987_v43 = vld [vmem:[#allocation89_spill] sm:$0xff] }
 0x67f   :  { %3208 = vpow2.f32 %v2870_v22  ;;  %v5988_v22 = vld [vmem:[#allocation90_spill] sm:$0xff]  ;;  %v5990_v27 = vld [vmem:[#allocation92_spill] sm:$0xff]  ;;  %v5991_v47 = vld [vmem:[#allocation93_spill] sm:$0xff] }
 0x680   :  { %3210 = vpow2.f32 %v2871_v49  ;;  %2277 = vmatpush1.bf16.msra.mxu0 %v5885_v25  ;;  %2318 = vmatpush1.bf16.msra.mxu1 %v5886_v26  ;;  %v5959_v25 = vld [vmem:[#allocation81_spill] sm:$0xff]  ;;  %v5960_v26 = vld [vmem:[#allocation36_spill] sm:$0xff]  ;;  %v5992_v49 = vld [vmem:[#allocation94_spill] sm:$0xff] }
 0x681   :  { %2278 = vmatprep.subr.bf16.mxu0 %v5888_v33  ;;  %2319 = vmatprep.subr.bf16.mxu1 %v5889_v34  ;;  %3212 = vpow2.f32 %v2872_v4  ;;  %v5961_v33 = vld [vmem:[#allocation37_spill] sm:$0xff]  ;;  %v5993_v53 = vld [vmem:[#allocation14_spill] sm:$0xff]  ;;  %v5994_v4 = vld [vmem:[#allocation15_spill] sm:$0xff] }
 0x682   :  { %3214 = vtanh.f32 %v2118_v24  ;;  %v5995_v24 = vld [vmem:[#allocation16_spill] sm:$0xff] }
 0x684   :  { %2279 = vmatpush1.bf16.msra.mxu0 %v5890_v39  ;;  %2320 = vmatpush1.bf16.msra.mxu1 %v5891_v41  ;;  %v5962_v39 = vld [vmem:[#allocation38_spill] sm:$0xff] }
 0x685   :  { %2280 = vmatprep.subr.bf16.mxu0 %v5892_v9  ;;  %2321 = vmatprep.subr.bf16.mxu1 %v5893_v44  ;;  %v5963_v9 = vld [vmem:[#allocation39_spill] sm:$0xff]  ;;  %v5964_v44 = vld [vmem:[#allocation40_spill] sm:$0xff] }
 0x688   :  { %2281 = vmatpush1.bf16.msra.mxu0 %v5895_v58  ;;  %2322 = vmatpush1.bf16.msra.mxu1 %v5953_v46  ;;  %v5996_v46 = vld [vmem:[#allocation17_spill] sm:$0xff] }
 0x689   :  { %v3209_v35 = vpop.eup %3208  ;;  %2282 = vmatprep.subr.bf16.mxu0 %v5954_v23  ;;  %2323 = vmatprep.subr.bf16.mxu1 %v5898_v11  ;;  %v5998_v23 = vld [vmem:[#allocation19_spill] sm:$0xff] }
 0x68a   :  { %v3211_v16 = vpop.eup %3210  ;;  %v2127_v1 = vadd.f32 1.0, %v3209_v35  ;;  %v5997_v35 = vld [vmem:[#allocation18_spill] sm:$0xff] }
 0x68b   :  { %v2133_v10 = vadd.f32 1.0, %v3211_v16  ;;  %v3213_v34 = vpop.eup %3212  ;;  %v5999_v16 = vld [vmem:[#allocation20_spill] sm:$0xff] }
 0x68c   :  { %3216 = vrcp.f32 %v2127_v1  ;;  %2283 = vmatpush1.bf16.msra.mxu0 %v5899_v19  ;;  %2324 = vmatpush1.bf16.msra.mxu1 %v5955_v63  ;;  %v3215_v41 = vpop.eup %3214  ;;  %v2140_v42 = vadd.f32 1.0, %v3213_v34  ;;  %v6000_v1 = vld [vmem:[#allocation21_spill] sm:$0xff]  ;;  %v6002_v63 = vld [vmem:[#allocation11_spill] sm:$0xff]  ;;  %v6009_v34 = vld [vmem:[#allocation56_spill] sm:$0xff] }
 0x68d   :  { %3218 = vrcp.f32 %v2133_v10  ;;  %2284 = vmatprep.subr.bf16.mxu0 %v5956_v0  ;;  %2325 = vmatprep.subr.bf16.mxu1 %v5957_v54  ;;  %v6001_v10 = vld [vmem:[#allocation10_spill] sm:$0xff]  ;;  %v6003_v0 = vld [vmem:[#allocation12_spill] sm:$0xff]  ;;  %v6004_v54 = vld [vmem:[#allocation13_spill] sm:$0xff] }
 0x68e   :  { %3220 = vrcp.f32 %v2140_v42  ;;  %v6012_v42 = vld [vmem:[#allocation27_spill] sm:$0xff] }
 0x690   :  { %2285 = vmatpush1.bf16.msra.mxu0 %v5958_v37  ;;  %2326 = vmatpush1.bf16.msra.mxu1 %v5959_v25  ;;  %v6005_v37 = vld [vmem:[#allocation52_spill] sm:$0xff]  ;;  %v6006_v25 = vld [vmem:[#allocation53_spill] sm:$0xff] }
 0x691   :  { %2286 = vmatprep.subr.bf16.mxu0 %v5960_v26  ;;  %2327 = vmatprep.subr.bf16.mxu1 %v5961_v33  ;;  %v6007_v26 = vld [vmem:[#allocation54_spill] sm:$0xff]  ;;  %v6008_v33 = vld [vmem:[#allocation55_spill] sm:$0xff] }
 0x694   :  { %2287 = vmatpush1.bf16.msra.mxu0 %v5962_v39  ;;  %2328 = vmatpush1.bf16.msra.mxu1 %v4603_v38  ;;  %v6010_v39 = vld [vmem:[#allocation57_spill] sm:$0xff] }
 0x695   :  { %2288 = vmatprep.subr.bf16.mxu0 %v5963_v9  ;;  %2329 = vmatprep.subr.bf16.mxu1 %v5964_v44  ;;  %v5001_v9 = vld [vmem:[#allocation6 + $0xc] ss:$16 sps:$4 sm:$0xff]  }
 0x696   :  { %v3217_v58 = vpop.eup %3216 }
 0x697   :  { %v3219_v11 = vpop.eup %3218  ;;  %v2144_v19 = vmul.f32 %v3217_v58, %v3215_v41  ;;  %v4998_v41 = vld [vmem:[#allocation6 + $0x4] ss:$16 sps:$4 sm:$0xff]  }
 0x698   :  { %v2143_v28 = vmul.f32 %v3219_v11, %v4765_v52  ;;  %2289 = vmatpush1.bf16.msra.mxu0 %v4613_v45  ;;  %2330 = vmatpush1.bf16.msra.mxu1 %v5965_v6  ;;  %v5971_v52 = vld [vmem:[#allocation47_spill] sm:$0xff]  ;;  %v5972_v45 = vld [vmem:[#allocation48_spill] sm:$0xff]  ;;  %v3221_v17 = vpop.eup %3220  ;;  %v6011_v11 = vld [vmem:[#allocation26_spill] sm:$0xff] }
 0x699   :  { %2290 = vmatprep.subr.bf16.mxu0 %v5966_v32  ;;  %2331 = vmatprep.subr.bf16.mxu1 %v5967_v51  ;;  %v6013_v51 = vld [vmem:[#allocation28_spill] sm:$0xff] }
 0x69a   :  { %v4949_v38 = vadd.f32 %v2144_v19, %v2143_v28 }
 0x69c   :  { %2291 = vmatpush1.bf16.msra.mxu0 %v5968_v13  ;;  %2332 = vmatpush1.bf16.msra.mxu1 %v5969_v15  ;;  %3222 = vtanh.f32 %v4949_v38  ;;  %v6014_v15 = vld [vmem:[#allocation29_spill] sm:$0xff] }
 0x69d   :  { %2292 = vmatprep.subr.bf16.mxu0 %v5970_v59  ;;  %2333 = vmatprep.subr.bf16.mxu1 %v5971_v52 }
 0x6a0   :  { %2293 = vmatpush1.bf16.msra.mxu0 %v5972_v45  ;;  %2334 = vmatpush1.bf16.msra.mxu1 %v5973_v5 }
 0x6a1   :  { %2294 = vmatprep.subr.bf16.mxu0 %v5974_v36  ;;  %2335 = vmatprep.subr.bf16.mxu1 %v5975_v50 }
 0x6a4   :  { %2295 = vmatpush1.bf16.msra.mxu0 %v5976_v8  ;;  %2336 = vmatpush1.bf16.msra.mxu1 %v5977_v56 }
 0x6a5   :  { %2375 = vmatprep.subr.bf16.mxu0 %v5978_v29  ;;  %2416 = vmatprep.subr.bf16.mxu1 %v5979_v20 }
 0x6a6   :  { %v3223_v14 = vpop.eup %3222 }
 0x6a7   :  { %v2147_v40 = vmul.f32 %v3223_v14, %v3221_v17 }
 0x6a9   :  { %v2263_v57 = vpack.c.bf16 %v2147_v40, %v2147_v40 }
 0x6ab   :  { %2296 = vmatprep.mubr.bf16.mxu0 %v2263_v57  ;;  %2337 = vmatprep.mubr.bf16.mxu1 %v2263_v57 }
 0x6ac   :  { %2297 = vmatmul.mubr.bf16.vlgmr.msra.gmra.mrb[64].mxu0 %v4888_v21  ;;  %2338 = vmatmul.mubr.bf16.vlgmr.msra.gmra.mrb[64].mxu1 %v4888_v21  ;;  %v5989_v21 = vld [vmem:[#allocation91_spill] sm:$0xff] }
 0x6ad   :  { %2376 = vmatpush1.bf16.msra.mxu0 %v5980_v18  ;;  %2417 = vmatpush1.bf16.msra.mxu1 %v5981_v2 }
 0x6ae   :  { %2377 = vmatprep.subr.bf16.mxu0 %v5982_v55  ;;  %2418 = vmatprep.subr.bf16.mxu1 %v5983_v48 }
 0x6af   :  { %2407 = vmatprep.mubr.bf16.mxu0 %v5984_v62  ;;  %2448 = vmatprep.mubr.bf16.mxu1 %v5984_v62 }
 0x6b1   :  { %2378 = vmatpush1.bf16.msra.mxu0 %v5985_v12  ;;  %2419 = vmatpush1.bf16.msra.mxu1 %v5986_v61 }
 0x6b2   :  { %2379 = vmatprep.subr.bf16.mxu0 %v5987_v43  ;;  %2420 = vmatprep.subr.bf16.mxu1 %v5988_v22 }
 0x6b5   :  { %2380 = vmatpush1.bf16.msra.mxu0 %v5989_v21  ;;  %2421 = vmatpush1.bf16.msra.mxu1 %v5990_v27  ;;  %v5016_v27 = vld [vmem:[#allocation6] ss:$16 sps:$4 sm:$0xff]  }
 0x6b6   :  { %2381 = vmatprep.subr.bf16.mxu0 %v5991_v47  ;;  %2422 = vmatprep.subr.bf16.mxu1 %v5992_v49  ;;  %v5019_v47 = vld [vmem:[#allocation6 + $0x8] ss:$16 sps:$4 sm:$0xff]   ;;  %v5025_v49 = vld [vmem:[#allocation6 + $0x2c] ss:$16 sps:$4 sm:$0xff]  }
 0x6b9   :  { %2382 = vmatpush1.bf16.msra.mxu0 %v5993_v53  ;;  %2423 = vmatpush1.bf16.msra.mxu1 %v5994_v4  ;;  %v5028_v53 = vld [vmem:[#allocation6 + $0x20] ss:$16 sps:$4 sm:$0xff]   ;;  %v5031_v4 = vld [vmem:[#allocation6 + $0x28] ss:$16 sps:$4 sm:$0xff]  }
 0x6ba   :  { %2383 = vmatprep.subr.bf16.mxu0 %v5995_v24  ;;  %2424 = vmatprep.subr.bf16.mxu1 %v5996_v46  ;;  %v5034_v24 = vld [vmem:[#allocation6 + $0x44] ss:$16 sps:$4 sm:$0xff]   ;;  %v5037_v46 = vld [vmem:[#allocation6 + $0x4c] ss:$16 sps:$4 sm:$0xff]  }
 0x6bd   :  { %2384 = vmatpush1.bf16.msra.mxu0 %v5997_v35  ;;  %2425 = vmatpush1.bf16.msra.mxu1 %v5998_v23  ;;  %v5040_v35 = vld [vmem:[#allocation6 + $0x40] ss:$16 sps:$4 sm:$0xff]   ;;  %v5043_v23 = vld [vmem:[#allocation6 + $0x48] ss:$16 sps:$4 sm:$0xff]  }
 0x6be   :  { %2385 = vmatprep.subr.bf16.mxu0 %v5999_v16  ;;  %2426 = vmatprep.subr.bf16.mxu1 %v6000_v1  ;;  %v5046_v16 = vld [vmem:[#allocation6 + $0x64] ss:$16 sps:$4 sm:$0xff]   ;;  %v5049_v1 = vld [vmem:[#allocation6 + $0x6c] ss:$16 sps:$4 sm:$0xff]  }
 0x6c1   :  { %2386 = vmatpush1.bf16.msra.mxu0 %v6001_v10  ;;  %2427 = vmatpush1.bf16.msra.mxu1 %v6002_v63  ;;  %v5052_v10 = vld [vmem:[#allocation6 + $0x60] ss:$16 sps:$4 sm:$0xff]   ;;  %v5055_v63 = vld [vmem:[#allocation6 + $0x68] ss:$16 sps:$4 sm:$0xff]  }
 0x6c2   :  { %2387 = vmatprep.subr.bf16.mxu0 %v6003_v0  ;;  %2428 = vmatprep.subr.bf16.mxu1 %v6004_v54  ;;  %v5058_v0 = vld [vmem:[#allocation6 + $0x84] ss:$16 sps:$4 sm:$0xff]   ;;  %v5061_v54 = vld [vmem:[#allocation6 + $0x8c] ss:$16 sps:$4 sm:$0xff]  }
 0x6c5   :  { %2388 = vmatpush1.bf16.msra.mxu0 %v6005_v37  ;;  %2429 = vmatpush1.bf16.msra.mxu1 %v6006_v25  ;;  %v5064_v37 = vld [vmem:[#allocation6 + $0x80] ss:$16 sps:$4 sm:$0xff]   ;;  %v5067_v25 = vld [vmem:[#allocation6 + $0x88] ss:$16 sps:$4 sm:$0xff]  }
 0x6c6   :  { %2389 = vmatprep.subr.bf16.mxu0 %v6007_v26  ;;  %2430 = vmatprep.subr.bf16.mxu1 %v6008_v33  ;;  %v5070_v26 = vld [vmem:[#allocation6 + $0xa4] ss:$16 sps:$4 sm:$0xff]   ;;  %v5073_v33 = vld [vmem:[#allocation6 + $0xac] ss:$16 sps:$4 sm:$0xff]  }
 0x6c9   :  { %2390 = vmatpush1.bf16.msra.mxu0 %v6009_v34  ;;  %2431 = vmatpush1.bf16.msra.mxu1 %v6010_v39 }
 0x6ca   :  { %2486 = vmatprep.subr.bf16.mxu0 %v4998_v41  ;;  %2527 = vmatprep.subr.bf16.mxu1 %v5001_v9 }
 0x73a   :  { %v2187_v44 = vpop.f32.mrb[60].mxu0  ;;  %v2228_v58 = vpop.f32.mrb[60].mxu1 }
 0x73b   :  { %v2235_v19 = vadd.f32 %v2187_v44, %v6011_v11  ;;  %v2237_v28 = vadd.f32 %v2228_v58, %v6012_v42  ;;  %v2189_v6 = vpop.f32.mrb[61].mxu0  ;;  %v2230_v32 = vpop.f32.mrb[61].mxu1  ;;  %v5080_v42 = vld [vmem:[#allocation6 + $0xa8] ss:$16 sps:$4 sm:$0xff]  }
 0x73c   :  { %v2236_v13 = vadd.f32 %v2189_v6, %v6013_v51  ;;  %v2238_v59 = vadd.f32 %v2230_v32, %v6014_v15  ;;  %v2191_v52 = vpop.f32.mrb[62].mxu0  ;;  %v2232_v45 = vpop.f32.mrb[62].mxu1  ;;  %v5084_v51 = vld [vmem:[#allocation6 + $0xc4] ss:$16 sps:$4 sm:$0xff]  }
 0x73d   :  { %v2873_v5 = vmul.f32 -1.442695, %v2235_v19  ;;  %v2192_v36 = vpop.f32.mrb[63].mxu0  ;;  %v2233_v50 = vpop.f32.mrb[63].mxu1  ;;  %v5077_v19 = vld [vmem:[#allocation6 + $0xa0] ss:$16 sps:$4 sm:$0xff]  }
 0x73e   :  { %v2874_v8 = vmul.f32 -1.442695, %v2236_v13  ;;  %v2875_v56 = vmul.f32 -1.442695, %v2238_v59  ;;  %v5087_v13 = vld [vmem:[#allocation6 + $0xcc] ss:$16 sps:$4 sm:$0xff]  }
 0x73f   :  { %3224 = vpow2.f32 %v2873_v5  ;;  %v5090_v5 = vld [vmem:[#allocation6 + $0xc0] ss:$16 sps:$4 sm:$0xff]   ;;  %v5093_v36 = vld [vmem:[#allocation6 + $0xc8] ss:$16 sps:$4 sm:$0xff]   ;;  %v5096_v50 = vld [vmem:[#allocation6 + $0xe4] ss:$16 sps:$4 sm:$0xff]  }
 0x740   :  { %3226 = vpow2.f32 %v2874_v8  ;;  %v5099_v8 = vld [vmem:[#allocation6 + $0xec] ss:$16 sps:$4 sm:$0xff]  }
 0x741   :  { %3228 = vpow2.f32 %v2875_v56 }
 0x742   :  { %3230 = vtanh.f32 %v2237_v28 }
 0x749   :  { %v3225_v17 = vpop.eup %3224 }
 0x74a   :  { %v3227_v29 = vpop.eup %3226  ;;  %v2242_v20 = vadd.f32 1.0, %v3225_v17  ;;  %v5103_v17 = vld [vmem:[#allocation6 + $0xe0] ss:$16 sps:$4 sm:$0xff]  }
 0x74b   :  { %v2248_v14 = vadd.f32 1.0, %v3227_v29  ;;  %v3229_v40 = vpop.eup %3228  ;;  %v5106_v29 = vld [vmem:[#allocation6 + $0xe8] ss:$16 sps:$4 sm:$0xff]  }
 0x74c   :  { %3232 = vrcp.f32 %v2242_v20  ;;  %v3231_v57 = vpop.eup %3230  ;;  %v2255_v48 = vadd.f32 1.0, %v3229_v40  ;;  %v5109_v20 = vld [vmem:[#allocation6 + $0x104] ss:$16 sps:$4 sm:$0xff]  }
 0x74d   :  { %3234 = vrcp.f32 %v2248_v14  ;;  %v5112_v14 = vld [vmem:[#allocation6 + $0x10c] ss:$16 sps:$4 sm:$0xff]  }
 0x74e   :  { %3236 = vrcp.f32 %v2255_v48  ;;  %v5125_v48 = vld [vmem:[#allocation6 + $0x12c] ss:$16 sps:$4 sm:$0xff]  }
 0x756   :  { %v3233_v18 = vpop.eup %3232 }
 0x757   :  { %v3235_v2 = vpop.eup %3234  ;;  %v2259_v55 = vmul.f32 %v3233_v18, %v3231_v57  ;;  %v5116_v18 = vld [vmem:[#allocation6 + $0x100] ss:$16 sps:$4 sm:$0xff]  }
 0x758   :  { %v2258_v62 = vmul.f32 %v3235_v2, %v4885_v60  ;;  %v3237_v61 = vpop.eup %3236  ;;  %v5022_v60 = vld [vmem:[#allocation6 + $0x24] ss:$16 sps:$4 sm:$0xff]   ;;  %v5119_v2 = vld [vmem:[#allocation6 + $0x108] ss:$16 sps:$4 sm:$0xff]  }
 0x75a   :  { %v5009_v12 = vadd.f32 %v2259_v55, %v2258_v62  ;;  %v5122_v55 = vld [vmem:[#allocation6 + $0x124] ss:$16 sps:$4 sm:$0xff]  }
 0x75c   :  { %6015 = vst [vmem:[#allocation58_spill] sm:$0xff] %v5009_v12  ;;  %3238 = vtanh.f32 %v5009_v12  ;;  %v5201_v12 = vld [vmem:[#allocation6 + $0x1ec] ss:$16 sps:$4 sm:$0xff]  }
 0x766   :  { %v3239_v43 = vpop.eup %3238 }
 0x767   :  { %v2262_v22 = vmul.f32 %v3239_v43, %v3237_v61 }
 0x769   :  { %v5012_v21 = vpack.c.bf16 %v2262_v22, %v2262_v22 }
 0x76b   :  { %2408 = vmatmul.mubr.bf16.vlgmr.msra.gmra.mrb[68].mxu0 %v5012_v21  ;;  %2449 = vmatmul.mubr.bf16.vlgmr.msra.gmra.mrb[68].mxu1 %v5012_v21 }
 0x76c   :  { %2487 = vmatpush1.bf16.msra.mxu0 %v5016_v27  ;;  %2528 = vmatpush1.bf16.msra.mxu1 %v5019_v47 }
 0x76d   :  { %2488 = vmatprep.subr.bf16.mxu0 %v5022_v60  ;;  %2529 = vmatprep.subr.bf16.mxu1 %v5025_v49 }
 0x770   :  { %2489 = vmatpush1.bf16.msra.mxu0 %v5028_v53  ;;  %2530 = vmatpush1.bf16.msra.mxu1 %v5031_v4 }
 0x771   :  { %2490 = vmatprep.subr.bf16.mxu0 %v5034_v24  ;;  %2531 = vmatprep.subr.bf16.mxu1 %v5037_v46 }
 0x774   :  { %2491 = vmatpush1.bf16.msra.mxu0 %v5040_v35  ;;  %2532 = vmatpush1.bf16.msra.mxu1 %v5043_v23 }
 0x775   :  { %2492 = vmatprep.subr.bf16.mxu0 %v5046_v16  ;;  %2533 = vmatprep.subr.bf16.mxu1 %v5049_v1 }
 0x778   :  { %2493 = vmatpush1.bf16.msra.mxu0 %v5052_v10  ;;  %2534 = vmatpush1.bf16.msra.mxu1 %v5055_v63 }
 0x779   :  { %2494 = vmatprep.subr.bf16.mxu0 %v5058_v0  ;;  %2535 = vmatprep.subr.bf16.mxu1 %v5061_v54 }
 0x77c   :  { %2495 = vmatpush1.bf16.msra.mxu0 %v5064_v37  ;;  %2536 = vmatpush1.bf16.msra.mxu1 %v5067_v25 }
 0x77d   :  { %2496 = vmatprep.subr.bf16.mxu0 %v5070_v26  ;;  %2537 = vmatprep.subr.bf16.mxu1 %v5073_v33 }
 0x77f   :  { %v2298_v34 = vpop.f32.mrb[64].mxu0  ;;  %v2339_v39 = vpop.f32.mrb[64].mxu1 }
 0x780   :  { %v2299_v44 = vadd.f32 %v2298_v34, %v5884_v30  ;;  %v2300_v58 = vpop.f32.mrb[65].mxu0  ;;  %v2341_v11 = vpop.f32.mrb[65].mxu1  ;;  %2497 = vmatpush1.bf16.msra.mxu0 %v5077_v19  ;;  %2538 = vmatpush1.bf16.msra.mxu1 %v5080_v42  ;;  %v2340_v57 = vadd.f32 %v2339_v39, %v5894_v3  ;;  %v5128_v34 = vld [vmem:[#allocation6 + $0x120] ss:$16 sps:$4 sm:$0xff]   ;;  %v5131_v39 = vld [vmem:[#allocation6 + $0x128] ss:$16 sps:$4 sm:$0xff]  }
 0x781   :  { %v2301_v28 = vadd.f32 %v2300_v58, %v4161_v7  ;;  %v2302_v6 = vpop.f32.mrb[66].mxu0  ;;  %v2343_v32 = vpop.f32.mrb[66].mxu1  ;;  %2498 = vmatprep.subr.bf16.mxu0 %v5084_v51  ;;  %2539 = vmatprep.subr.bf16.mxu1 %v5087_v13  ;;  %v2342_v56 = vadd.f32 %v2341_v11, %v5887_v31  ;;  %v5137_v58 = vld [vmem:[#allocation6 + $0x14c] ss:$16 sps:$4 sm:$0xff]   ;;  %v5140_v11 = vld [vmem:[#allocation6 + $0x140] ss:$16 sps:$4 sm:$0xff]  }
 0x782   :  { %v2876_v15 = vmul.f32 -1.442695, %v2299_v44  ;;  %v2303_v59 = vpop.f32.mrb[67].mxu0  ;;  %v2344_v52 = vpop.f32.mrb[67].mxu1  ;;  %v5134_v44 = vld [vmem:[#allocation6 + $0x144] ss:$16 sps:$4 sm:$0xff]  }
 0x783   :  { %v2877_v45 = vmul.f32 -1.442695, %v2301_v28  ;;  %v2878_v40 = vmul.f32 -1.442695, %v2342_v56  ;;  %v5143_v28 = vld [vmem:[#allocation6 + $0x148] ss:$16 sps:$4 sm:$0xff]  }
 0x784   :  { %3240 = vpow2.f32 %v2876_v15  ;;  %2499 = vmatpush1.bf16.msra.mxu0 %v5090_v5  ;;  %2540 = vmatpush1.bf16.msra.mxu1 %v5093_v36  ;;  %v5146_v6 = vld [vmem:[#allocation6 + $0x164] ss:$16 sps:$4 sm:$0xff]   ;;  %v5149_v32 = vld [vmem:[#allocation6 + $0x16c] ss:$16 sps:$4 sm:$0xff]   ;;  %v5152_v15 = vld [vmem:[#allocation6 + $0x160] ss:$16 sps:$4 sm:$0xff]  }
 0x785   :  { %3242 = vpow2.f32 %v2877_v45  ;;  %2500 = vmatprep.subr.bf16.mxu0 %v5096_v50  ;;  %2541 = vmatprep.subr.bf16.mxu1 %v5099_v8  ;;  %v5155_v59 = vld [vmem:[#allocation6 + $0x168] ss:$16 sps:$4 sm:$0xff]   ;;  %v5158_v45 = vld [vmem:[#allocation6 + $0x184] ss:$16 sps:$4 sm:$0xff]   ;;  %v5161_v56 = vld [vmem:[#allocation6 + $0x18c] ss:$16 sps:$4 sm:$0xff]  }
 0x786   :  { %3244 = vpow2.f32 %v2878_v40  ;;  %v5167_v3 = vld [vmem:[#allocation6 + $0x188] ss:$16 sps:$4 sm:$0xff]   ;;  %v5171_v7 = vld [vmem:[#allocation6 + $0x1a4] ss:$16 sps:$4 sm:$0xff]   ;;  %v5174_v30 = vld [vmem:[#allocation6 + $0x1ac] ss:$16 sps:$4 sm:$0xff]  }
 0x787   :  { %3246 = vtanh.f32 %v2340_v57 }
 0x788   :  { %2501 = vmatpush1.bf16.msra.mxu0 %v5103_v17  ;;  %2542 = vmatpush1.bf16.msra.mxu1 %v5106_v29 }
 0x789   :  { %2502 = vmatprep.subr.bf16.mxu0 %v5109_v20  ;;  %2543 = vmatprep.subr.bf16.mxu1 %v5112_v14 }
 0x78c   :  { %2503 = vmatpush1.bf16.msra.mxu0 %v5116_v18  ;;  %2544 = vmatpush1.bf16.msra.mxu1 %v5119_v2 }
 0x78d   :  { %2504 = vmatprep.subr.bf16.mxu0 %v5122_v55  ;;  %2545 = vmatprep.subr.bf16.mxu1 %v5125_v48 }
 0x78e   :  { %v3241_v62 = vpop.eup %3240 }
 0x78f   :  { %v3243_v61 = vpop.eup %3242  ;;  %v2349_v43 = vadd.f32 1.0, %v3241_v62 }
 0x790   :  { %v2355_v22 = vadd.f32 1.0, %v3243_v61  ;;  %2505 = vmatpush1.bf16.msra.mxu0 %v5128_v34  ;;  %2546 = vmatpush1.bf16.msra.mxu1 %v5131_v39  ;;  %v3245_v52 = vpop.eup %3244 }
 0x791   :  { %3248 = vrcp.f32 %v2349_v43  ;;  %2506 = vmatprep.subr.bf16.mxu0 %v5134_v44  ;;  %2547 = vmatprep.subr.bf16.mxu1 %v5137_v58  ;;  %v3247_v40 = vpop.eup %3246  ;;  %v2362_v43 = vadd.f32 1.0, %v3245_v52  ;;  %v5179_v52 = vld [vmem:[#allocation6 + $0x1a0] ss:$16 sps:$4 sm:$0xff]  }
 0x792   :  { %3250 = vrcp.f32 %v2355_v22  ;;  %v5164_v22 = vld [vmem:[#allocation6 + $0x180] ss:$16 sps:$4 sm:$0xff]  }
 0x793   :  { %3252 = vrcp.f32 %v2362_v43  ;;  %v5198_v43 = vld [vmem:[#allocation6 + $0x1e4] ss:$16 sps:$4 sm:$0xff]  }
 0x794   :  { %2507 = vmatpush1.bf16.msra.mxu0 %v5140_v11  ;;  %2548 = vmatpush1.bf16.msra.mxu1 %v5143_v28  ;;  %6021 = vst [vmem:[#allocation69_spill] sm:$0xff] %v5198_v43 }
 0x795   :  { %2508 = vmatprep.subr.bf16.mxu0 %v5146_v6  ;;  %2549 = vmatprep.subr.bf16.mxu1 %v5149_v32 }
 0x798   :  { %2509 = vmatpush1.bf16.msra.mxu0 %v5152_v15  ;;  %2550 = vmatpush1.bf16.msra.mxu1 %v5155_v59 }
 0x799   :  { %2510 = vmatprep.subr.bf16.mxu0 %v5158_v45  ;;  %2551 = vmatprep.subr.bf16.mxu1 %v5161_v56 }
 0x79b   :  { %v3249_v57 = vpop.eup %3248 }
 0x79c   :  { %v3251_v62 = vpop.eup %3250  ;;  %v2366_v61 = vmul.f32 %v3249_v57, %v3247_v40  ;;  %2511 = vmatpush1.bf16.msra.mxu0 %v5164_v22  ;;  %2552 = vmatpush1.bf16.msra.mxu1 %v5167_v3  ;;  %v5182_v57 = vld [vmem:[#allocation6 + $0x1a8] ss:$16 sps:$4 sm:$0xff]  }
 0x79d   :  { %v2365_v31 = vmul.f32 %v3251_v62, %v4949_v38  ;;  %2512 = vmatprep.subr.bf16.mxu0 %v5171_v7  ;;  %2553 = vmatprep.subr.bf16.mxu1 %v5174_v30  ;;  %v5185_v38 = vld [vmem:[#allocation6 + $0x1c4] ss:$16 sps:$4 sm:$0xff]   ;;  %v5188_v62 = vld [vmem:[#allocation6 + $0x1cc] ss:$16 sps:$4 sm:$0xff]  }
 0x79e   :  { %6017 = vst [vmem:[#allocation60_spill] sm:$0xff] %v5185_v38  ;;  %6018 = vst [vmem:[#allocation62_spill] sm:$0xff] %v5188_v62 }
 0x79f   :  { %v5177_v40 = vadd.f32 %v2366_v61, %v2365_v31  ;;  %v5192_v31 = vld [vmem:[#allocation6 + $0x1c0] ss:$16 sps:$4 sm:$0xff]   ;;  %v5195_v61 = vld [vmem:[#allocation6 + $0x1c8] ss:$16 sps:$4 sm:$0xff]  }
 0x7a0   :  { %2513 = vmatpush1.bf16.msra.mxu0 %v5179_v52  ;;  %2554 = vmatpush1.bf16.msra.mxu1 %v5182_v57  ;;  %6019 = vst [vmem:[#allocation63_spill] sm:$0xff] %v5192_v31  ;;  %6020 = vst [vmem:[#allocation68_spill] sm:$0xff] %v5195_v61 }
 0x7a1   :  { %6016 = vst [vmem:[#allocation59_spill] sm:$0xff] %v5177_v40  ;;  %2514 = vmatprep.subr.bf16.mxu0 %v5185_v38  ;;  %2555 = vmatprep.subr.bf16.mxu1 %v5188_v62  ;;  %3254 = vtanh.f32 %v5177_v40  ;;  %v5204_v38 = vld [vmem:[#allocation6 + $0x1e0] ss:$16 sps:$4 sm:$0xff]   ;;  %v5207_v40 = vld [vmem:[#allocation6 + $0x1e8] ss:$16 sps:$4 sm:$0xff]  }
 0x7a4   :  { %2515 = vmatpush1.bf16.msra.mxu0 %v5192_v31  ;;  %2556 = vmatpush1.bf16.msra.mxu1 %v5195_v61  ;;  %v3253_v61 = vpop.eup %3252 }
 0x7a5   :  { %2516 = vmatprep.subr.bf16.mxu0 %v5198_v43  ;;  %2557 = vmatprep.subr.bf16.mxu1 %v5201_v12 }
 0x7a8   :  { %2517 = vmatpush1.bf16.msra.mxu0 %v5204_v38  ;;  %2558 = vmatpush1.bf16.msra.mxu1 %v5207_v40 }
 0x7a9   :  { %2594 = vmatprep.subr.bf16.mxu0 %v4998_v41  ;;  %2635 = vmatprep.subr.bf16.mxu1 %v5001_v9  ;;  %v6022_v41 = vld [vmem:[#allocation60_spill] sm:$0xff]  ;;  %v6023_v9 = vld [vmem:[#allocation62_spill] sm:$0xff] }
 0x7ab   :  { %v3255_v31 = vpop.eup %3254 }
 0x7ac   :  { %v2369_v62 = vmul.f32 %v3255_v31, %v3253_v61 }
 0x7ae   :  { %v2485_v43 = vpack.c.bf16 %v2369_v62, %v2369_v62 }
 0x7b0   :  { %2518 = vmatprep.mubr.bf16.mxu0 %v2485_v43  ;;  %2559 = vmatprep.mubr.bf16.mxu1 %v2485_v43 }
 0x7b1   :  { %2519 = vmatmul.mubr.bf16.vlgmr.msra.gmra.mrb[72].mxu0 %v5012_v21  ;;  %2560 = vmatmul.mubr.bf16.vlgmr.msra.gmra.mrb[72].mxu1 %v5012_v21  ;;  %v6024_v21 = vld [vmem:[#allocation63_spill] sm:$0xff] }
 0x7b2   :  { %2595 = vmatpush1.bf16.msra.mxu0 %v5016_v27  ;;  %2636 = vmatpush1.bf16.msra.mxu1 %v5019_v47  ;;  %v6025_v27 = vld [vmem:[#allocation68_spill] sm:$0xff]  ;;  %v6026_v47 = vld [vmem:[#allocation69_spill] sm:$0xff] }
 0x7b3   :  { %2596 = vmatprep.subr.bf16.mxu0 %v5022_v60  ;;  %2637 = vmatprep.subr.bf16.mxu1 %v5025_v49  ;;  %v6028_v49 = vld [vmem:[#allocation31_spill] sm:$0xff] }
 0x7b6   :  { %2597 = vmatpush1.bf16.msra.mxu0 %v5028_v53  ;;  %2638 = vmatpush1.bf16.msra.mxu1 %v5031_v4 }
 0x7b7   :  { %2598 = vmatprep.subr.bf16.mxu0 %v5034_v24  ;;  %2639 = vmatprep.subr.bf16.mxu1 %v5037_v46  ;;  %v6029_v46 = vld [vmem:[#allocation32_spill] sm:$0xff] }
 0x7ba   :  { %2599 = vmatpush1.bf16.msra.mxu0 %v5040_v35  ;;  %2640 = vmatpush1.bf16.msra.mxu1 %v5043_v23  ;;  %v6030_v23 = vld [vmem:[#allocation33_spill] sm:$0xff] }
 0x7bb   :  { %2600 = vmatprep.subr.bf16.mxu0 %v5046_v16  ;;  %2641 = vmatprep.subr.bf16.mxu1 %v5049_v1 }
 0x7be   :  { %2601 = vmatpush1.bf16.msra.mxu0 %v5052_v10  ;;  %2642 = vmatpush1.bf16.msra.mxu1 %v5055_v63 }
 0x7bf   :  { %2602 = vmatprep.subr.bf16.mxu0 %v5058_v0  ;;  %2643 = vmatprep.subr.bf16.mxu1 %v5061_v54 }
 0x7c2   :  { %2603 = vmatpush1.bf16.msra.mxu0 %v5064_v37  ;;  %2644 = vmatpush1.bf16.msra.mxu1 %v5067_v25 }
 0x7c3   :  { %2604 = vmatprep.subr.bf16.mxu0 %v5070_v26  ;;  %2645 = vmatprep.subr.bf16.mxu1 %v5073_v33 }
 0x7c6   :  { %2605 = vmatpush1.bf16.msra.mxu0 %v5077_v19  ;;  %2646 = vmatpush1.bf16.msra.mxu1 %v5080_v42 }
 0x7c7   :  { %2606 = vmatprep.subr.bf16.mxu0 %v5084_v51  ;;  %2647 = vmatprep.subr.bf16.mxu1 %v5087_v13 }
 0x7ca   :  { %2607 = vmatpush1.bf16.msra.mxu0 %v5090_v5  ;;  %2648 = vmatpush1.bf16.msra.mxu1 %v5093_v36 }
 0x7cb   :  { %2608 = vmatprep.subr.bf16.mxu0 %v5096_v50  ;;  %2649 = vmatprep.subr.bf16.mxu1 %v5099_v8  ;;  %v6031_v8 = vld [vmem:[#allocation58_spill] sm:$0xff] }
 0x7ce   :  { %2609 = vmatpush1.bf16.msra.mxu0 %v5103_v17  ;;  %2650 = vmatpush1.bf16.msra.mxu1 %v5106_v29 }
 0x7cf   :  { %2610 = vmatprep.subr.bf16.mxu0 %v5109_v20  ;;  %2651 = vmatprep.subr.bf16.mxu1 %v5112_v14 }
 0x7d2   :  { %2611 = vmatpush1.bf16.msra.mxu0 %v5116_v18  ;;  %2652 = vmatpush1.bf16.msra.mxu1 %v5119_v2 }
 0x7d3   :  { %2612 = vmatprep.subr.bf16.mxu0 %v5122_v55  ;;  %2653 = vmatprep.subr.bf16.mxu1 %v5125_v48  ;;  %v6032_v48 = vld [vmem:[#allocation82_spill] sm:$0xff] }
 0x7d6   :  { %2613 = vmatpush1.bf16.msra.mxu0 %v5128_v34  ;;  %2654 = vmatpush1.bf16.msra.mxu1 %v5131_v39 }
 0x7d7   :  { %2614 = vmatprep.subr.bf16.mxu0 %v5134_v44  ;;  %2655 = vmatprep.subr.bf16.mxu1 %v5137_v58  ;;  %v6033_v58 = vld [vmem:[#allocation83_spill] sm:$0xff] }
 0x7da   :  { %2615 = vmatpush1.bf16.msra.mxu0 %v5140_v11  ;;  %2656 = vmatpush1.bf16.msra.mxu1 %v5143_v28 }
 0x7db   :  { %2616 = vmatprep.subr.bf16.mxu0 %v5146_v6  ;;  %2657 = vmatprep.subr.bf16.mxu1 %v5149_v32 }
 0x7de   :  { %2617 = vmatpush1.bf16.msra.mxu0 %v5152_v15  ;;  %2658 = vmatpush1.bf16.msra.mxu1 %v5155_v59 }
 0x7df   :  { %2618 = vmatprep.subr.bf16.mxu0 %v5158_v45  ;;  %2659 = vmatprep.subr.bf16.mxu1 %v5161_v56  ;;  %v6034_v56 = vld [vmem:[#allocation34_spill] sm:$0xff] }
 0x7e2   :  { %2619 = vmatpush1.bf16.msra.mxu0 %v5164_v22  ;;  %2660 = vmatpush1.bf16.msra.mxu1 %v5167_v3  ;;  %v6027_v3 = vld [vmem:[#allocation30_spill] sm:$0xff] }
 0x7e3   :  { %2620 = vmatprep.subr.bf16.mxu0 %v5171_v7  ;;  %2661 = vmatprep.subr.bf16.mxu1 %v5174_v30 }
 0x7e6   :  { %2621 = vmatpush1.bf16.msra.mxu0 %v5179_v52  ;;  %2662 = vmatpush1.bf16.msra.mxu1 %v5182_v57  ;;  %v6035_v52 = vld [vmem:[#allocation35_spill] sm:$0xff] }
 0x7e7   :  { %2622 = vmatprep.subr.bf16.mxu0 %v6022_v41  ;;  %2663 = vmatprep.subr.bf16.mxu1 %v6023_v9 }
 0x7ea   :  { %2623 = vmatpush1.bf16.msra.mxu0 %v6024_v21  ;;  %2664 = vmatpush1.bf16.msra.mxu1 %v6025_v27 }
 0x7eb   :  { %2624 = vmatprep.subr.bf16.mxu0 %v6026_v47  ;;  %2665 = vmatprep.subr.bf16.mxu1 %v5201_v12 }
 0x7ee   :  { %2625 = vmatpush1.bf16.msra.mxu0 %v5204_v38  ;;  %2666 = vmatpush1.bf16.msra.mxu1 %v5207_v40 }
 0x83e   :  { %v2409_v7 = vpop.f32.mrb[68].mxu0  ;;  %v2450_v30 = vpop.f32.mrb[68].mxu1 }
 0x83f   :  { %v2457_v60 = vadd.f32 %v2409_v7, %v6027_v3  ;;  %v2459_v53 = vadd.f32 %v2450_v30, %v6028_v49  ;;  %v2411_v4 = vpop.f32.mrb[69].mxu0  ;;  %v2452_v24 = vpop.f32.mrb[69].mxu1  ;;  %v6036_v7 = vld [vmem:[#allocation59_spill] sm:$0xff] }
 0x840   :  { %v2458_v35 = vadd.f32 %v2411_v4, %v6029_v46  ;;  %v2460_v16 = vadd.f32 %v2452_v24, %v6030_v23  ;;  %v2413_v1 = vpop.f32.mrb[70].mxu0  ;;  %v2454_v10 = vpop.f32.mrb[70].mxu1 }
 0x841   :  { %v2879_v63 = vmul.f32 -1.442695, %v2457_v60  ;;  %v2414_v12 = vpop.f32.mrb[71].mxu0  ;;  %v2455_v0 = vpop.f32.mrb[71].mxu1 }
 0x842   :  { %v2880_v54 = vmul.f32 -1.442695, %v2458_v35  ;;  %v2881_v37 = vmul.f32 -1.442695, %v2460_v16 }
 0x843   :  { %3256 = vpow2.f32 %v2879_v63 }
 0x844   :  { %3258 = vpow2.f32 %v2880_v54 }
 0x845   :  { %3260 = vpow2.f32 %v2881_v37 }
 0x846   :  { %3262 = vtanh.f32 %v2459_v53 }
 0x84d   :  { %v3257_v25 = vpop.eup %3256 }
 0x84e   :  { %v3259_v26 = vpop.eup %3258  ;;  %v2464_v33 = vadd.f32 1.0, %v3257_v25 }
 0x84f   :  { %v2470_v19 = vadd.f32 1.0, %v3259_v26  ;;  %v3261_v42 = vpop.eup %3260 }
 0x850   :  { %3264 = vrcp.f32 %v2464_v33  ;;  %v3263_v51 = vpop.eup %3262  ;;  %v2477_v50 = vadd.f32 1.0, %v3261_v42 }
 0x851   :  { %3266 = vrcp.f32 %v2470_v19 }
 0x852   :  { %3268 = vrcp.f32 %v2477_v50 }
 0x85a   :  { %v3265_v13 = vpop.eup %3264 }
 0x85b   :  { %v3267_v5 = vpop.eup %3266  ;;  %v2481_v36 = vmul.f32 %v3265_v13, %v3263_v51 }
 0x85c   :  { %v2480_v17 = vmul.f32 %v3267_v5, %v6031_v8  ;;  %v3269_v20 = vpop.eup %3268 }
 0x85e   :  { %v2482_v29 = vadd.f32 %v2481_v36, %v2480_v17 }
 0x860   :  { %3270 = vtanh.f32 %v2482_v29 }
 0x86a   :  { %v3271_v14 = vpop.eup %3270 }
 0x86b   :  { %v2484_v18 = vmul.f32 %v3271_v14, %v3269_v20 }
 0x86d   :  { %v2592_v24 = vpack.c.bf16 %v2484_v18, %v2484_v18 }
 0x884   :  { %v2520_v2 = vpop.f32.mrb[72].mxu0  ;;  %v2561_v55 = vpop.f32.mrb[72].mxu1 }
 0x885   :  { %v2521_v34 = vadd.f32 %v2520_v2, %v6032_v48  ;;  %v2522_v39 = vpop.f32.mrb[73].mxu0  ;;  %v2563_v44 = vpop.f32.mrb[73].mxu1  ;;  %v2562_v57 = vadd.f32 %v2561_v55, %v6035_v52 }
 0x886   :  { %v2523_v11 = vadd.f32 %v2522_v39, %v6033_v58  ;;  %v2524_v28 = vpop.f32.mrb[74].mxu0  ;;  %v2565_v6 = vpop.f32.mrb[74].mxu1  ;;  %v2564_v22 = vadd.f32 %v2563_v44, %v6034_v56  ;;  %v2889_v44 = vld [vmem:[#allocation3] ss:$0 sm:$0xff] }
 0x887   :  { %v2882_v32 = vmul.f32 -1.442695, %v2521_v34  ;;  %v2525_v15 = vpop.f32.mrb[75].mxu0  ;;  %v2566_v59 = vpop.f32.mrb[75].mxu1 }
 0x888   :  { %v2883_v45 = vmul.f32 -1.442695, %v2523_v11  ;;  %v2884_v40 = vmul.f32 -1.442695, %v2564_v22 }
 0x889   :  { %3272 = vpow2.f32 %v2882_v32 }
 0x88a   :  { %3274 = vpow2.f32 %v2883_v45 }
 0x88b   :  { %3276 = vpow2.f32 %v2884_v40 }
 0x88c   :  { %3278 = vtanh.f32 %v2562_v57 }
 0x893   :  { %v3273_v38 = vpop.eup %3272 }
 0x894   :  { %v3275_v62 = vpop.eup %3274  ;;  %v2571_v31 = vadd.f32 1.0, %v3273_v38 }
 0x895   :  { %v2577_v61 = vadd.f32 1.0, %v3275_v62  ;;  %v3277_v43 = vpop.eup %3276 }
 0x896   :  { %3280 = vrcp.f32 %v2571_v31  ;;  %v3279_v41 = vpop.eup %3278  ;;  %v2584_v47 = vadd.f32 1.0, %v3277_v43 }
 0x897   :  { %3282 = vrcp.f32 %v2577_v61 }
 0x898   :  { %3284 = vrcp.f32 %v2584_v47 }
 0x8a0   :  { %v3281_v9 = vpop.eup %3280 }
 0x8a1   :  { %v3283_v21 = vpop.eup %3282  ;;  %v2588_v27 = vmul.f32 %v3281_v9, %v3279_v41 }
 0x8a2   :  { %v2587_v30 = vmul.f32 %v3283_v21, %v6036_v7  ;;  %v3285_v60 = vpop.eup %3284 }
 0x8a4   :  { %v2589_v3 = vadd.f32 %v2588_v27, %v2587_v30 }
 0x8a6   :  { %3286 = vtanh.f32 %v2589_v3 }
 0x8b0   :  { %v3287_v49 = vpop.eup %3286 }
 0x8b1   :  { %v2591_v53 = vmul.f32 %v3287_v49, %v3285_v60 }
 0x8b3   :  { %v2593_v4 = vpack.c.bf16 %v2591_v53, %v2591_v53 }
 0x8b5   :  { %2626 = vmatprep.mubr.bf16.mxu0 %v2593_v4  ;;  %2667 = vmatprep.mubr.bf16.mxu1 %v2593_v4 }
 0x8b6   :  { %2627 = vmatmul.mubr.bf16.vlgmr.msra.gmra.mrb[76].mxu0 %v2592_v24  ;;  %2668 = vmatmul.mubr.bf16.vlgmr.msra.gmra.mrb[76].mxu1 %v2592_v24 }
 0x989   :  { %v2628_v46 = vpop.f32.mrb[76].mxu0  ;;  %v2669_v35 = vpop.f32.mrb[76].mxu1 }
 0x98a   :  { %v2629_v23 = vadd.f32 %v2628_v46, %v6032_v48  ;;  %v2630_v16 = vpop.f32.mrb[77].mxu0  ;;  %v2671_v1 = vpop.f32.mrb[77].mxu1  ;;  %v2670_v19 = vadd.f32 %v2669_v35, %v6035_v52  ;;  %v2888_v48 = vld [vmem:[%s5302_s6] ss:$0 sm:$0xff] }
 0x98b   :  { %v2631_v10 = vadd.f32 %v2630_v16, %v6033_v58  ;;  %v2632_v63 = vpop.f32.mrb[78].mxu0  ;;  %v2673_v12 = vpop.f32.mrb[78].mxu1  ;;  %v2672_v26 = vadd.f32 %v2671_v1, %v6034_v56 }
 0x98c   :  { %v2885_v0 = vmul.f32 -1.442695, %v2629_v23  ;;  %v2633_v54 = vpop.f32.mrb[79].mxu0  ;;  %v2674_v37 = vpop.f32.mrb[79].mxu1 }
 0x98d   :  { %v2886_v25 = vmul.f32 -1.442695, %v2631_v10  ;;  %v2887_v33 = vmul.f32 -1.442695, %v2672_v26 }
 0x98e   :  { %3288 = vpow2.f32 %v2885_v0 }
 0x98f   :  { %3290 = vpow2.f32 %v2886_v25 }
 0x990   :  { %3292 = vpow2.f32 %v2887_v33 }
 0x991   :  { %3294 = vtanh.f32 %v2670_v19 }
 0x998   :  { %v3289_v42 = vpop.eup %3288 }
 0x999   :  { %v3291_v51 = vpop.eup %3290  ;;  %v2679_v13 = vadd.f32 1.0, %v3289_v42 }
 0x99a   :  { %v2685_v5 = vadd.f32 1.0, %v3291_v51  ;;  %v3293_v36 = vpop.eup %3292 }
 0x99b   :  { %3296 = vrcp.f32 %v2679_v13  ;;  %v3295_v50 = vpop.eup %3294  ;;  %v2692_v20 = vadd.f32 1.0, %v3293_v36 }
 0x99c   :  { %3298 = vrcp.f32 %v2685_v5 }
 0x99d   :  { %3300 = vrcp.f32 %v2692_v20 }
 0x9a5   :  { %v3297_v8 = vpop.eup %3296 }
 0x9a6   :  { %v3299_v17 = vpop.eup %3298  ;;  %v2696_v29 = vmul.f32 %v3297_v8, %v3295_v50 }
 0x9a7   :  { %v2695_v14 = vmul.f32 %v3299_v17, %v2589_v3  ;;  %v3301_v2 = vpop.eup %3300 }
 0x9a9   :  { %v2697_v18 = vadd.f32 %v2696_v29, %v2695_v14 }
 0x9ab   :  { %3302 = vtanh.f32 %v2697_v18 }
 0x9b5   :  { %v3303_v55 = vpop.eup %3302 }
 0x9b6   :  { %v2699_v34 = vmul.f32 %v3303_v55, %v3301_v2 }
 0x9b8   :  { %v2707_v39 = vmul.f32 %v2888_v48, %v2699_v34 }
 0x9ba   :  { %2708 = vadd.xlane.f32.xlu0 %v2707_v39 }
 0xa47   :  { %v2709_v58 = vpop.xlane.xlu0 %2708 }
 0xa48   :  { %v2717_v11 = vadd.f32 %v2889_v44, %v2709_v58 }
 0xa4a   :  { %2719 = vst.msk [vmem:[%s5304_s8] sm:$0xff] %vm2718_vm2, %v2717_v11 }
 0xa4b   :  { %2724 = vsyncpa [#allocation5], 1 }
 0xa4c   :  { %2725 = vsyncpa [#allocation7], 1 }

</bundles_post_ra>
